<compile_context>
chip_gen: v5e
topology: v5e:2x2
jax: 0.10.0
libtpu: 0.0.40
codegen_flags: <defaults>
</compile_context>

<pallas_src>
import functools

import jax
import jax.numpy as jnp
from jax.experimental import pallas as pl
from jax.experimental.pallas import tpu as pltpu

D_MODEL = 64
N_HEADS = 4
D_K = D_MODEL // N_HEADS
LN_EPS = 1e-5


def _tca_compute(q_in_ref, k_in_ref, v_in_ref,
                 wq_ref, bq_ref, wk_ref, bk_ref, wv_ref, bv_ref,
                 gamma_ref, beta_ref, mask_ref, hmask_ref,
                 out_ref, attn_ref, *, n_heads):
    tb, s, d = q_in_ref.shape
    m = tb * s
    d_k = d // n_heads

    # (TB, S, D) -> (TB*S, D): merging the leading (major) dims is layout-free.
    xq = q_in_ref[...].reshape(m, d)   # f32; also the residual input
    xk = k_in_ref[...].reshape(m, d)
    xv = v_in_ref[...].reshape(m, d)

    # QKV projections on the MXU in bf16 (f32 accumulation).  The softmax
    # 1/sqrt(d_k) scale is already folded into (wq, bq) by the wrapper.
    q = jnp.dot(xq.astype(jnp.bfloat16), wq_ref[...],
                preferred_element_type=jnp.float32) + bq_ref[...]
    k = jnp.dot(xk.astype(jnp.bfloat16), wk_ref[...],
                preferred_element_type=jnp.float32) + bk_ref[...]
    v = jnp.dot(xv.astype(jnp.bfloat16), wv_ref[...],
                preferred_element_type=jnp.float32) + bv_ref[...]

    q_bf = q.astype(jnp.bfloat16)
    k_bf = k.astype(jnp.bfloat16)
    v_bf = v.astype(jnp.bfloat16)

    mask_add = mask_ref[...]     # (M, M) additive block-diagonal mask: 0 / -1e30
    hmask = hmask_ref[...]       # (n_heads, D) per-head output-column mask

    acc = jnp.zeros((m, d), jnp.float32)
    for h in range(n_heads):
        lo = h * d_k

        # Contract the last dims directly (trans_b form) -> no XLU transpose.
        scores = jax.lax.dot_general(
            q_bf[:, lo:lo + d_k], k_bf[:, lo:lo + d_k],
            (((1,), (1,)), ((), ())),
            preferred_element_type=jnp.float32)            # (M, M)
        scores = scores + mask_add

        # Numerically-stable softmax (f32 on VPU/EUP).
        scores = scores - jnp.max(scores, axis=-1, keepdims=True)
        e = jnp.exp(scores)
        attn = e * pl.reciprocal(jnp.sum(e, axis=-1, keepdims=True), approx=False)
        # TODO(synk): dropout on attention weights is a no-op (eval-mode semantics).

        # One lane-dense MXU matmul against the full V (same push count as the
        # 16-lane slice); the per-head column mask keeps only this head's 16
        # output lanes and the sum accumulates in registers (no masked vst).
        av = jnp.dot(attn.astype(jnp.bfloat16), v_bf,
                     preferred_element_type=jnp.float32)   # (M, D)
        acc = acc + av * hmask[h:h + 1, :]

        if attn_ref is not None:
            # Lane-dense (M, M) block-diagonal writeback; the wrapper extracts
            # the per-batch (S, S) diagonal blocks outside the kernel.
            attn_ref[h] = attn

    # Residual (pre-projection query) + LayerNorm over d_model, all f32.
    y = acc + xq
    mean = jnp.mean(y, axis=-1, keepdims=True)
    centered = y - mean
    var = jnp.mean(centered * centered, axis=-1, keepdims=True)
    y_norm = centered * jax.lax.rsqrt(var + LN_EPS)
    out_ref[...] = (y_norm * gamma_ref[...] + beta_ref[...]).reshape(tb, s, d)


def _tca_kernel_with_attn(q_in, k_in, v_in, wq, bq, wk, bk, wv, bv,
                          gamma, beta, mask, hmask, out_ref, attn_ref,
                          *, n_heads):
    _tca_compute(q_in, k_in, v_in, wq, bq, wk, bk, wv, bv, gamma, beta,
                 mask, hmask, out_ref, attn_ref, n_heads=n_heads)


def _tca_kernel_no_attn(q_in, k_in, v_in, wq, bq, wk, bk, wv, bv,
                        gamma, beta, mask, hmask, out_ref, *, n_heads):
    _tca_compute(q_in, k_in, v_in, wq, bq, wk, bk, wv, bv, gamma, beta,
                 mask, hmask, out_ref, None, n_heads=n_heads)


@functools.partial(jax.jit, static_argnames=("return_attn", "block_b"))
def temporal_cross_attention(query, key, value, params, *,
                             return_attn=True, block_b=None):
    B, S, D = query.shape
    assert D == D_MODEL

    if block_b is None:
        # Target M = block_b*S ~ 64 rows (fills MXU sublanes without blowing
        # up the block-diagonal waste), while keeping >= 4 grid steps when the
        # batch allows, so each v7x TensorCore gets >= 2 pipelined steps.
        block_b = max(1, min(B, pl.cdiv(64, S)))
        while block_b > 1 and pl.cdiv(B, block_b) < 4:
            block_b = pl.cdiv(block_b, 2)

    # Fold the softmax 1/sqrt(d_k) scale into the Q projection; bf16 weights.
    scale = 1.0 / float(D // N_HEADS) ** 0.5
    wq = (params["wq"] * scale).astype(jnp.bfloat16)
    bq = params["bq"] * scale
    wk = params["wk"].astype(jnp.bfloat16)
    wv = params["wv"].astype(jnp.bfloat16)
    bk, bv = params["bk"], params["bv"]
    gamma, beta = params["gamma"], params["beta"]

    # Pad batch to a multiple of block_b (padded rows are sliced off below).
    pad = (-B) % block_b
    if pad:
        pad_cfg = ((0, pad), (0, 0), (0, 0))
        query_p = jnp.pad(query, pad_cfg)
        key_p = jnp.pad(key, pad_cfg)
        value_p = jnp.pad(value, pad_cfg)
    else:
        query_p, key_p, value_p = query, key, value
    Bp = B + pad
    G = Bp // block_b
    M = block_b * S
    grid = (G,)

    # Precomputed constants (VMEM-resident, constant index_map -> DMA'd once).
    row_batch = jnp.arange(M, dtype=jnp.int32) // S
    mask_add = jnp.where(row_batch[:, None] == row_batch[None, :],
                         0.0, -1e30).astype(jnp.float32)               # (M, M)
    col_head = jnp.arange(D, dtype=jnp.int32) // (D // N_HEADS)
    hmask = (col_head[None, :] ==
             jnp.arange(N_HEADS, dtype=jnp.int32)[:, None]).astype(jnp.float32)

    seq_spec = pl.BlockSpec((block_b, S, D), lambda b: (b, 0, 0))
    mat_spec = pl.BlockSpec((D, D), lambda b: (0, 0))
    vec_spec = pl.BlockSpec((1, D), lambda b: (0, 0))
    mask_spec = pl.BlockSpec((M, M), lambda b: (0, 0))
    hmask_spec = pl.BlockSpec((N_HEADS, D), lambda b: (0, 0))

    out_spec = pl.BlockSpec((block_b, S, D), lambda b: (b, 0, 0))
    out_shape = jax.ShapeDtypeStruct((Bp, S, D), jnp.float32)

    if return_attn:
        kernel = functools.partial(_tca_kernel_with_attn, n_heads=N_HEADS)
        out_shapes = (out_shape,
                      jax.ShapeDtypeStruct((G, N_HEADS, M, M), jnp.float32))
        out_specs = (out_spec,
                     pl.BlockSpec((None, N_HEADS, M, M),
                                  lambda b: (b, 0, 0, 0)))
    else:
        kernel = functools.partial(_tca_kernel_no_attn, n_heads=N_HEADS)
        out_shapes = out_shape
        out_specs = out_spec

    result = pl.pallas_call(
        kernel,
        out_shape=out_shapes,
        grid=grid,
        in_specs=[seq_spec, seq_spec, seq_spec,   # query, key, value
                  mat_spec, vec_spec,             # wq (scaled, bf16), bq (scaled)
                  mat_spec, vec_spec,             # wk (bf16), bk
                  mat_spec, vec_spec,             # wv (bf16), bv
                  vec_spec, vec_spec,             # gamma, beta
                  mask_spec, hmask_spec],         # additive mask, head col mask
        out_specs=out_specs,
        compiler_params=pltpu.CompilerParams(
            dimension_semantics=("parallel",)),
    )(query_p, key_p, value_p, wq, bq, wk, bk, wv, bv, gamma, beta,
      mask_add, hmask)

    if return_attn:
        out, attn_big = result
        # Extract the per-batch (S, S) diagonal blocks from the block-diagonal
        # (M, M) per-head matrices with plain XLA ops (outside the kernel).
        attn_big = attn_big.reshape(G, N_HEADS, block_b, S, block_b, S)
        diag = jnp.diagonal(attn_big, axis1=2, axis2=4)   # (G, H, S, S, block_b)
        attn = jnp.moveaxis(diag, -1, 1).reshape(Bp, N_HEADS, S, S)
        return out[:B], attn[:B]
    return result[:B]


def init_params(key):
    """Deterministic parameter init (shapes from nn.Linear(d_model, d_model) / LayerNorm)."""
    ks = jax.random.split(key, 6)
    scale = 1.0 / jnp.sqrt(jnp.float32(D_MODEL))
    # Weights stored as (D_in, D_out) == torch Linear weight transposed.
    wq = jax.random.uniform(ks[0], (D_MODEL, D_MODEL), jnp.float32, -scale, scale)
    wk = jax.random.uniform(ks[1], (D_MODEL, D_MODEL), jnp.float32, -scale, scale)
    wv = jax.random.uniform(ks[2], (D_MODEL, D_MODEL), jnp.float32, -scale, scale)
    bq = jax.random.uniform(ks[3], (1, D_MODEL), jnp.float32, -scale, scale)
    bk = jax.random.uniform(ks[4], (1, D_MODEL), jnp.float32, -scale, scale)
    bv = jax.random.uniform(ks[5], (1, D_MODEL), jnp.float32, -scale, scale)
    gamma = jnp.ones((1, D_MODEL), jnp.float32)
    beta = jnp.zeros((1, D_MODEL), jnp.float32)
    return dict(wq=wq, bq=bq, wk=wk, bk=bk, wv=wv, bv=bv, gamma=gamma, beta=beta)


def _reference(query, key, value, p):
    """Pure-JAX f32 reference mirroring the PyTorch forward (eval mode)."""
    B, S, D = query.shape
    prec = jax.lax.Precision.HIGHEST
    q = jnp.dot(query, p["wq"], precision=prec) + p["bq"]
    k = jnp.dot(key, p["wk"], precision=prec) + p["bk"]
    v = jnp.dot(value, p["wv"], precision=prec) + p["bv"]

    def split(x):
        return x.reshape(B, S, N_HEADS, D_K).transpose(0, 2, 1, 3)

    qh, kh, vh = split(q), split(k), split(v)
    scores = jnp.einsum("bhqd,bhkd->bhqk", qh, kh,
                        precision=prec) / jnp.sqrt(jnp.float32(D_K))
    attn = jax.nn.softmax(scores, axis=-1)
    out = jnp.einsum("bhqk,bhkd->bhqd", attn, vh, precision=prec)
    out = out.transpose(0, 2, 1, 3).reshape(B, S, D)
    y = out + query
    mean = jnp.mean(y, axis=-1, keepdims=True)
    var = jnp.mean((y - mean) ** 2, axis=-1, keepdims=True)
    y = (y - mean) / jnp.sqrt(var + LN_EPS)
    return y * p["gamma"] + p["beta"], attn


if __name__ == "__main__":
    B, S = 32, 8   # block_b=8 -> M=64 rows/step, grid=(4,)
    root = jax.random.PRNGKey(0)
    k_q, k_k, k_v, k_p = jax.random.split(root, 4)

    query = jax.random.normal(k_q, (B, S, D_MODEL), jnp.float32)
    key_t = jax.random.normal(k_k, (B, S, D_MODEL), jnp.float32)
    value = jax.random.normal(k_v, (B, S, D_MODEL), jnp.float32)
    params = init_params(k_p)

    out, attn_weights = temporal_cross_attention(query, key_t, value, params)
    jax.block_until_ready((out, attn_weights))

    ref_out, ref_attn = _reference(query, key_t, value, params)
    # bf16 MXU operands -> compare against the f32 reference with a loosened
    # tolerance (softmax/LN math is still f32).
    assert jnp.allclose(out, ref_out, atol=3e-2, rtol=3e-2), "output mismatch"
    assert jnp.allclose(attn_weights, ref_attn, atol=3e-2, rtol=3e-2), "attn mismatch"

    # Faster variant that skips the attention-weights writeback entirely.
    out_only = temporal_cross_attention(query, key_t, value, params,
                                        return_attn=False)
    jax.block_until_ready(out_only)
    assert jnp.allclose(out_only, ref_out, atol=3e-2, rtol=3e-2), \
        "output mismatch (no-attn)"

    print("KERNEL_OK")
</pallas_src>

<mosaic_0001>
module attributes {stable_mosaic.version = 11 : i64} {
  func.func @_tca_kernel_with_attn(%arg0: i32, %arg1: memref<8x8x64xf32, #tpu.memory_space<vmem>>, %arg2: memref<8x8x64xf32, #tpu.memory_space<vmem>>, %arg3: memref<8x8x64xf32, #tpu.memory_space<vmem>>, %arg4: memref<64x64xbf16, #tpu.memory_space<vmem>>, %arg5: memref<1x64xf32, #tpu.memory_space<vmem>>, %arg6: memref<64x64xbf16, #tpu.memory_space<vmem>>, %arg7: memref<1x64xf32, #tpu.memory_space<vmem>>, %arg8: memref<64x64xbf16, #tpu.memory_space<vmem>>, %arg9: memref<1x64xf32, #tpu.memory_space<vmem>>, %arg10: memref<1x64xf32, #tpu.memory_space<vmem>>, %arg11: memref<1x64xf32, #tpu.memory_space<vmem>>, %arg12: memref<64x64xf32, #tpu.memory_space<vmem>>, %arg13: memref<4x64xf32, #tpu.memory_space<vmem>>, %arg14: memref<8x8x64xf32, #tpu.memory_space<vmem>>, %arg15: memref<1x4x64x64xf32, #tpu.memory_space<vmem>>) attributes {dimension_semantics = [#tpu.dimension_semantics<parallel>], iteration_bounds = array<i64: 4>, scalar_prefetch = 0 : i64, scratch_operands = 0 : i64, tpu.core_type = #tpu.core_type<tc>, window_params = [{transform_indices = @transform_0, window_bounds = array<i64: 8, 8, 64>}, {transform_indices = @transform_1, window_bounds = array<i64: 8, 8, 64>}, {transform_indices = @transform_2, window_bounds = array<i64: 8, 8, 64>}, {pipeline_mode = #tpu.pipeline_mode<synchronous>, transform_indices = @transform_3, window_bounds = array<i64: 64, 64>}, {pipeline_mode = #tpu.pipeline_mode<synchronous>, transform_indices = @transform_4, window_bounds = array<i64: 1, 64>}, {pipeline_mode = #tpu.pipeline_mode<synchronous>, transform_indices = @transform_5, window_bounds = array<i64: 64, 64>}, {pipeline_mode = #tpu.pipeline_mode<synchronous>, transform_indices = @transform_6, window_bounds = array<i64: 1, 64>}, {pipeline_mode = #tpu.pipeline_mode<synchronous>, transform_indices = @transform_7, window_bounds = array<i64: 64, 64>}, {pipeline_mode = #tpu.pipeline_mode<synchronous>, transform_indices = @transform_8, window_bounds = array<i64: 1, 64>}, {pipeline_mode = #tpu.pipeline_mode<synchronous>, transform_indices = @transform_9, window_bounds = array<i64: 1, 64>}, {pipeline_mode = #tpu.pipeline_mode<synchronous>, transform_indices = @transform_10, window_bounds = array<i64: 1, 64>}, {pipeline_mode = #tpu.pipeline_mode<synchronous>, transform_indices = @transform_11, window_bounds = array<i64: 64, 64>}, {pipeline_mode = #tpu.pipeline_mode<synchronous>, transform_indices = @transform_12, window_bounds = array<i64: 4, 64>}, {transform_indices = @transform_13, window_bounds = array<i64: 8, 8, 64>}, {transform_indices = @transform_14, window_bounds = array<i64: 1, 4, 64, 64>}]} {
    %c0 = arith.constant 0 : index
    %c0_0 = arith.constant 0 : index
    %c0_1 = arith.constant 0 : index
    %0 = vector.load %arg1[%c0, %c0_0, %c0_1] : memref<8x8x64xf32, #tpu.memory_space<vmem>>, vector<8x8x64xf32>
    %1 = vector.shape_cast %0 : vector<8x8x64xf32> to vector<64x64xf32>
    %c0_2 = arith.constant 0 : index
    %c0_3 = arith.constant 0 : index
    %c0_4 = arith.constant 0 : index
    %2 = vector.load %arg2[%c0_2, %c0_3, %c0_4] : memref<8x8x64xf32, #tpu.memory_space<vmem>>, vector<8x8x64xf32>
    %3 = vector.shape_cast %2 : vector<8x8x64xf32> to vector<64x64xf32>
    %c0_5 = arith.constant 0 : index
    %c0_6 = arith.constant 0 : index
    %c0_7 = arith.constant 0 : index
    %4 = vector.load %arg3[%c0_5, %c0_6, %c0_7] : memref<8x8x64xf32, #tpu.memory_space<vmem>>, vector<8x8x64xf32>
    %5 = vector.shape_cast %4 : vector<8x8x64xf32> to vector<64x64xf32>
    %6 = arith.truncf %1 : vector<64x64xf32> to vector<64x64xbf16>
    %c0_8 = arith.constant 0 : index
    %c0_9 = arith.constant 0 : index
    %7 = vector.load %arg4[%c0_8, %c0_9] : memref<64x64xbf16, #tpu.memory_space<vmem>>, vector<64x64xbf16>
    %cst = arith.constant dense<0.000000e+00> : vector<64x64xf32>
    %8 = tpu.matmul %6, %7, %cst {dimension_numbers = #tpu.dot_dimension_numbers<[1], [0], [0], [1], [0, 0, 1, 1], [], []>} : vector<64x64xbf16>, vector<64x64xbf16>, vector<64x64xf32> -> vector<64x64xf32>
    %c0_10 = arith.constant 0 : index
    %c0_11 = arith.constant 0 : index
    %9 = vector.load %arg5[%c0_10, %c0_11] : memref<1x64xf32, #tpu.memory_space<vmem>>, vector<1x64xf32>
    %10 = vector.broadcast %9 : vector<1x64xf32> to vector<64x64xf32>
    %11 = arith.addf %8, %10 : vector<64x64xf32>
    %12 = arith.truncf %3 : vector<64x64xf32> to vector<64x64xbf16>
    %c0_12 = arith.constant 0 : index
    %c0_13 = arith.constant 0 : index
    %13 = vector.load %arg6[%c0_12, %c0_13] : memref<64x64xbf16, #tpu.memory_space<vmem>>, vector<64x64xbf16>
    %cst_14 = arith.constant dense<0.000000e+00> : vector<64x64xf32>
    %14 = tpu.matmul %12, %13, %cst_14 {dimension_numbers = #tpu.dot_dimension_numbers<[1], [0], [0], [1], [0, 0, 1, 1], [], []>} : vector<64x64xbf16>, vector<64x64xbf16>, vector<64x64xf32> -> vector<64x64xf32>
    %c0_15 = arith.constant 0 : index
    %c0_16 = arith.constant 0 : index
    %15 = vector.load %arg7[%c0_15, %c0_16] : memref<1x64xf32, #tpu.memory_space<vmem>>, vector<1x64xf32>
    %16 = vector.broadcast %15 : vector<1x64xf32> to vector<64x64xf32>
    %17 = arith.addf %14, %16 : vector<64x64xf32>
    %18 = arith.truncf %5 : vector<64x64xf32> to vector<64x64xbf16>
    %c0_17 = arith.constant 0 : index
    %c0_18 = arith.constant 0 : index
    %19 = vector.load %arg8[%c0_17, %c0_18] : memref<64x64xbf16, #tpu.memory_space<vmem>>, vector<64x64xbf16>
    %cst_19 = arith.constant dense<0.000000e+00> : vector<64x64xf32>
    %20 = tpu.matmul %18, %19, %cst_19 {dimension_numbers = #tpu.dot_dimension_numbers<[1], [0], [0], [1], [0, 0, 1, 1], [], []>} : vector<64x64xbf16>, vector<64x64xbf16>, vector<64x64xf32> -> vector<64x64xf32>
    %c0_20 = arith.constant 0 : index
    %c0_21 = arith.constant 0 : index
    %21 = vector.load %arg9[%c0_20, %c0_21] : memref<1x64xf32, #tpu.memory_space<vmem>>, vector<1x64xf32>
    %22 = vector.broadcast %21 : vector<1x64xf32> to vector<64x64xf32>
    %23 = arith.addf %20, %22 : vector<64x64xf32>
    %24 = arith.truncf %11 : vector<64x64xf32> to vector<64x64xbf16>
    %25 = arith.truncf %17 : vector<64x64xf32> to vector<64x64xbf16>
    %26 = arith.truncf %23 : vector<64x64xf32> to vector<64x64xbf16>
    %c0_22 = arith.constant 0 : index
    %c0_23 = arith.constant 0 : index
    %27 = vector.load %arg12[%c0_22, %c0_23] : memref<64x64xf32, #tpu.memory_space<vmem>>, vector<64x64xf32>
    %c0_24 = arith.constant 0 : index
    %c0_25 = arith.constant 0 : index
    %28 = vector.load %arg13[%c0_24, %c0_25] : memref<4x64xf32, #tpu.memory_space<vmem>>, vector<4x64xf32>
    %cst_26 = arith.constant 0.000000e+00 : f32
    %29 = vector.broadcast %cst_26 : f32 to vector<64x64xf32>
    %30 = vector.extract_strided_slice %24 {offsets = [0, 0], sizes = [64, 16], strides = [1, 1]} : vector<64x64xbf16> to vector<64x16xbf16>
    %31 = vector.extract_strided_slice %25 {offsets = [0, 0], sizes = [64, 16], strides = [1, 1]} : vector<64x64xbf16> to vector<64x16xbf16>
    %cst_27 = arith.constant dense<0.000000e+00> : vector<64x64xf32>
    %32 = tpu.matmul %30, %31, %cst_27 {dimension_numbers = #tpu.dot_dimension_numbers<[1], [1], [0], [0], [0, 0, 1, 0], [], []>} : vector<64x16xbf16>, vector<64x16xbf16>, vector<64x64xf32> -> vector<64x64xf32>
    %33 = arith.addf %32, %27 : vector<64x64xf32>
    %cst_28 = arith.constant dense<0xFF800000> : vector<64xf32>
    %34 = vector.multi_reduction <maximumf>, %33, %cst_28 [1] : vector<64x64xf32> to vector<64xf32>
    %35 = vector.shape_cast %34 : vector<64xf32> to vector<64x1xf32>
    %36 = vector.broadcast %35 : vector<64x1xf32> to vector<64x64xf32>
    %37 = arith.subf %33, %36 : vector<64x64xf32>
    %38 = math.exp %37 : vector<64x64xf32>
    %cst_29 = arith.constant dense<0.000000e+00> : vector<64xf32>
    %39 = vector.multi_reduction <add>, %38, %cst_29 [1] : vector<64x64xf32> to vector<64xf32>
    %40 = vector.shape_cast %39 : vector<64xf32> to vector<64x1xf32>
    %41 = tpu.reciprocal %40 : vector<64x1xf32> -> vector<64x1xf32>
    %42 = vector.broadcast %41 : vector<64x1xf32> to vector<64x64xf32>
    %43 = arith.mulf %38, %42 : vector<64x64xf32>
    %44 = arith.truncf %43 : vector<64x64xf32> to vector<64x64xbf16>
    %cst_30 = arith.constant dense<0.000000e+00> : vector<64x64xf32>
    %45 = tpu.matmul %44, %26, %cst_30 {dimension_numbers = #tpu.dot_dimension_numbers<[1], [0], [0], [1], [0, 0, 1, 1], [], []>} : vector<64x64xbf16>, vector<64x64xbf16>, vector<64x64xf32> -> vector<64x64xf32>
    %46 = vector.extract_strided_slice %28 {offsets = [0, 0], sizes = [1, 64], strides = [1, 1]} : vector<4x64xf32> to vector<1x64xf32>
    %47 = vector.broadcast %46 : vector<1x64xf32> to vector<64x64xf32>
    %48 = arith.mulf %45, %47 : vector<64x64xf32>
    %49 = arith.addf %29, %48 : vector<64x64xf32>
    %c0_31 = arith.constant 0 : index
    %c0_32 = arith.constant 0 : index
    %c0_33 = arith.constant 0 : index
    %c0_34 = arith.constant 0 : index
    %50 = vector.load %arg15[%c0_31, %c0_32, %c0_33, %c0_34] : memref<1x4x64x64xf32, #tpu.memory_space<vmem>>, vector<1x1x64x64xf32>
    %51 = vector.shape_cast %50 : vector<1x1x64x64xf32> to vector<64x64xf32>
    %52 = vector.shape_cast %43 : vector<64x64xf32> to vector<1x1x64x64xf32>
    tpu.vector_store %arg15[%c0_31, %c0_32, %c0_33, %c0_34], %52 {strides = array<i32>} : memref<1x4x64x64xf32, #tpu.memory_space<vmem>>, vector<1x1x64x64xf32>,
    %53 = vector.extract_strided_slice %24 {offsets = [0, 16], sizes = [64, 16], strides = [1, 1]} : vector<64x64xbf16> to vector<64x16xbf16>
    %54 = vector.extract_strided_slice %25 {offsets = [0, 16], sizes = [64, 16], strides = [1, 1]} : vector<64x64xbf16> to vector<64x16xbf16>
    %cst_35 = arith.constant dense<0.000000e+00> : vector<64x64xf32>
    %55 = tpu.matmul %53, %54, %cst_35 {dimension_numbers = #tpu.dot_dimension_numbers<[1], [1], [0], [0], [0, 0, 1, 0], [], []>} : vector<64x16xbf16>, vector<64x16xbf16>, vector<64x64xf32> -> vector<64x64xf32>
    %56 = arith.addf %55, %27 : vector<64x64xf32>
    %cst_36 = arith.constant dense<0xFF800000> : vector<64xf32>
    %57 = vector.multi_reduction <maximumf>, %56, %cst_36 [1] : vector<64x64xf32> to vector<64xf32>
    %58 = vector.shape_cast %57 : vector<64xf32> to vector<64x1xf32>
    %59 = vector.broadcast %58 : vector<64x1xf32> to vector<64x64xf32>
    %60 = arith.subf %56, %59 : vector<64x64xf32>
    %61 = math.exp %60 : vector<64x64xf32>
    %cst_37 = arith.constant dense<0.000000e+00> : vector<64xf32>
    %62 = vector.multi_reduction <add>, %61, %cst_37 [1] : vector<64x64xf32> to vector<64xf32>
    %63 = vector.shape_cast %62 : vector<64xf32> to vector<64x1xf32>
    %64 = tpu.reciprocal %63 : vector<64x1xf32> -> vector<64x1xf32>
    %65 = vector.broadcast %64 : vector<64x1xf32> to vector<64x64xf32>
    %66 = arith.mulf %61, %65 : vector<64x64xf32>
    %67 = arith.truncf %66 : vector<64x64xf32> to vector<64x64xbf16>
    %cst_38 = arith.constant dense<0.000000e+00> : vector<64x64xf32>
    %68 = tpu.matmul %67, %26, %cst_38 {dimension_numbers = #tpu.dot_dimension_numbers<[1], [0], [0], [1], [0, 0, 1, 1], [], []>} : vector<64x64xbf16>, vector<64x64xbf16>, vector<64x64xf32> -> vector<64x64xf32>
    %69 = vector.extract_strided_slice %28 {offsets = [1, 0], sizes = [1, 64], strides = [1, 1]} : vector<4x64xf32> to vector<1x64xf32>
    %70 = vector.broadcast %69 : vector<1x64xf32> to vector<64x64xf32>
    %71 = arith.mulf %68, %70 : vector<64x64xf32>
    %72 = arith.addf %49, %71 : vector<64x64xf32>
    %c0_39 = arith.constant 0 : index
    %c1 = arith.constant 1 : index
    %c0_40 = arith.constant 0 : index
    %c0_41 = arith.constant 0 : index
    %73 = vector.load %arg15[%c0_39, %c1, %c0_40, %c0_41] : memref<1x4x64x64xf32, #tpu.memory_space<vmem>>, vector<1x1x64x64xf32>
    %74 = vector.shape_cast %73 : vector<1x1x64x64xf32> to vector<64x64xf32>
    %75 = vector.shape_cast %66 : vector<64x64xf32> to vector<1x1x64x64xf32>
    tpu.vector_store %arg15[%c0_39, %c1, %c0_40, %c0_41], %75 {strides = array<i32>} : memref<1x4x64x64xf32, #tpu.memory_space<vmem>>, vector<1x1x64x64xf32>,
    %76 = vector.extract_strided_slice %24 {offsets = [0, 32], sizes = [64, 16], strides = [1, 1]} : vector<64x64xbf16> to vector<64x16xbf16>
    %77 = vector.extract_strided_slice %25 {offsets = [0, 32], sizes = [64, 16], strides = [1, 1]} : vector<64x64xbf16> to vector<64x16xbf16>
    %cst_42 = arith.constant dense<0.000000e+00> : vector<64x64xf32>
    %78 = tpu.matmul %76, %77, %cst_42 {dimension_numbers = #tpu.dot_dimension_numbers<[1], [1], [0], [0], [0, 0, 1, 0], [], []>} : vector<64x16xbf16>, vector<64x16xbf16>, vector<64x64xf32> -> vector<64x64xf32>
    %79 = arith.addf %78, %27 : vector<64x64xf32>
    %cst_43 = arith.constant dense<0xFF800000> : vector<64xf32>
    %80 = vector.multi_reduction <maximumf>, %79, %cst_43 [1] : vector<64x64xf32> to vector<64xf32>
    %81 = vector.shape_cast %80 : vector<64xf32> to vector<64x1xf32>
    %82 = vector.broadcast %81 : vector<64x1xf32> to vector<64x64xf32>
    %83 = arith.subf %79, %82 : vector<64x64xf32>
    %84 = math.exp %83 : vector<64x64xf32>
    %cst_44 = arith.constant dense<0.000000e+00> : vector<64xf32>
    %85 = vector.multi_reduction <add>, %84, %cst_44 [1] : vector<64x64xf32> to vector<64xf32>
    %86 = vector.shape_cast %85 : vector<64xf32> to vector<64x1xf32>
    %87 = tpu.reciprocal %86 : vector<64x1xf32> -> vector<64x1xf32>
    %88 = vector.broadcast %87 : vector<64x1xf32> to vector<64x64xf32>
    %89 = arith.mulf %84, %88 : vector<64x64xf32>
    %90 = arith.truncf %89 : vector<64x64xf32> to vector<64x64xbf16>
    %cst_45 = arith.constant dense<0.000000e+00> : vector<64x64xf32>
    %91 = tpu.matmul %90, %26, %cst_45 {dimension_numbers = #tpu.dot_dimension_numbers<[1], [0], [0], [1], [0, 0, 1, 1], [], []>} : vector<64x64xbf16>, vector<64x64xbf16>, vector<64x64xf32> -> vector<64x64xf32>
    %92 = vector.extract_strided_slice %28 {offsets = [2, 0], sizes = [1, 64], strides = [1, 1]} : vector<4x64xf32> to vector<1x64xf32>
    %93 = vector.broadcast %92 : vector<1x64xf32> to vector<64x64xf32>
    %94 = arith.mulf %91, %93 : vector<64x64xf32>
    %95 = arith.addf %72, %94 : vector<64x64xf32>
    %c0_46 = arith.constant 0 : index
    %c2 = arith.constant 2 : index
    %c0_47 = arith.constant 0 : index
    %c0_48 = arith.constant 0 : index
    %96 = vector.load %arg15[%c0_46, %c2, %c0_47, %c0_48] : memref<1x4x64x64xf32, #tpu.memory_space<vmem>>, vector<1x1x64x64xf32>
    %97 = vector.shape_cast %96 : vector<1x1x64x64xf32> to vector<64x64xf32>
    %98 = vector.shape_cast %89 : vector<64x64xf32> to vector<1x1x64x64xf32>
    tpu.vector_store %arg15[%c0_46, %c2, %c0_47, %c0_48], %98 {strides = array<i32>} : memref<1x4x64x64xf32, #tpu.memory_space<vmem>>, vector<1x1x64x64xf32>,
    %99 = vector.extract_strided_slice %24 {offsets = [0, 48], sizes = [64, 16], strides = [1, 1]} : vector<64x64xbf16> to vector<64x16xbf16>
    %100 = vector.extract_strided_slice %25 {offsets = [0, 48], sizes = [64, 16], strides = [1, 1]} : vector<64x64xbf16> to vector<64x16xbf16>
    %cst_49 = arith.constant dense<0.000000e+00> : vector<64x64xf32>
    %101 = tpu.matmul %99, %100, %cst_49 {dimension_numbers = #tpu.dot_dimension_numbers<[1], [1], [0], [0], [0, 0, 1, 0], [], []>} : vector<64x16xbf16>, vector<64x16xbf16>, vector<64x64xf32> -> vector<64x64xf32>
    %102 = arith.addf %101, %27 : vector<64x64xf32>
    %cst_50 = arith.constant dense<0xFF800000> : vector<64xf32>
    %103 = vector.multi_reduction <maximumf>, %102, %cst_50 [1] : vector<64x64xf32> to vector<64xf32>
    %104 = vector.shape_cast %103 : vector<64xf32> to vector<64x1xf32>
    %105 = vector.broadcast %104 : vector<64x1xf32> to vector<64x64xf32>
    %106 = arith.subf %102, %105 : vector<64x64xf32>
    %107 = math.exp %106 : vector<64x64xf32>
    %cst_51 = arith.constant dense<0.000000e+00> : vector<64xf32>
    %108 = vector.multi_reduction <add>, %107, %cst_51 [1] : vector<64x64xf32> to vector<64xf32>
    %109 = vector.shape_cast %108 : vector<64xf32> to vector<64x1xf32>
    %110 = tpu.reciprocal %109 : vector<64x1xf32> -> vector<64x1xf32>
    %111 = vector.broadcast %110 : vector<64x1xf32> to vector<64x64xf32>
    %112 = arith.mulf %107, %111 : vector<64x64xf32>
    %113 = arith.truncf %112 : vector<64x64xf32> to vector<64x64xbf16>
    %cst_52 = arith.constant dense<0.000000e+00> : vector<64x64xf32>
    %114 = tpu.matmul %113, %26, %cst_52 {dimension_numbers = #tpu.dot_dimension_numbers<[1], [0], [0], [1], [0, 0, 1, 1], [], []>} : vector<64x64xbf16>, vector<64x64xbf16>, vector<64x64xf32> -> vector<64x64xf32>
    %115 = vector.extract_strided_slice %28 {offsets = [3, 0], sizes = [1, 64], strides = [1, 1]} : vector<4x64xf32> to vector<1x64xf32>
    %116 = vector.broadcast %115 : vector<1x64xf32> to vector<64x64xf32>
    %117 = arith.mulf %114, %116 : vector<64x64xf32>
    %118 = arith.addf %95, %117 : vector<64x64xf32>
    %c0_53 = arith.constant 0 : index
    %c3 = arith.constant 3 : index
    %c0_54 = arith.constant 0 : index
    %c0_55 = arith.constant 0 : index
    %119 = vector.load %arg15[%c0_53, %c3, %c0_54, %c0_55] : memref<1x4x64x64xf32, #tpu.memory_space<vmem>>, vector<1x1x64x64xf32>
    %120 = vector.shape_cast %119 : vector<1x1x64x64xf32> to vector<64x64xf32>
    %121 = vector.shape_cast %112 : vector<64x64xf32> to vector<1x1x64x64xf32>
    tpu.vector_store %arg15[%c0_53, %c3, %c0_54, %c0_55], %121 {strides = array<i32>} : memref<1x4x64x64xf32, #tpu.memory_space<vmem>>, vector<1x1x64x64xf32>,
    %122 = arith.addf %118, %1 : vector<64x64xf32>
    %cst_56 = arith.constant dense<0.000000e+00> : vector<64xf32>
    %123 = vector.multi_reduction <add>, %122, %cst_56 [1] : vector<64x64xf32> to vector<64xf32>
    %124 = vector.shape_cast %123 : vector<64xf32> to vector<64x1xf32>
    %cst_57 = arith.constant 6.400000e+01 : f32
    %125 = vector.broadcast %cst_57 : f32 to vector<64x1xf32>
    %126 = arith.divf %124, %125 : vector<64x1xf32>
    %127 = vector.broadcast %126 : vector<64x1xf32> to vector<64x64xf32>
    %128 = arith.subf %122, %127 : vector<64x64xf32>
    %129 = arith.mulf %128, %128 : vector<64x64xf32>
    %cst_58 = arith.constant dense<0.000000e+00> : vector<64xf32>
    %130 = vector.multi_reduction <add>, %129, %cst_58 [1] : vector<64x64xf32> to vector<64xf32>
    %131 = vector.shape_cast %130 : vector<64xf32> to vector<64x1xf32>
    %cst_59 = arith.constant 6.400000e+01 : f32
    %132 = vector.broadcast %cst_59 : f32 to vector<64x1xf32>
    %133 = arith.divf %131, %132 : vector<64x1xf32>
    %cst_60 = arith.constant 9.99999974E-6 : f32
    %134 = vector.broadcast %cst_60 : f32 to vector<64x1xf32>
    %135 = arith.addf %133, %134 : vector<64x1xf32>
    %136 = math.rsqrt %135 : vector<64x1xf32>
    %137 = vector.broadcast %136 : vector<64x1xf32> to vector<64x64xf32>
    %138 = arith.mulf %128, %137 : vector<64x64xf32>
    %c0_61 = arith.constant 0 : index
    %c0_62 = arith.constant 0 : index
    %139 = vector.load %arg10[%c0_61, %c0_62] : memref<1x64xf32, #tpu.memory_space<vmem>>, vector<1x64xf32>
    %140 = vector.broadcast %139 : vector<1x64xf32> to vector<64x64xf32>
    %141 = arith.mulf %138, %140 : vector<64x64xf32>
    %c0_63 = arith.constant 0 : index
    %c0_64 = arith.constant 0 : index
    %142 = vector.load %arg11[%c0_63, %c0_64] : memref<1x64xf32, #tpu.memory_space<vmem>>, vector<1x64xf32>
    %143 = vector.broadcast %142 : vector<1x64xf32> to vector<64x64xf32>
    %144 = arith.addf %141, %143 : vector<64x64xf32>
    %145 = vector.shape_cast %144 : vector<64x64xf32> to vector<8x8x64xf32>
    %c0_65 = arith.constant 0 : index
    %c0_66 = arith.constant 0 : index
    %c0_67 = arith.constant 0 : index
    %146 = vector.load %arg14[%c0_65, %c0_66, %c0_67] : memref<8x8x64xf32, #tpu.memory_space<vmem>>, vector<8x8x64xf32>
    tpu.vector_store %arg14[%c0_65, %c0_66, %c0_67], %145 {strides = array<i32>} : memref<8x8x64xf32, #tpu.memory_space<vmem>>, vector<8x8x64xf32>,
    return
  }
  func.func @transform_0(%arg0: i32) -> (i32, i32, i32) {
    %c0_i32 = arith.constant 0 : i32
    %c0_i32_0 = arith.constant 0 : i32
    %c0_i32_1 = arith.constant 0 : i32
    return %arg0, %c0_i32, %c0_i32_0 : i32, i32, i32
  }
  func.func @transform_1(%arg0: i32) -> (i32, i32, i32) {
    %c0_i32 = arith.constant 0 : i32
    %c0_i32_0 = arith.constant 0 : i32
    %c0_i32_1 = arith.constant 0 : i32
    return %arg0, %c0_i32, %c0_i32_0 : i32, i32, i32
  }
  func.func @transform_2(%arg0: i32) -> (i32, i32, i32) {
    %c0_i32 = arith.constant 0 : i32
    %c0_i32_0 = arith.constant 0 : i32
    %c0_i32_1 = arith.constant 0 : i32
    return %arg0, %c0_i32, %c0_i32_0 : i32, i32, i32
  }
  func.func @transform_3(%arg0: i32) -> (i32, i32) {
    %c0_i32 = arith.constant 0 : i32
    %c0_i32_0 = arith.constant 0 : i32
    %c0_i32_1 = arith.constant 0 : i32
    return %c0_i32, %c0_i32_0 : i32, i32
  }
  func.func @transform_4(%arg0: i32) -> (i32, i32) {
    %c0_i32 = arith.constant 0 : i32
    %c0_i32_0 = arith.constant 0 : i32
    %c0_i32_1 = arith.constant 0 : i32
    return %c0_i32, %c0_i32_0 : i32, i32
  }
  func.func @transform_5(%arg0: i32) -> (i32, i32) {
    %c0_i32 = arith.constant 0 : i32
    %c0_i32_0 = arith.constant 0 : i32
    %c0_i32_1 = arith.constant 0 : i32
    return %c0_i32, %c0_i32_0 : i32, i32
  }
  func.func @transform_6(%arg0: i32) -> (i32, i32) {
    %c0_i32 = arith.constant 0 : i32
    %c0_i32_0 = arith.constant 0 : i32
    %c0_i32_1 = arith.constant 0 : i32
    return %c0_i32, %c0_i32_0 : i32, i32
  }
  func.func @transform_7(%arg0: i32) -> (i32, i32) {
    %c0_i32 = arith.constant 0 : i32
    %c0_i32_0 = arith.constant 0 : i32
    %c0_i32_1 = arith.constant 0 : i32
    return %c0_i32, %c0_i32_0 : i32, i32
  }
  func.func @transform_8(%arg0: i32) -> (i32, i32) {
    %c0_i32 = arith.constant 0 : i32
    %c0_i32_0 = arith.constant 0 : i32
    %c0_i32_1 = arith.constant 0 : i32
    return %c0_i32, %c0_i32_0 : i32, i32
  }
  func.func @transform_9(%arg0: i32) -> (i32, i32) {
    %c0_i32 = arith.constant 0 : i32
    %c0_i32_0 = arith.constant 0 : i32
    %c0_i32_1 = arith.constant 0 : i32
    return %c0_i32, %c0_i32_0 : i32, i32
  }
  func.func @transform_10(%arg0: i32) -> (i32, i32) {
    %c0_i32 = arith.constant 0 : i32
    %c0_i32_0 = arith.constant 0 : i32
    %c0_i32_1 = arith.constant 0 : i32
    return %c0_i32, %c0_i32_0 : i32, i32
  }
  func.func @transform_11(%arg0: i32) -> (i32, i32) {
    %c0_i32 = arith.constant 0 : i32
    %c0_i32_0 = arith.constant 0 : i32
    %c0_i32_1 = arith.constant 0 : i32
    return %c0_i32, %c0_i32_0 : i32, i32
  }
  func.func @transform_12(%arg0: i32) -> (i32, i32) {
    %c0_i32 = arith.constant 0 : i32
    %c0_i32_0 = arith.constant 0 : i32
    %c0_i32_1 = arith.constant 0 : i32
    return %c0_i32, %c0_i32_0 : i32, i32
  }
  func.func @transform_13(%arg0: i32) -> (i32, i32, i32) {
    %c0_i32 = arith.constant 0 : i32
    %c0_i32_0 = arith.constant 0 : i32
    %c0_i32_1 = arith.constant 0 : i32
    return %arg0, %c0_i32, %c0_i32_0 : i32, i32, i32
  }
  func.func @transform_14(%arg0: i32) -> (i32, i32, i32, i32) {
    %c0_i32 = arith.constant 0 : i32
    %c0_i32_0 = arith.constant 0 : i32
    %c0_i32_1 = arith.constant 0 : i32
    %c0_i32_2 = arith.constant 0 : i32
    return %arg0, %c0_i32, %c0_i32_0, %c0_i32_1 : i32, i32, i32, i32
  }
}

</mosaic_0001>

<bundles_post_ra>
// kernel: temporal_cross_attention.1
= control target key start
LH: loop header
LB: loop body
LE: loop exit
PB: predicated region body
PF: predicated region fallthrough
CT: control target
= control target key end

     0   :  { %s5016_s0 = inlined_call_operand.hbm [shape: f32[32,8,64], index: 0, kind: input, shape index: {}]   ;;  %s5017_s1 = inlined_call_operand.hbm [shape: f32[32,8,64], index: 1, kind: input, shape index: {}]   ;;  %s5018_s2 = inlined_call_operand.hbm [shape: f32[32,8,64], index: 2, kind: input, shape index: {}]   ;;  %s5019_s3 = inlined_call_operand.vmem [shape: bf16[64,64], index: 3, kind: input, shape index: {}]   ;;  %s5020_s4 = inlined_call_operand.vmem [shape: f32[1,64], index: 4, kind: input, shape index: {}]   ;;  %s5021_s5 = inlined_call_operand.vmem [shape: bf16[64,64], index: 5, kind: input, shape index: {}]   ;;  %s5022_s6 = inlined_call_operand.hbm [shape: f32[1,64], index: 6, kind: input, shape index: {}]   ;;  %s5023_s7 = inlined_call_operand.vmem [shape: bf16[64,64], index: 7, kind: input, shape index: {}]   ;;  %s5024_s8 = inlined_call_operand.hbm [shape: f32[1,64], index: 8, kind: input, shape index: {}]   ;;  %s5025_s9 = inlined_call_operand.hbm [shape: f32[1,64], index: 9, kind: input, shape index: {}]   ;;  %s5026_s10 = inlined_call_operand.hbm [shape: f32[1,64], index: 10, kind: input, shape index: {}]   ;;  %s5027_s11 = inlined_call_operand.vmem [shape: f32[64,64], index: 11, kind: input, shape index: {}]   ;;  %s5028_s12 = inlined_call_operand.vmem [shape: f32[4,64], index: 12, kind: input, shape index: {}]   ;;  %s5029_s13 = inlined_call_operand.hbm [shape: f32[32,8,64], index: 13, kind: output, shape index: {0}]   ;;  %s5030_s14 = inlined_call_operand.vmem [shape: f32[4,4,64,64], index: 14, kind: output, shape index: {1}]  }
   0x1   :  { %5047 = sst [smem:[#allocation26_spill]] %s5017_s1 }
   0x2   :  { %5048 = sst [smem:[#allocation27_spill]] %s5022_s6 }
   0x3   :  { %5049 = sst [smem:[#allocation28_spill]] %s5023_s7 }
   0x4   :  { %5050 = sst [smem:[#allocation29_spill]] %s5025_s9 }
   0x5   :  { %5051 = sst [smem:[#allocation30_spill]] %s5027_s11 }
   0x6   :  { %5052 = sst [smem:[#allocation31_spill]] %s5028_s12 }
   0x7   :  { %5053 = sst [smem:[#allocation32_spill]] %s5029_s13 }
   0x8   :  { %5054 = sst [smem:[#allocation33_spill]] %s5030_s14 }
   0x9   :  { %20 = vsyncpa [#allocation3], 0 }
   0xa   :  { %22 = vsyncpa [#allocation3 + $0x1], 0 }
   0xb   :  { %23 = vsyncpa [#allocation6], 0 }
   0xc   :  { %25 = vsyncpa [#allocation6 + $0x1], 0 }
   0xd   :  { %26 = vsyncpa [#allocation9], 0 }
   0xe   :  { %27 = vsyncpa [#allocation12], 0 }
   0xf   :  { %28 = vsyncpa [#allocation4], 0 }
  0x10   :  { %30 = vsyncpa [#allocation4 + $0x1], 0  ;;  %s3538_s29 = smov 0   ;;  %s3540_s30 = smov 0  }
  0x11   :  { %s3542_s15 = smov 0   ;;  %s3544_s16 = smov 0  }
  0x12 LB: > { %5055 = sst [smem:[#allocation20_spill]] %s3437_s29  ;;  %s3559_s17 = sadd.s32 4294967295, %s3449_s16   ;;  %s3449_s16 = sphi %s3544_s16, %s5128_s16   ;;  %s3445_s15 = sphi %s3542_s15, %s5132_s15   ;;  %s3441_s30 = sphi %s3540_s30, %s5131_s30   ;;  %s3437_s29 = sphi %s3538_s29, %s5130_s29  }
  0x13   : > { %5056 = sst [smem:[#allocation21_spill]] %s3449_s16  ;;  %s2720_s18 = sadd.s32 4294967294, %s3449_s16  }
  0x14   : > { %p56_p0 = scmp.ne.s32.totalorder %s3441_s30, %s3437_s29  ;;  %p5040_p1 = scmp.eq.s32.totalorder %s3559_s17, 0 }
  0x15   : > { %p342_p2 = scmp.eq.s32.totalorder %s3559_s17, 3  ;;  %p348_p3 = scmp.eq.s32.totalorder %s2720_s18, 3 }
  0x16   : > { %p3568_p4 = por %p5040_p1, %p56_p0  ;;  %p2721_p5 = scmp.ge.s32.totalorder %s3449_s16, 1 }
  0x17   : > { %p3573_p6 = por %p348_p3, %p56_p0  ;;  %p381_p7 = scmp.lt.s32.totalorder %s3449_s16, 5 }
  0x18   : > { %s5060_s6 = sld [smem:[#allocation27_spill]]  ;;  %s3451_s25 = smov [#allocation8]  }
  0x19   : > { %s5058_s20 = scalar_select %p3573_p6, 1, 0 }
  0x1a   : > { %p3581_p8 = pnand %p2721_p5, %p381_p7  ;;  %s404_s26 = sshll.u32 %s3451_s25, 4  ;;  %s405_s26 = int_to_ptr.vmem [resolvable:$true] %s404_s26 }
  0x1b   : > { %5059 = sst [smem:[#allocation22_spill]] %s5058_s20  ;;  %s3452_s22 = smov [#allocation11]  }
  0x1c   : > { %p2921_p9 = pneg %p3581_p8  ;;  %s5062_s9 = sld [smem:[#allocation29_spill]] }
  0x1d   : > { %s431_s25 = sshll.u32 %s3452_s22, 4  ;;  %s3601_s27 = sadd.s32 1, %s3449_s16   ;;  %s432_s25 = int_to_ptr.vmem [resolvable:$true] %s431_s25 }
  0x1e   : > { %s402_s23 = sshll.u32 %s5060_s6, 4  ;;  %p3592_p10 = pnand %p2921_p9, %p5040_p1  ;;  %s403_s23 = int_to_ptr.hbm [resolvable:$true] %s402_s23 }
  0x1f   : > { %5064 = sst [smem:[#allocation23_spill]] %s3601_s27  ;;  %s43_s28 = sadd.s32 1, %s3445_s15 }
  0x20   : > { %2924 = dma.hbm_to_vmem [thread:$0]  (!%p3592_p10), %s403_s23, 16, %s405_s26, [#allocation9]  }
  0x21   : > { %s40_s6 = ssub.s32 %s3449_s16, %s3601_s27  ;;  %p50_p11 = scmp.ne.s32.totalorder %s3445_s15, %s3441_s30 }
  0x22   : > { %s429_s18 = sshll.u32 %s5062_s9, 4  ;;  %p41_p12 = scmp.eq.s32.totalorder %s40_s6, 0  ;;  %s430_s18 = int_to_ptr.hbm [resolvable:$true] %s429_s18 }
  0x23   : > { %2930 = dma.hbm_to_vmem [thread:$0]  (!%p3592_p10), %s430_s18, 16, %s432_s25, [#allocation12]  }
  0x24   : > { %p51_p13 = scmp.eq.s32.totalorder %s3449_s16, 0  ;;  %p3611_p0 = por %p342_p2, %p50_p11 }
  0x25   : > { %p2952_p3 = scmp.lt.s32.totalorder %s3449_s16, 4  ;;  %s5037_s23 = sand.u32 1, %s3445_s15  }
  0x26   : > { %s5065_s9 = scalar_select %p3611_p0, 1, 0 }
  0x27   : > { %s3617_s22 = scalar_select %p41_p12, %s3445_s15, %s43_s28  }
  0x28   : > { %5066 = sst [smem:[#allocation24_spill]] %s5065_s9  ;;  %p52_p5 = por %p51_p13, %p50_p11 }
  0x29   : > { %5067 = sst [smem:[#allocation25_spill]] %s3617_s22  ;;  %s3622_s26 = sshll.u32 %s5037_s23, 6 }
  0x2a   : > { %s3625_s18 = sshll.u32 %s3449_s16, 6  ;;  %p3627_p7 = pnand %p2952_p3, %p52_p5 }
  0x2b   : > { %s482_s25 = sand.u32 1, %s3449_s16   ;;  %s5069_s1 = sld [smem:[#allocation26_spill]] }
  0x2c   : > { %s486_s29 = scalar_lea.vmem [#allocation5], %s3622_s26  ;;  %s3637_s23 = scalar_lea.sflag [#allocation6], %s482_s25 }
  0x2d   : > { %s494_s9 = sshll.u32 %s486_s29, 4  ;;  %p3225_p9 = pneg %p3627_p7  ;;  %s495_s9 = int_to_ptr.vmem [resolvable:$true] %s494_s9 }
  0x31   : > { %s491_s28 = scalar_lea.hbm %s5069_s1, %s3625_s18  ;;  %s3228_s27 = scalar_lea.hbm %s5069_s1, 256 }
  0x32   : > { %s492_s22 = sshll.u32 %s491_s28, 4  ;;  %s493_s22 = int_to_ptr.hbm [resolvable:$true] %s492_s22 }
  0x33   : > { %s3221_s13 = sshra.s32 %s493_s22, 4  ;;  %s3222_s13 = int_to_ptr.hbm [resolvable:$true] %s3221_s13 }
  0x34   : > { %s3223_s12 = scalar_lea.hbm %s3222_s13, 64  ;;  %p3229_p13 = scmp.lt.s32.totalorder %s3222_s13, %s5069_s1 }
  0x35   : > { %p3224_p2 = scmp.ne.s32.totalorder %s3222_s13, %s3223_s12  ;;  %p3230_p3 = scmp.lt.s32.totalorder %s3228_s27, %s3223_s12 }
  0x37   : > { %p3226_p11 = pnand %p3225_p9, %p3224_p2  ;;  %p3231_p5 = por %p3230_p3, %p3229_p13 }
  0x39   : > { %p3227_p12 = pneg %p3226_p11 }
  0x3b   : > { %p3232_p1 = pnand %p3231_p5, %p3227_p12 }
  0x3d   : > { %3235 = shalt.err (!%p3232_p1)
}
  0x3e   : > { %s5043_s25 = smov 128   ;;  %s5045_s14 = smov 8  }
  0x3f   : > { %2940 = dma.hbm_to_vmem [thread:$0]  (!%p3627_p7), %s493_s22, 1024, %s495_s9, %s3637_s23, %s5043_s25, %s5043_s25, %s5045_s14  }
  0x40   : > { %s417_s12 = sshll.u32 %s5024_s8, 4  ;;  %s3455_s13 = smov [#allocation10]   ;;  %s418_s12 = int_to_ptr.hbm [resolvable:$true] %s417_s12 }
  0x41   : > { %s419_s27 = sshll.u32 %s3455_s13, 4  ;;  %s441_s1 = sshll.u32 %s5026_s10, 4  ;;  %s420_s27 = int_to_ptr.vmem [resolvable:$true] %s419_s27  ;;  %s442_s1 = int_to_ptr.hbm [resolvable:$true] %s441_s1 }
  0x42   : > { %2927 = dma.hbm_to_vmem [thread:$0]  (!%p3592_p10), %s418_s12, 16, %s420_s27, [#allocation9]  }
  0x43   : > { %s3456_s7 = smov [#allocation13]   ;;  %s469_s16 = scalar_lea.hbm %s5016_s0, %s3625_s18 }
  0x44   : > { %s443_s11 = sshll.u32 %s3456_s7, 4  ;;  %s464_s20 = scalar_lea.vmem [#allocation2], %s3622_s26  ;;  %s444_s11 = int_to_ptr.vmem [resolvable:$true] %s443_s11 }
  0x45   : > { %2933 = dma.hbm_to_vmem [thread:$0]  (!%p3592_p10), %s442_s1, 16, %s444_s11, [#allocation12]  }
  0x46   : > { %s472_s13 = sshll.u32 %s464_s20, 4  ;;  %s470_s25 = sshll.u32 %s469_s16, 4  ;;  %s473_s13 = int_to_ptr.vmem [resolvable:$true] %s472_s13  ;;  %s471_s25 = int_to_ptr.hbm [resolvable:$true] %s470_s25 }
  0x47   : > { %s5070_s28 = sand.u32 1, %s3445_s15   ;;  %s3311_s14 = sshra.s32 %s471_s25, 4  ;;  %s3312_s14 = int_to_ptr.hbm [resolvable:$true] %s3311_s14 }
  0x48   : > { %s461_s29 = scalar_lea.sflag [#allocation3], %s5070_s28  ;;  %s3313_s12 = scalar_lea.hbm %s3312_s14, 64 }
  0x49   : > { %p3314_p1 = scmp.ne.s32.totalorder %s3312_s14, %s3313_s12  ;;  %s3318_s11 = scalar_lea.hbm %s5016_s0, 256 }
  0x4a   : > { %p3319_p10 = scmp.lt.s32.totalorder %s3312_s14, %s5016_s0  ;;  %p3320_p12 = scmp.lt.s32.totalorder %s3318_s11, %s3313_s12 }
  0x4b   : > { %p3316_p2 = pnand %p3314_p1, %p3225_p9 }
  0x4c   : > { %p3321_p13 = por %p3320_p12, %p3319_p10 }
  0x4d   : > { %p3317_p11 = pneg %p3316_p2 }
  0x4f   : > { %p3322_p3 = pnand %p3321_p13, %p3317_p11 }
  0x51   : > { %3325 = shalt.err (!%p3322_p3)
}
  0x52   : > { %s5071_s9 = smov 8   ;;  %s5072_s22 = smov 128  }
  0x53   : > { %2937 = dma.hbm_to_vmem [thread:$0]  (!%p3627_p7), %s471_s25, 1024, %s473_s13, %s461_s29, %s5072_s22, %s5072_s22, %s5071_s9  }
  0x54   : > { %s513_s28 = scalar_lea.hbm %s5018_s2, %s3625_s18  ;;  %s508_s1 = scalar_lea.vmem [#allocation7], %s3622_s26 }
  0x55   : > { %s516_s7 = sshll.u32 %s508_s1, 4  ;;  %s514_s14 = sshll.u32 %s513_s28, 4  ;;  %s517_s7 = int_to_ptr.vmem [resolvable:$true] %s516_s7  ;;  %s515_s14 = int_to_ptr.hbm [resolvable:$true] %s514_s14 }
  0x56   : > { %s3341_s12 = sshra.s32 %s515_s14, 4  ;;  %s3348_s25 = scalar_lea.hbm %s5018_s2, 256  ;;  %s3342_s12 = int_to_ptr.hbm [resolvable:$true] %s3341_s12 }
  0x57   : > { %s3343_s11 = scalar_lea.hbm %s3342_s12, 64  ;;  %p3349_p11 = scmp.lt.s32.totalorder %s3342_s12, %s5018_s2 }
  0x58   : > { %p3344_p5 = scmp.ne.s32.totalorder %s3342_s12, %s3343_s11  ;;  %p3350_p10 = scmp.lt.s32.totalorder %s3348_s25, %s3343_s11 }
  0x5a   : > { %p3346_p1 = pnand %p3344_p5, %p3225_p9  ;;  %p3351_p12 = por %p3350_p10, %p3349_p11 }
  0x5c   : > { %p3347_p2 = pneg %p3346_p1 }
  0x5e   : > { %p3352_p13 = pnand %p3351_p12, %p3347_p2 }
  0x60   : > { %3355 = shalt.err (!%p3352_p13)
}
  0x61   : > { %2943 = dma.hbm_to_vmem [thread:$0]  (!%p3627_p7), %s515_s14, 1024, %s517_s7, %s3637_s23, %s5072_s22, %s5072_s22, %s5071_s9  }
  0x62   : > { %528 = sbr.rel (%p3581_p8) target bundleno = 1472 (0x5c0), region = 72  ;;  %s3710_s26 = sand.u32 (!%p3581_p8), 1, %s3441_s30  }
  0x63   : > { %s3713_s18 = sshll.u32 (!%p3581_p8), %s3710_s26, 6  ;;  %s531_s16 = scalar_lea.sflag (!%p3581_p8), [#allocation3], %s3710_s26 }
  0x64   : > { %s3717_s20 = scalar_lea.vmem (!%p3581_p8), [#allocation2], %s3713_s18 }
  0x67   : > { %3416 = dma.done.wait (%p3568_p4), %s531_s16, 1024  }
  0x68   : > { %3418 = vsyncadd (%p3568_p4), %s531_s16, 4294966272  ;;  %s540_s24 = sand.u32 1, %s3559_s17   ;;  %s3725_s6 = scalar_lea.vmem [#allocation5], %s3713_s18 }
  0x69   : > { %s541_s23 = scalar_lea.sflag [#allocation6], %s540_s24 }
  0x6a   : > { %3420 = dma.done.wait (%p3568_p4), %s541_s23, 2048  }
  0x6b   : > { %3422 = vsyncadd (%p3568_p4), %s541_s23, 4294965248  ;;  %s3732_s9 = scalar_lea.vmem [#allocation7], %s3713_s18  ;;  %p5073_p8 = scmp.eq.s32.totalorder %s3559_s17, 0 }
  0x6d   : > { %3424 = dma.done.wait (%p5073_p8), [#allocation9], 32   ;;  %p5074_p7 = pmov %p5073_p8 }
  0x6f   : > { %3426 = vsyncadd (%p5074_p7), [#allocation9], 4294967264  ;;  %p5075_p9 = pmov %p5074_p7 }
  0x70   : > { %p5076_p3 = pmov %p5074_p7 }
  0x71   : > { %3428 = dma.done.wait (%p5075_p9), [#allocation12], 32  }
  0x72   : > { %3430 = vsyncadd (%p5076_p3), [#allocation12], 4294967264  ;;  %v2875_v0 = vld [vmem:[%s5019_s3 + $0x18] sm:$0xff]  ;;  %v2874_v2 = vld [vmem:[%s5019_s3 + $0x10] sm:$0xff]  ;;  %vm709_vm0 = vcmask 523264   ;;  %vm982_vm1 = vcmask 130048  }
  0x73   : > { %v2879_v1 = vld [vmem:[%s5021_s5 + $0x18] sm:$0xff]  ;;  %726 = vmatpush.bf16.msra.mxu0 %v2875_v0  ;;  %v2878_v3 = vld [vmem:[%s5021_s5 + $0x10] sm:$0xff]  ;;  %2885 = vmatpush.bf16.msra.mxu3 %v2875_v0  ;;  %v2873_v4 = vld [vmem:[%s5019_s3 + $0x8] sm:$0xff]  ;;  %s3458_s19 = smov 80   ;;  %s3459_s1 = smov 96  }
  0x74   : > { %2889 = vmatpush.bf16.msra.mxu1 %v2879_v1  ;;  %v2877_v5 = vld [vmem:[%s5021_s5 + $0x8] sm:$0xff]  ;;  %v2872_v6 = vld [vmem:[%s5019_s3] sm:$0xff]  ;;  %v647_v12 = vld [vmem:[%s3717_s20 + $0x10] sm:$0xff]  ;;  %s5077_s12 = sld [smem:[#allocation30_spill]]  ;;  %p639_p4 = scmp.lt.s32.totalorder %s3559_s17, 3 }
  0x75   : > { %v2876_v7 = vld [vmem:[%s5021_s5] sm:$0xff]  ;;  %v646_v9 = vld [vmem:[%s3717_s20 + $0x8] sm:$0xff]  ;;  %v648_v13 = vld [vmem:[%s3717_s20 + $0x18] sm:$0xff]  ;;  %s5078_s7 = sld [smem:[#allocation28_spill]]  ;;  %s2518_s16 = scalar_lea.sflag [#allocation4], %s3710_s26 }
  0x76   : > { %v645_v8 = vld [vmem:[%s3717_s20] sm:$0xff]  ;;  %v658_v11 = vld [vmem:[%s3725_s6 + $0x28] sm:$0xff]  ;;  %v670_v16 = vpack.c.bf16 %v648_v13, %v647_v12  ;;  %v659_v19 = vld [vmem:[%s3725_s6 + $0x30] sm:$0xff]  ;;  %s5079_s28 = sld [smem:[#allocation33_spill]] }
  0x77   : > { %727 = vmatpush.bf16.msra.mxu0 %v2874_v2  ;;  %2886 = vmatpush.bf16.msra.mxu3 %v2874_v2  ;;  %v657_v10 = vld [vmem:[%s3725_s6 + $0x20] sm:$0xff]  ;;  %v669_v14 = vpack.c.bf16 %v646_v9, %v645_v8  ;;  %v654_v18 = vld [vmem:[%s3725_s6 + $0x8] sm:$0xff]  ;;  %v660_v20 = vld [vmem:[%s3725_s6 + $0x38] sm:$0xff]  ;;  %s5114_s14 = sld [smem:[#allocation31_spill]] }
  0x78   : > { %2890 = vmatpush.bf16.msra.mxu1 %v2878_v3  ;;  %v753_v15 = vpack.c.bf16 %v658_v11, %v657_v10  ;;  %v653_v17 = vld [vmem:[%s3725_s6] sm:$0xff]  ;;  %v650_v22 = vld [vmem:[%s3717_s20 + $0x28] sm:$0xff]  ;;  %v754_v24 = vpack.c.bf16 %v660_v20, %v659_v19  ;;  %v655_v26 = vld [vmem:[%s3725_s6 + $0x10] sm:$0xff]  ;;  %s5123_s27 = sld [smem:[#allocation32_spill]] }
  0x79   : > { %v649_v21 = vld [vmem:[%s3717_s20 + $0x20] sm:$0xff]  ;;  %v751_v23 = vpack.c.bf16 %v654_v18, %v653_v17  ;;  %v656_v27 = vld [vmem:[%s3725_s6 + $0x18] sm:$0xff]  ;;  %v651_v28 = vld [vmem:[%s3717_s20 + $0x30] sm:$0xff]  ;;  %s3457_s6 = smov 112  }
  0x7a   : > { %v671_v25 = vpack.c.bf16 %v650_v22, %v649_v21  ;;  %v652_v29 = vld [vmem:[%s3717_s20 + $0x38] sm:$0xff]  ;;  %v752_v30 = vpack.c.bf16 %v656_v27, %v655_v26  ;;  %v3793_v34 = vld [vmem:[%s5020_s4] ss:$0 sm:$0xff] }
  0x7b   : > { %728 = vmatpush.bf16.msra.mxu0 %v2873_v4  ;;  %2887 = vmatpush.bf16.msra.mxu3 %v2873_v4  ;;  %v672_v31 = vpack.c.bf16 %v652_v29, %v651_v28  ;;  %v3003_v51 = vld [vmem:[#allocation8] ss:$0 sm:$0xff] }
  0x7c   : > { %2891 = vmatpush.bf16.msra.mxu1 %v2877_v5 }
  0x7f   : > { %729 = vmatpush.bf16.msra.mxu0 %v2872_v6  ;;  %2888 = vmatpush.bf16.msra.mxu3 %v2872_v6 }
  0x80   : > { %2892 = vmatpush.bf16.msra.mxu1 %v2876_v7 }
  0x82   : > { %2763 = vmatmul.msk.bf16.vlgmr.msra.gmra.mxu0 %vm709_vm0, %v669_v14  ;;  %2764 = vmatmul.msk.bf16.vlgmr.msra.gmra.mxu3 %vm709_vm0, %v670_v16 }
  0x83   : > { %807 = vmatpush.bf16.msrb.mxu0 %v2879_v1  ;;  %2785 = vmatmul.msk.bf16.vlgmr.msra.gmra.mxu1 %vm709_vm0, %v753_v15 }
  0x87   : > { %808 = vmatpush.bf16.msrb.mxu0 %v2878_v3 }
  0x8b   : > { %809 = vmatpush.bf16.msrb.mxu0 %v2877_v5 }
  0x8f   : > { %810 = vmatpush.bf16.msrb.mxu0 %v2876_v7 }
  0x92   : > { %2783 = vmatmul.msk.bf16.vlgmr.msrb.gmra.mxu0 %vm709_vm0, %v751_v23  ;;  %2765 = vmatmul.msk.bf16.gmra.mxu3 %vm709_vm0, %v671_v25 }
  0x93   : > { %2786 = vmatmul.msk.bf16.gmra.mxu1 %vm709_vm0, %v754_v24 }
  0xa2   : > { %2784 = vmatmul.msk.bf16.gmra.mxu0 %vm709_vm0, %v752_v30  ;;  %2766 = vmatmul.msk.bf16.gmra.mxu3 %vm709_vm0, %v672_v31 }
  0xff   : > { %v731_v32 = vpop.f32.mrf.mxu0 }
 0x100   : > { %v822_v33 = vpop.f32.mrf.mxu1  ;;  %v732_v35 = vadd.f32 %v3793_v34, %v731_v32 }
 0x101   : > { %v823_v61 = vadd.f32 %v3003_v51, %v822_v33 }
 0x102   : > { %v913_v39 = vpack.c.bf16 %v732_v35, %v732_v35 }
 0x103   : > { %v925_v2 = vpack.c.bf16 %v823_v61, %v823_v61 }
 0x104   : > { %v950_v43 = vunpack.c.l.b16 %v913_v39 }
 0x105   : > { %v736_v36 = vpop.f32.mrf.mxu3  ;;  %v974_v8 = vunpack.c.l.b16 %v925_v2 }
 0x106   : > { %v737_v41 = vadd.f32 %v3793_v34, %v736_v36 }
 0x107   : > { %v733_v37 = vpop.f32.mrf.mxu0 }
 0x108   : > { %v824_v38 = vpop.f32.mrf.mxu1  ;;  %v734_v40 = vadd.f32 %v3793_v34, %v733_v37  ;;  %v915_v45 = vpack.c.bf16 %v737_v41, %v737_v41 }
 0x109   : > { %v825_v62 = vadd.f32 %v3003_v51, %v824_v38 }
 0x10a   : > { %v914_v42 = vpack.c.bf16 %v734_v40, %v734_v40  ;;  %v952_v52 = vunpack.c.l.b16 %v915_v45 }
 0x10b   : > { %v926_v3 = vpack.c.bf16 %v825_v62, %v825_v62 }
 0x10c   : > { %v951_v44 = vunpack.c.l.b16 %v914_v42 }
 0x10d   : > { %v738_v47 = vpop.f32.mrf.mxu3  ;;  %v975_v9 = vunpack.c.l.b16 %v926_v3 }
 0x10e   : > { %v3798_v46 = vpack.c.b16 %v951_v44, %v950_v43  ;;  %v739_v48 = vadd.f32 %v3793_v34, %v738_v47 }
 0x10f   : > { %v812_v49 = vpop.f32.mrf.mxu0  ;;  %v980_v11 = vpack.c.b16 %v975_v9, %v974_v8 }
 0x110   : > { %v827_v50 = vpop.f32.mrf.mxu1  ;;  %1298 = vrot.lane.b32.xlu2 %v3798_v46, %s3457_s6  ;;  %v916_v53 = vpack.c.bf16 %v739_v48, %v739_v48  ;;  %v813_v19 = vadd.f32 %v3003_v51, %v812_v49 }
 0x111   : > { %v828_v54 = vadd.f32 %v3003_v51, %v827_v50  ;;  %v1002_v18 = vsel %vm982_vm1, %v980_v11, 0 }
 0x112   : > { %v953_v55 = vunpack.c.l.b16 %v916_v53  ;;  %v921_v24 = vpack.c.bf16 %v813_v19, %v813_v19  ;;  %v3885_v19 = vld [vmem:[%s5077_s12 + $0x10] sm:$0xff] }
 0x113   : > { %v927_v57 = vpack.c.bf16 %v828_v54, %v828_v54 }
 0x114   : > { %v3803_v56 = vpack.c.b16 %v953_v55, %v952_v52  ;;  %v970_v31 = vunpack.c.l.b16 %v921_v24  ;;  %v3896_v24 = vld [vmem:[%s5077_s12 + $0x18] sm:$0xff] }
 0x115   : > { %v741_v58 = vpop.f32.mrf.mxu3  ;;  %v976_v0 = vunpack.c.l.b16 %v927_v57 }
 0x116   : > { %v742_v32 = vadd.f32 %v3793_v34, %v741_v58 }
 0x117   : > { %v814_v59 = vpop.f32.mrf.mxu0 }
 0x118   : > { %v829_v60 = vpop.f32.mrf.mxu1  ;;  %1300 = vrot.lane.b32.xlu2 %v3803_v56, %s3457_s6  ;;  %v815_v15 = vadd.f32 %v3003_v51, %v814_v59  ;;  %v917_v38 = vpack.c.bf16 %v742_v32, %v742_v32 }
 0x119   : > { %v830_v63 = vadd.f32 %v3003_v51, %v829_v60 }
 0x11a   : > { %v922_v21 = vpack.c.bf16 %v815_v15, %v815_v15  ;;  %v954_v43 = vunpack.c.l.b16 %v917_v38 }
 0x11b   : > { %v928_v1 = vpack.c.bf16 %v830_v63, %v830_v63 }
 0x11c   : > { %v971_v27 = vunpack.c.l.b16 %v922_v21 }
 0x11d   : > { %v977_v4 = vunpack.c.l.b16 %v928_v1  ;;  %v743_v6 = vpop.f32.mrf.mxu3 }
 0x11e   : > { %v744_v33 = vadd.f32 %v3793_v34, %v743_v6  ;;  %v978_v35 = vpack.c.b16 %v971_v27, %v970_v31 }
 0x11f   : > { %v981_v5 = vpack.c.b16 %v977_v4, %v976_v0  ;;  %v817_v7 = vpop.f32.mrf.mxu0 }
 0x120   : > { %v818_v12 = vadd.f32 %v3003_v51, %v817_v7  ;;  %v918_v39 = vpack.c.bf16 %v744_v33, %v744_v33  ;;  %v996_v42 = vsel %vm982_vm1, %v978_v35, 0  ;;  %v3861_v7 = vld [vmem:[%s5077_s12] sm:$0xff] }
 0x121   : > { %1312 = vrot.lane.b32.xlu0 %v981_v5, %s3457_s6  ;;  %1976 = vrot.lane.b32.xlu2 %v981_v5, %s3458_s19  ;;  %v1005_v10 = vsel %vm982_vm1, %v981_v5, 0 }
 0x122   : > { %1011 = vmatpush.bf16.xpose.msrb.mxu3 %v1005_v10  ;;  %v923_v16 = vpack.c.bf16 %v818_v12, %v818_v12  ;;  %v955_v44 = vunpack.c.l.b16 %v918_v39 }
 0x124   : > { %v972_v22 = vunpack.c.l.b16 %v923_v16 }
 0x125   : > { %v746_v13 = vpop.f32.mrf.mxu3 }
 0x126   : > { %v747_v28 = vadd.f32 %v3793_v34, %v746_v13 }
 0x127   : > { %v819_v14 = vpop.f32.mrf.mxu0 }
 0x128   : > { %v820_v17 = vadd.f32 %v3003_v51, %v819_v14  ;;  %v919_v36 = vpack.c.bf16 %v747_v28, %v747_v28  ;;  %v3873_v14 = vld [vmem:[%s5077_s12 + $0x8] sm:$0xff] }
 0x129   : > { %1310 = vrot.lane.b32.xlu0 %v980_v11, %s3457_s6 }
 0x12a   : > { %1012 = vmatpush.bf16.xpose.msrb.mxu3 %v1002_v18  ;;  %v924_v20 = vpack.c.bf16 %v820_v17, %v820_v17  ;;  %v956_v40 = vunpack.c.l.b16 %v919_v36 }
 0x12c   : > { %v973_v23 = vunpack.c.l.b16 %v924_v20 }
 0x12d   : > { %v748_v26 = vpop.f32.mrf.mxu3 }
 0x12e   : > { %v979_v25 = vpack.c.b16 %v973_v23, %v972_v22  ;;  %v749_v30 = vadd.f32 %v3793_v34, %v748_v26  ;;  %v960_v34 = vpack.c.b16 %v955_v44, %v954_v43  ;;  %v2882_v44 = vld [vmem:[%s5078_s7 + $0x10] sm:$0xff] }
 0x130   : > { %1308 = vrot.lane.b32.xlu1 %v979_v25, %s3457_s6  ;;  %v999_v29 = vsel %vm982_vm1, %v979_v25, 0  ;;  %1640 = vrot.lane.b32.xlu2 %v979_v25, %s3459_s1  ;;  %v920_v37 = vpack.c.bf16 %v749_v30, %v749_v30 }
 0x131   : > { %1644 = vrot.lane.b32.xlu0 %v981_v5, %s3459_s1 }
 0x132   : > { %1013 = vmatpush.bf16.xpose.msrb.mxu3 %v999_v29  ;;  %v957_v41 = vunpack.c.l.b16 %v920_v37  ;;  %v3907_v29 = vld [vmem:[%s5077_s12 + $0x20] sm:$0xff] }
 0x134   : > { %v961_v45 = vpack.c.b16 %v957_v41, %v956_v40  ;;  %v3929_v40 = vld [vmem:[%s5077_s12 + $0x30] sm:$0xff]  ;;  %v2883_v41 = vld [vmem:[%s5078_s7 + $0x18] sm:$0xff] }
 0x135   : > { %888 = vmatpush.bf16.msra.mxu2 %v2883_v41 }
 0x138   : > { %1306 = vrot.lane.b32.xlu1 %v978_v35, %s3457_s6  ;;  %1638 = vrot.lane.b32.xlu2 %v978_v35, %s3459_s1 }
 0x139   : > { %1642 = vrot.lane.b32.xlu0 %v980_v11, %s3459_s1  ;;  %889 = vmatpush.bf16.msra.mxu2 %v2882_v44 }
 0x13a   : > { %1014 = vmatpush.bf16.xpose.msrb.mxu3 %v996_v42 }
 0x140   : > { %1302 = vrot.lane.b32.xlu1 %v960_v34, %s3457_s6  ;;  %1962 = vrot.lane.b32.xlu2 %v3798_v46, %s3458_s19 }
 0x141   : > { %1304 = vrot.lane.b32.xlu0 %v961_v45, %s3457_s6  ;;  %2807 = vmatmul.msk.bf16.vlgmr.msrb.gmra.mxu3 %vm982_vm1, %v3798_v46 }
 0x148   : > { %1974 = vrot.lane.b32.xlu1 %v980_v11, %s3458_s19  ;;  %1634 = vrot.lane.b32.xlu2 %v960_v34, %s3459_s1 }
 0x149   : > { %1970 = vrot.lane.b32.xlu0 %v978_v35, %s3458_s19  ;;  %v3918_v35 = vld [vmem:[%s5077_s12 + $0x28] sm:$0xff] }
 0x150   : > { %1972 = vrot.lane.b32.xlu1 %v979_v25, %s3458_s19  ;;  %1968 = vrot.lane.b32.xlu2 %v961_v45, %s3458_s19 }
 0x151   : > { %1632 = vrot.lane.b32.xlu0 %v3803_v56, %s3459_s1  ;;  %2808 = vmatmul.msk.bf16.gmra.mxu3 %vm982_vm1, %v3803_v56 }
 0x158   : > { %1630 = vrot.lane.b32.xlu1 %v3798_v46, %s3459_s1 }
 0x159   : > { %1966 = vrot.lane.b32.xlu0 %v960_v34, %s3458_s19 }
 0x160   : > { %1964 = vrot.lane.b32.xlu1 %v3803_v56, %s3458_s19 }
 0x161   : > { %2809 = vmatmul.msk.bf16.gmra.mxu3 %vm982_vm1, %v960_v34  ;;  %v2881_v34 = vld [vmem:[%s5078_s7 + $0x8] sm:$0xff] }
 0x162   : > { %890 = vmatpush.bf16.msra.mxu2 %v2881_v34 }
 0x168   : > { %1636 = vrot.lane.b32.xlu1 %v961_v45, %s3459_s1 }
 0x16a   : > { %v1299_v47 = vpop.permute.xlu2 %1298 }
 0x171   : > { %2810 = vmatmul.msk.bf16.gmra.mxu3 %vm982_vm1, %v961_v45 }
 0x172   : > { %v1301_v52 = vpop.permute.xlu2 %1300 }
 0x17b   : > { %v1977_v56 = vpop.permute.xlu2 %1976 }
 0x17c   : > { %v2000_v61 = vsel %vm982_vm1, %v1977_v56, 0  ;;  %v664_v56 = vld [vmem:[%s3732_s9 + $0x18] sm:$0xff] }
 0x18a   : > { %v1641_v62 = vpop.permute.xlu2 %1640 }
 0x18b   : > { %v1662_v0 = vsel %vm982_vm1, %v1641_v62, 0 }
 0x192   : > { %v1639_v1 = vpop.permute.xlu2 %1638 }
 0x193   : > { %v1313_v48 = vpop.permute.xlu0 %1312  ;;  %v1659_v3 = vsel %vm982_vm1, %v1639_v1, 0  ;;  %v667_v1 = vld [vmem:[%s3732_s9 + $0x30] sm:$0xff] }
 0x194   : > { %v1336_v49 = vsel %vm982_vm1, %v1313_v48, 0  ;;  %v3949_v48 = vld [vmem:[%s5077_s12 + $0x38] sm:$0xff] }
 0x195   : > { %1342 = vmatpush.bf16.xpose.msrb.mxu1 %v1336_v49 }
 0x19a   : > { %v1963_v28 = vpop.permute.xlu2 %1962 }
 0x19b   : > { %v1311_v50 = vpop.permute.xlu0 %1310 }
 0x19c   : > { %v1333_v51 = vsel %vm982_vm1, %v1311_v50, 0 }
 0x19d   : > { %1343 = vmatpush.bf16.xpose.msrb.mxu1 %v1333_v51  ;;  %v2880_v51 = vld [vmem:[%s5078_s7] sm:$0xff] }
 0x19e   : > { %891 = vmatpush.bf16.msra.mxu2 %v2880_v51 }
 0x1a2   : > { %v1309_v53 = vpop.permute.xlu1 %1308  ;;  %v1635_v33 = vpop.permute.xlu2 %1634 }
 0x1a3   : > { %v1645_v46 = vpop.permute.xlu0 %1644  ;;  %v1330_v55 = vsel %vm982_vm1, %v1309_v53, 0  ;;  %v662_v53 = vld [vmem:[%s3732_s9 + $0x8] sm:$0xff] }
 0x1a4   : > { %v1668_v54 = vsel %vm982_vm1, %v1645_v46, 0  ;;  %v661_v46 = vld [vmem:[%s3732_s9] sm:$0xff] }
 0x1a5   : > { %1344 = vmatpush.bf16.xpose.msrb.mxu1 %v1330_v55  ;;  %1674 = vmatpush.bf16.xpose.msra.mxu3 %v1668_v54  ;;  %v832_v54 = vpack.c.bf16 %v662_v53, %v661_v46  ;;  %v663_v55 = vld [vmem:[%s3732_s9 + $0x10] sm:$0xff] }
 0x1a7   : > { %2803 = vmatmul.msk.bf16.vlgmr.msra.gmra.mxu2 %vm709_vm0, %v832_v54 }
 0x1aa   : > { %v1307_v58 = vpop.permute.xlu1 %1306 }
 0x1ab   : > { %v1643_v57 = vpop.permute.xlu0 %1642  ;;  %v1327_v60 = vsel %vm982_vm1, %v1307_v58, 0  ;;  %v833_v58 = vpack.c.bf16 %v664_v56, %v663_v55 }
 0x1ac   : > { %v1665_v59 = vsel %vm982_vm1, %v1643_v57, 0 }
 0x1ad   : > { %1345 = vmatpush.bf16.xpose.msrb.mxu1 %v1327_v60  ;;  %1675 = vmatpush.bf16.xpose.msra.mxu3 %v1665_v59  ;;  %v1969_v59 = vpop.permute.xlu2 %1968  ;;  %v665_v60 = vld [vmem:[%s3732_s9 + $0x20] sm:$0xff] }
 0x1b2   : > { %v1303_v63 = vpop.permute.xlu1 %1302 }
 0x1b3   : > { %v1305_v5 = vpop.permute.xlu0 %1304 }
 0x1b4   : > { %2815 = vmatmul.msk.bf16.vlgmr.msrb.gmra.mxu1 %vm982_vm1, %v1299_v47 }
 0x1b5   : > { %2006 = vmatpush.bf16.xpose.msra.mxu1 %v2000_v61  ;;  %1676 = vmatpush.bf16.xpose.msra.mxu3 %v1662_v0  ;;  %v666_v61 = vld [vmem:[%s3732_s9 + $0x28] sm:$0xff] }
 0x1b6   : > { %v834_v62 = vpack.c.bf16 %v666_v61, %v665_v60 }
 0x1b7   : > { %2804 = vmatmul.msk.bf16.gmra.mxu2 %vm709_vm0, %v833_v58 }
 0x1ba   : > { %v1975_v2 = vpop.permute.xlu1 %1974 }
 0x1bb   : > { %v1997_v4 = vsel %vm982_vm1, %v1975_v2, 0  ;;  %v1971_v12 = vpop.permute.xlu0 %1970  ;;  %v668_v2 = vld [vmem:[%s3732_s9 + $0x38] sm:$0xff]  ;;  %s640_s9 = scalar_select %p639_p4, %s3559_s17, 3 }
 0x1bc   : > { %v1991_v15 = vsel %vm982_vm1, %v1971_v12, 0 }
 0x1bd   : > { %1677 = vmatpush.bf16.xpose.msra.mxu3 %v1659_v3  ;;  %2007 = vmatpush.bf16.xpose.msra.mxu1 %v1997_v4  ;;  %v835_v4 = vpack.c.bf16 %v668_v2, %v667_v1  ;;  %s2871_s24 = sshll.u32 %s640_s9, 8 }
 0x1be   : > { %s4129_s6 = scalar_lea.vmem %s5079_s28, %s2871_s24  ;;  %s3391_s28 = scalar_lea.hbm %s5123_s27, 256 }
 0x1c2   : > { %v1973_v6 = vpop.permute.xlu1 %1972 }
 0x1c3   : > { %v1994_v8 = vsel %vm982_vm1, %v1973_v6, 0  ;;  %v1633_v23 = vpop.permute.xlu0 %1632 }
 0x1c4   : > { %2816 = vmatmul.msk.bf16.gmra.mxu1 %vm982_vm1, %v1301_v52  ;;  %v1016_v9 = vpop.f32.mrf.mxu3 }
 0x1c5   : > { %2008 = vmatpush.bf16.xpose.msra.mxu1 %v1994_v8  ;;  %v3866_v10 = vadd.f32 %v1016_v9, %v3861_v7 }
 0x1c7   : > { %v1036_v11 = vsel %vm709_vm0, %v3866_v10, -inf  ;;  %2805 = vmatmul.msk.bf16.gmra.mxu2 %vm709_vm0, %v834_v62 }
 0x1c8   : > { %1037 = vmax.xlane.f32.xlu0 %v1036_v11 }
 0x1ca   : > { %v1631_v13 = vpop.permute.xlu1 %1630 }
 0x1cb   : > { %2831 = vmatmul.msk.bf16.vlgmr.msra.gmra.mxu3 %vm982_vm1, %v1631_v13  ;;  %v1967_v57 = vpop.permute.xlu0 %1966 }
 0x1cc   : > { %v1018_v16 = vpop.f32.mrf.mxu3 }
 0x1cd   : > { %2009 = vmatpush.bf16.xpose.msra.mxu1 %v1991_v15  ;;  %v3878_v17 = vadd.f32 %v1018_v16, %v3873_v14 }
 0x1cf   : > { %v1039_v18 = vsel %vm709_vm0, %v3878_v17, -inf }
 0x1d0   : > { %1040 = vmax.xlane.f32.xlu1 %v1039_v18 }
 0x1d2   : > { %v1965_v39 = vpop.permute.xlu1 %1964 }
 0x1d4   : > { %2817 = vmatmul.msk.bf16.gmra.mxu1 %vm982_vm1, %v1303_v63  ;;  %v1021_v20 = vpop.f32.mrf.mxu3 }
 0x1d5   : > { %v3889_v21 = vadd.f32 %v1021_v20, %v3885_v19 }
 0x1d7   : > { %v1042_v22 = vsel %vm709_vm0, %v3889_v21, -inf  ;;  %2806 = vmatmul.msk.bf16.gmra.mxu2 %vm709_vm0, %v835_v4 }
 0x1d8   : > { %1043 = vmax.xlane.f32.xlu0 %v1042_v22 }
 0x1da   : > { %v1637_v47 = vpop.permute.xlu1 %1636 }
 0x1db   : > { %2832 = vmatmul.msk.bf16.gmra.mxu3 %vm982_vm1, %v1633_v23 }
 0x1dc   : > { %v1023_v25 = vpop.f32.mrf.mxu3 }
 0x1dd   : > { %v3900_v26 = vadd.f32 %v1023_v25, %v3896_v24 }
 0x1df   : > { %v1045_v27 = vsel %vm709_vm0, %v3900_v26, -inf }
 0x1e0   : > { %1046 = vmax.xlane.f32.xlu1 %v1045_v27 }
 0x1e4   : > { %2818 = vmatmul.msk.bf16.gmra.mxu1 %vm982_vm1, %v1305_v5  ;;  %v1026_v30 = vpop.f32.mrf.mxu3 }
 0x1e5   : > { %v3911_v31 = vadd.f32 %v1026_v30, %v3907_v29 }
 0x1e7   : > { %v1048_v32 = vsel %vm709_vm0, %v3911_v31, -inf }
 0x1e8   : > { %1049 = vmax.xlane.f32.xlu1 %v1048_v32 }
 0x1eb   : > { %2833 = vmatmul.msk.bf16.gmra.mxu3 %vm982_vm1, %v1635_v33 }
 0x1ec   : > { %v1028_v36 = vpop.f32.mrf.mxu3 }
 0x1ed   : > { %v3922_v37 = vadd.f32 %v1028_v36, %v3918_v35 }
 0x1ef   : > { %v1051_v38 = vsel %vm709_vm0, %v3922_v37, -inf }
 0x1f0   : > { %1052 = vmax.xlane.f32.xlu2 %v1051_v38 }
 0x1f4   : > { %2847 = vmatmul.msk.bf16.vlgmr.msra.gmra.mxu1 %vm982_vm1, %v1963_v28  ;;  %v1031_v42 = vpop.f32.mrf.mxu3 }
 0x1f5   : > { %v3936_v43 = vadd.f32 %v1031_v42, %v3929_v40 }
 0x1f7   : > { %v1054_v45 = vsel %vm709_vm0, %v3936_v43, -inf }
 0x1f8   : > { %1055 = vmax.xlane.f32.xlu2 %v1054_v45 }
 0x1fb   : > { %2834 = vmatmul.msk.bf16.gmra.mxu3 %vm982_vm1, %v1637_v47 }
 0x1fc   : > { %v1033_v49 = vpop.f32.mrf.mxu3 }
 0x1fd   : > { %v3953_v50 = vadd.f32 %v1033_v49, %v3949_v48 }
 0x1ff   : > { %v1057_v52 = vsel %vm709_vm0, %v3953_v50, -inf }
 0x200   : > { %1058 = vmax.xlane.f32.xlu0 %v1057_v52 }
 0x204   : > { %2848 = vmatmul.msk.bf16.gmra.mxu1 %vm982_vm1, %v1965_v39 }
 0x214   : > { %2849 = vmatmul.msk.bf16.gmra.mxu1 %vm982_vm1, %v1967_v57 }
 0x224   : > { %2850 = vmatmul.msk.bf16.gmra.mxu1 %vm982_vm1, %v1969_v59 }
 0x231   : > { %v1347_v63 = vpop.f32.mrf.mxu1 }
 0x232   : > { %v3973_v0 = vadd.f32 %v1347_v63, %v3861_v7 }
 0x234   : > { %v1367_v3 = vsel %vm709_vm0, %v3973_v0, -inf }
 0x235   : > { %1368 = vmax.xlane.f32.xlu2 %v1367_v3 }
 0x239   : > { %v1349_v5 = vpop.f32.mrf.mxu1 }
 0x23a   : > { %v3981_v6 = vadd.f32 %v1349_v5, %v3873_v14 }
 0x23b   : > { %v1038_v11 = vpop.xlane.xlu0 %1037 }
 0x23c   : > { %v1370_v8 = vsel %vm709_vm0, %v3981_v6, -inf  ;;  %v1060_v12 = vsub.f32 %v3866_v10, %v1038_v11 }
 0x23d   : > { %1371 = vmax.xlane.f32.xlu2 %v1370_v8 }
 0x23e   : > { %v1068_v16 = vmul.f32 1.442695, %v1060_v12 }
 0x240   : > { %3007 = vpow2.f32 %v1068_v16 }
 0x241   : > { %v1352_v9 = vpop.f32.mrf.mxu1 }
 0x242   : > { %v4002_v39 = vadd.f32 %v1352_v9, %v3885_v19 }
 0x243   : > { %v1041_v15 = vpop.xlane.xlu1 %1040 }
 0x244   : > { %v1061_v10 = vsub.f32 %v3878_v17, %v1041_v15  ;;  %v1373_v34 = vsel %vm709_vm0, %v4002_v39, -inf }
 0x246   : > { %v3991_v27 = vpop.eup %3007  ;;  %v1070_v38 = vmul.f32 1.442695, %v1061_v10 }
 0x247   : > { %v1084_v36 = vsel %vm709_vm0, %v3991_v27, 0.0 }
 0x248   : > { %3009 = vpow2.f32 %v1070_v38 }
 0x249   : > { %v1354_v13 = vpop.f32.mrf.mxu1 }
 0x24a   : > { %v4013_v51 = vadd.f32 %v1354_v13, %v3896_v24 }
 0x24b   : > { %v1044_v52 = vpop.xlane.xlu0 %1043 }
 0x24c   : > { %v1376_v58 = vsel %vm709_vm0, %v4013_v51, -inf }
 0x24e   : > { %v1679_v18 = vpop.f32.mrf.mxu3  ;;  %v4015_v46 = vpop.eup %3009 }
 0x24f   : > { %v3987_v20 = vadd.f32 %v1679_v18, %v3861_v7  ;;  %v1087_v57 = vsel %vm709_vm0, %v4015_v46, 0.0 }
 0x251   : > { %v1357_v22 = vpop.f32.mrf.mxu1  ;;  %v1699_v23 = vsel %vm709_vm0, %v3987_v20, -inf }
 0x252   : > { %1700 = vmax.xlane.f32.xlu1 %v1699_v23  ;;  %v4029_v61 = vadd.f32 %v1357_v22, %v3907_v29 }
 0x253   : > { %v1047_v25 = vpop.xlane.xlu1 %1046 }
 0x254   : > { %v1063_v56 = vsub.f32 %v3900_v26, %v1047_v25  ;;  %v1379_v2 = vsel %vm709_vm0, %v4029_v61, -inf }
 0x256   : > { %v1681_v28 = vpop.f32.mrf.mxu3 }
 0x257   : > { %v3994_v30 = vadd.f32 %v1681_v28, %v3873_v14  ;;  %v893_v28 = vpop.f32.mrf.mxu2 }
 0x259   : > { %v1359_v32 = vpop.f32.mrf.mxu1  ;;  %v1702_v33 = vsel %vm709_vm0, %v3994_v30, -inf }
 0x25a   : > { %1703 = vmax.xlane.f32.xlu2 %v1702_v33  ;;  %1085 = vadd.xlane.f32.xlu1 %v1084_v36  ;;  %v4034_v26 = vadd.f32 %v1359_v32, %v3918_v35 }
 0x25b   : > { %v1050_v41 = vpop.xlane.xlu1 %1049 }
 0x25c   : > { %v1064_v17 = vsub.f32 %v3911_v31, %v1050_v41  ;;  %v1062_v31 = vsub.f32 %v3889_v21, %v1044_v52  ;;  %v1074_v21 = vmul.f32 1.442695, %v1063_v56  ;;  %v1382_v3 = vsel %vm709_vm0, %v4034_v26, -inf }
 0x25e   : > { %v1684_v42 = vpop.f32.mrf.mxu3  ;;  %v1076_v49 = vmul.f32 1.442695, %v1064_v17  ;;  %v1072_v60 = vmul.f32 1.442695, %v1062_v31 }
 0x25f   : > { %v4005_v44 = vadd.f32 %v1684_v42, %v3885_v19  ;;  %v895_v33 = vpop.f32.mrf.mxu2 }
 0x260   : > { %3011 = vpow2.f32 %v1076_v49 }
 0x261   : > { %v1362_v45 = vpop.f32.mrf.mxu1  ;;  %v1705_v47 = vsel %vm709_vm0, %v4005_v44, -inf  ;;  %3013 = vpow2.f32 %v1072_v60 }
 0x262   : > { %1374 = vmax.xlane.f32.xlu2 %v1373_v34  ;;  %1706 = vmax.xlane.f32.xlu0 %v1705_v47  ;;  %3015 = vpow2.f32 %v1074_v21  ;;  %v4055_v12 = vadd.f32 %v1362_v45, %v3929_v40 }
 0x263   : > { %v1053_v41 = vpop.xlane.xlu2 %1052 }
 0x264   : > { %v1385_v18 = vsel %vm709_vm0, %v4055_v12, -inf  ;;  %v1065_v56 = vsub.f32 %v3922_v37, %v1053_v41 }
 0x266   : > { %v1686_v53 = vpop.f32.mrf.mxu3  ;;  %v4031_v62 = vpop.eup %3011  ;;  %v1078_v60 = vmul.f32 1.442695, %v1065_v56 }
 0x267   : > { %v4018_v54 = vadd.f32 %v1686_v53, %v3896_v24  ;;  %v1096_v1 = vsel %vm709_vm0, %v4031_v62, 0.0  ;;  %v4044_v4 = vpop.eup %3013  ;;  %v898_v42 = vpop.f32.mrf.mxu2 }
 0x268   : > { %v4046_v5 = vpop.eup %3015  ;;  %v1090_v9 = vsel %vm709_vm0, %v4044_v4, 0.0 }
 0x269   : > { %v1364_v55 = vpop.f32.mrf.mxu1  ;;  %v1708_v59 = vsel %vm709_vm0, %v4018_v54, -inf  ;;  %v1093_v11 = vsel %vm709_vm0, %v4046_v5, 0.0 }
 0x26a   : > { %1088 = vadd.xlane.f32.xlu2 %v1087_v57  ;;  %1377 = vmax.xlane.f32.xlu0 %v1376_v58  ;;  %v4058_v13 = vadd.f32 %v1364_v55, %v3949_v48 }
 0x26b   : > { %1709 = vmax.xlane.f32.xlu1 %v1708_v59  ;;  %v4079_v17 = vpop.xlane.xlu2 %1055 }
 0x26c   : > { %v1388_v22 = vsel %vm709_vm0, %v4058_v13, -inf }
 0x26f   : > { %v900_v45 = vpop.f32.mrf.mxu2 }
 0x271   : > { %v4036_v63 = vpop.f32.mrf.mxu1 }
 0x272   : > { %1097 = vadd.xlane.f32.xlu2 %v1096_v1  ;;  %1380 = vmax.xlane.f32.xlu0 %v1379_v2 }
 0x273   : > { %1383 = vmax.xlane.f32.xlu1 %v1382_v3  ;;  %v3004_v3 = vld [vmem:[#allocation10] ss:$0 sm:$0xff]  ;;  %v4110_v56 = vpop.xlane.xlu0 %1058 }
 0x274   : > { %v899_v41 = vadd.f32 %v3004_v3, %v898_v42 }
 0x277   : > { %v903_v47 = vpop.f32.mrf.mxu2 }
 0x279   : > { %v4048_v8 = vpop.f32.mrf.mxu1 }
 0x27a   : > { %1091 = vadd.xlane.f32.xlu0 %v1090_v9 }
 0x27b   : > { %1094 = vadd.xlane.f32.xlu1 %v1093_v11 }
 0x27f   : > { %v905_v31 = vpop.f32.mrf.mxu2 }
 0x281   : > { %v2016_v15 = vpop.f32.mrf.mxu1 }
 0x282   : > { %v4061_v16 = vadd.f32 %v2016_v15, %v3885_v19  ;;  %1386 = vmax.xlane.f32.xlu0 %v1385_v18  ;;  %v904_v18 = vadd.f32 %v3004_v3, %v903_v47  ;;  %v894_v47 = vadd.f32 %v3004_v3, %v893_v28 }
 0x283   : > { %1389 = vmax.xlane.f32.xlu1 %v1388_v22  ;;  %v906_v22 = vadd.f32 %v3004_v3, %v905_v31 }
 0x284   : > { %v2037_v23 = vsel %vm709_vm0, %v4061_v16, -inf }
 0x285   : > { %2038 = vmax.xlane.f32.xlu2 %v2037_v23 }
 0x287   : > { %v908_v21 = vpop.f32.mrf.mxu2 }
 0x288   : > { %v909_v11 = vadd.f32 %v3004_v3, %v908_v21 }
 0x289   : > { %v2018_v25 = vpop.f32.mrf.mxu1 }
 0x28a   : > { %v4070_v10 = vadd.f32 %v2018_v25, %v3896_v24 }
 0x28c   : > { %v2040_v19 = vsel %vm709_vm0, %v4070_v10, -inf }
 0x28d   : > { %2041 = vmax.xlane.f32.xlu0 %v2040_v19 }
 0x28f   : > { %v910_v15 = vpop.f32.mrf.mxu2 }
 0x290   : > { %v911_v23 = vadd.f32 %v3004_v3, %v910_v15  ;;  %v1066_v15 = vsub.f32 %v3936_v43, %v4079_v17 }
 0x291   : > { %v2021_v32 = vpop.f32.mrf.mxu1 }
 0x292   : > { %v4075_v36 = vadd.f32 %v2021_v32, %v3907_v29  ;;  %v932_v32 = vpack.c.bf16 %v911_v23, %v909_v11 }
 0x294   : > { %v2043_v38 = vsel %vm709_vm0, %v4075_v36, -inf  ;;  %1248 = vmatpush.bf16.msra.mxu0 %v932_v32  ;;  %1579 = vmatpush.bf16.msrb.mxu2 %v932_v32 }
 0x295   : > { %2044 = vmax.xlane.f32.xlu1 %v2043_v38  ;;  %2243 = vmatpush.bf16.msrb.mxu1 %v932_v32 }
 0x299   : > { %v2023_v59 = vpop.f32.mrf.mxu1 }
 0x2a1   : > { %v2026_v42 = vpop.f32.mrf.mxu1 }
 0x2a2   : > { %v4115_v28 = vadd.f32 %v2026_v42, %v3929_v40 }
 0x2a8   : > { %v1369_v24 = vpop.xlane.xlu2 %1368 }
 0x2a9   : > { %v1391_v34 = vsub.f32 %v3973_v0, %v1369_v24  ;;  %v4089_v0 = vadd.f32 %v2023_v59, %v3918_v35  ;;  %v901_v24 = vadd.f32 %v3004_v3, %v900_v45 }
 0x2ab   : > { %v1399_v49 = vmul.f32 1.442695, %v1391_v34  ;;  %v2046_v37 = vsel %vm709_vm0, %v4089_v0, -inf  ;;  %v931_v34 = vpack.c.bf16 %v906_v22, %v904_v18 }
 0x2ad   : > { %3017 = vpow2.f32 %v1399_v49  ;;  %1249 = vmatpush.bf16.msra.mxu0 %v931_v34  ;;  %1580 = vmatpush.bf16.msrb.mxu2 %v931_v34 }
 0x2ae   : > { %2244 = vmatpush.bf16.msrb.mxu1 %v931_v34 }
 0x2b0   : > { %v1372_v52 = vpop.xlane.xlu2 %1371 }
 0x2b1   : > { %v1392_v53 = vsub.f32 %v3981_v6, %v1372_v52  ;;  %v4093_v6 = vpop.f32.mrf.mxu3  ;;  %v896_v52 = vadd.f32 %v3004_v3, %v895_v33  ;;  %v2049_v33 = vsel %vm709_vm0, %v4115_v28, -inf }
 0x2b3   : > { %v4083_v55 = vpop.eup %3017  ;;  %v1401_v57 = vmul.f32 1.442695, %v1392_v53  ;;  %v930_v53 = vpack.c.bf16 %v901_v24, %v899_v41 }
 0x2b4   : > { %v1415_v58 = vsel %vm709_vm0, %v4083_v55, 0.0 }
 0x2b5   : > { %3019 = vpow2.f32 %v1401_v57  ;;  %1416 = vadd.xlane.f32.xlu2 %v1415_v58  ;;  %1250 = vmatpush.bf16.msra.mxu0 %v930_v53 }
 0x2b6   : > { %3021 = vpow2.f32 %v1078_v60  ;;  %1581 = vmatpush.bf16.msrb.mxu2 %v930_v53  ;;  %2245 = vmatpush.bf16.msrb.mxu1 %v930_v53 }
 0x2b9   : > { %v1691_v19 = vpop.f32.mrf.mxu3 }
 0x2ba   : > { %v4106_v49 = vadd.f32 %v1691_v19, %v3918_v35  ;;  %v929_v35 = vpack.c.bf16 %v896_v52, %v894_v47 }
 0x2bb   : > { %v4091_v1 = vpop.eup %3019 }
 0x2bc   : > { %v1418_v2 = vsel %vm709_vm0, %v4091_v1, 0.0  ;;  %v4099_v9 = vpop.eup %3021  ;;  %v1714_v31 = vsel %vm709_vm0, %v4106_v49, -inf  ;;  %1251 = vmatpush.bf16.msra.mxu0 %v929_v35  ;;  %1582 = vmatpush.bf16.msrb.mxu2 %v929_v35 }
 0x2bd   : > { %2047 = vmax.xlane.f32.xlu2 %v2046_v37  ;;  %1419 = vadd.xlane.f32.xlu0 %v1418_v2  ;;  %v1099_v25 = vsel %vm709_vm0, %v4099_v9, 0.0 }
 0x2be   : > { %2246 = vmatpush.bf16.msrb.mxu1 %v929_v35 }
 0x2c0   : > { %1911 = vmatpush.bf16.msrb.mxu0 %v932_v32  ;;  %2893 = vmatpush.bf16.msra.mxu2 %v932_v32 }
 0x2c4   : > { %1912 = vmatpush.bf16.msrb.mxu0 %v931_v34  ;;  %2894 = vmatpush.bf16.msra.mxu2 %v931_v34 }
 0x2c5   : > { %1100 = vadd.xlane.f32.xlu0 %v1099_v25  ;;  %v4103_v38 = vpop.xlane.xlu1 %1700  ;;  %v1080_v25 = vmul.f32 1.442695, %v1066_v15 }
 0x2c8   : > { %1913 = vmatpush.bf16.msrb.mxu0 %v930_v53  ;;  %2895 = vmatpush.bf16.msra.mxu2 %v930_v53 }
 0x2cc   : > { %1914 = vmatpush.bf16.msrb.mxu0 %v929_v35  ;;  %2896 = vmatpush.bf16.msra.mxu2 %v929_v35 }
 0x2cd   : > { %1715 = vmax.xlane.f32.xlu0 %v1714_v31  ;;  %v4112_v45 = vpop.xlane.xlu2 %1703  ;;  %v1086_v57 = vpop.xlane.xlu1 %1085 }
 0x2ce   : > { %3023 = vrcp.f32 %v1086_v57  ;;  %v1119_v3 = vand.u32 2147483648, %v1086_v57  ;;  %v1117_v22 = vand.u32 2147483647, %v1086_v57  ;;  %vm1113_vm3 = vweird.f32 %v1086_v57 }
 0x2d0   : > { %vm1118_vm5 = vcmp.eq.f32.partialorder %v1117_v22, 8.507059e+37 }
 0x2d4   : > { %v3024_v58 = vpop.eup %3023 }
 0x2d5   : > { %2050 = vmax.xlane.f32.xlu0 %v2049_v33  ;;  %v1109_v59 = vmul.f32 %v3024_v58, %v1086_v57  ;;  %v1375_v60 = vpop.xlane.xlu2 %1374  ;;  %v4120_v21 = vpop.xlane.xlu0 %1706  ;;  %vm1114_vm2 = vweird.f32 %v3024_v58 }
 0x2d6   : > { %v1393_v37 = vsub.f32 %v4002_v39, %v1375_v60  ;;  %vm1115_vm4 = vmor %vm1113_vm3, %vm1114_vm2  ;;  %v1120_v39 = vor.u32 1.1754944e-38, %v1119_v3 }
 0x2d7   : > { %v1110_v2 = vsub.f32 1.0, %v1109_v59 }
 0x2d8   : > { %v1403_v11 = vmul.f32 1.442695, %v1393_v37 }
 0x2d9   : > { %v1111_v18 = vmul.f32 %v3024_v58, %v1110_v2 }
 0x2da   : > { %3025 = vpow2.f32 %v1403_v11 }
 0x2db   : > { %v1112_v23 = vadd.f32 %v3024_v58, %v1111_v18  ;;  %v1067_v18 = vsub.f32 %v3953_v50, %v4110_v56 }
 0x2dd   : > { %v1116_v19 = vsel %vm1115_vm4, %v3024_v58, %v1112_v23  ;;  %v1089_v32 = vpop.xlane.xlu2 %1088  ;;  %v1378_v41 = vpop.xlane.xlu0 %1377 }
 0x2de   : > { %v1121_v43 = vsel %vm1118_vm5, %v1120_v39, %v1116_v19  ;;  %3027 = vrcp.f32 %v1089_v32  ;;  %v4131_v17 = vpop.xlane.xlu1 %1709  ;;  %v1394_v34 = vsub.f32 %v4013_v51, %v1378_v41  ;;  %v1131_v60 = vand.u32 2147483647, %v1089_v32 }
 0x2df   : > { %v4134_v24 = vmul.f32 %v3991_v27, %v1121_v43  ;;  %3029 = vpow2.f32 %v1080_v25  ;;  %v1133_v37 = vand.u32 2147483648, %v1089_v32  ;;  %vm1127_vm7 = vweird.f32 %v1089_v32 }
 0x2e0   : > { %v4137_v47 = vpop.eup %3025  ;;  %v1405_v52 = vmul.f32 1.442695, %v1394_v34  ;;  %vm1132_vm9 = vcmp.eq.f32.partialorder %v1131_v60, 8.507059e+37  ;;  %v4164_v19 = vadd.f32 %v4093_v6, %v3907_v29 }
 0x2e1   : > { %1290 = vst.msk [vmem:[%s4129_s6] sm:$0xff] %vm709_vm0, %v4134_v24  ;;  %v1421_v53 = vsel %vm709_vm0, %v4137_v47, 0.0  ;;  %v1134_v39 = vor.u32 1.1754944e-38, %v1133_v37 }
 0x2e2   : > { %1422 = vadd.xlane.f32.xlu1 %v1421_v53  ;;  %3031 = vpow2.f32 %v1405_v52  ;;  %v2028_v53 = vpop.f32.mrf.mxu1 }
 0x2e3   : > { %v4189_v60 = vadd.f32 %v2028_v53, %v3949_v48 }
 0x2e4   : > { %v3028_v31 = vpop.eup %3027 }
 0x2e5   : > { %v1123_v42 = vmul.f32 %v3028_v31, %v1089_v32  ;;  %v4144_v27 = vpop.xlane.xlu2 %1097  ;;  %v1381_v57 = vpop.xlane.xlu0 %1380  ;;  %vm1128_vm6 = vweird.f32 %v3028_v31  ;;  %v1082_v32 = vmul.f32 1.442695, %v1067_v18 }
 0x2e6   : > { %3033 = vrcp.f32 %v4144_v27  ;;  %v1384_v51 = vpop.xlane.xlu1 %1383  ;;  %v4147_v35 = vpop.eup %3029  ;;  %v1395_v59 = vsub.f32 %v4029_v61, %v1381_v57  ;;  %vm1129_vm8 = vmor %vm1127_vm7, %vm1128_vm6  ;;  %v1173_v6 = vand.u32 2147483647, %v4144_v27  ;;  %vm1169_vm11 = vweird.f32 %v4144_v27 }
 0x2e7   : > { %v1124_v33 = vsub.f32 1.0, %v1123_v42  ;;  %v1396_v58 = vsub.f32 %v4034_v26, %v1384_v51  ;;  %v1102_v22 = vsel %vm709_vm0, %v4147_v35, 0.0 }
 0x2e8   : > { %v1407_v11 = vmul.f32 1.442695, %v1395_v59  ;;  %v4151_v15 = vpop.eup %3031  ;;  %v1711_v59 = vsel %vm709_vm0, %v4164_v19, -inf  ;;  %vm1174_vm13 = vcmp.eq.f32.partialorder %v1173_v6, 8.507059e+37 }
 0x2e9   : > { %v1125_v2 = vmul.f32 %v3028_v31, %v1124_v33  ;;  %v1409_v3 = vmul.f32 1.442695, %v1396_v58  ;;  %v1424_v61 = vsel %vm709_vm0, %v4151_v15, 0.0  ;;  %v1694_v33 = vpop.f32.mrf.mxu3 }
 0x2ea   : > { %1103 = vadd.xlane.f32.xlu1 %v1102_v22  ;;  %1425 = vadd.xlane.f32.xlu2 %v1424_v61 }
 0x2eb   : > { %v1126_v23 = vadd.f32 %v3028_v31, %v1125_v2  ;;  %3035 = vpow2.f32 %v1409_v3 }
 0x2ec   : > { %v3034_v26 = vpop.eup %3033  ;;  %3037 = vpow2.f32 %v1407_v11 }
 0x2ed   : > { %v1130_v25 = vsel %vm1129_vm8, %v3028_v31, %v1126_v23  ;;  %v1165_v50 = vmul.f32 %v3034_v26, %v4144_v27  ;;  %v4160_v56 = vpop.xlane.xlu0 %1091  ;;  %v1175_v31 = vand.u32 2147483648, %v4144_v27  ;;  %vm1170_vm10 = vweird.f32 %v3034_v26 }
 0x2ee   : > { %v1135_v41 = vsel %vm1132_vm9, %v1134_v39, %v1130_v25  ;;  %v4166_v43 = vpop.xlane.xlu1 %1094  ;;  %3039 = vrcp.f32 %v4160_v56  ;;  %vm1171_vm12 = vmor %vm1169_vm11, %vm1170_vm10  ;;  %v1147_v53 = vand.u32 2147483648, %v4160_v56  ;;  %vm1141_vm1 = vweird.f32 %v4160_v56 }
 0x2ef   : > { %v1221_v34 = vmul.f32 %v4015_v46, %v1135_v41  ;;  %v1166_v52 = vsub.f32 1.0, %v1165_v50  ;;  %3041 = vrcp.f32 %v4166_v43  ;;  %v4182_v46 = vadd.f32 %v4036_v63, %v3861_v7 }
 0x2f0   : > { %3043 = vpow2.f32 %v1082_v32  ;;  %v1176_v63 = vor.u32 1.1754944e-38, %v1175_v31  ;;  %v2052_v50 = vsel %vm709_vm0, %v4189_v60, -inf  ;;  %v1161_v31 = vand.u32 2147483648, %v4166_v43 }
 0x2f1   : > { %v4172_v42 = vpop.eup %3035  ;;  %1291 = vst.msk [vmem:[%s4129_s6 + $0x8] sm:$0xff] %vm709_vm0, %v1221_v34  ;;  %v1167_v29 = vmul.f32 %v3034_v26, %v1166_v52  ;;  %v1228_v57 = vpack.c.bf16 %v1221_v34, %v4134_v24  ;;  %v2031_v22 = vsel %vm709_vm0, %v4182_v46, -inf  ;;  %v1145_v52 = vand.u32 2147483647, %v4160_v56 }
 0x2f2   : > { %v4178_v51 = vpop.eup %3037  ;;  %v1430_v58 = vsel %vm709_vm0, %v4172_v42, 0.0  ;;  %1712 = vmax.xlane.f32.xlu2 %v1711_v59  ;;  %v1159_v6 = vand.u32 2147483647, %v4166_v43  ;;  %v1696_v59 = vpop.f32.mrf.mxu3  ;;  %vm1155_vm2 = vweird.f32 %v4166_v43 }
 0x2f3   : > { %v1168_v37 = vadd.f32 %v3034_v26, %v1167_v29  ;;  %1431 = vadd.xlane.f32.xlu1 %v1430_v58  ;;  %v1427_v24 = vsel %vm709_vm0, %v4178_v51, 0.0  ;;  %2811 = vmatmul.msk.bf16.vlgmr.msra.gmra.mxu0 %vm709_vm0, %v1228_v57  ;;  %v4222_v58 = vadd.f32 %v1694_v33, %v3929_v40  ;;  %vm1146_vm5 = vcmp.eq.f32.partialorder %v1145_v52, 8.507059e+37 }
 0x2f4   : > { %v3040_v7 = vpop.eup %3039  ;;  %1428 = vadd.xlane.f32.xlu0 %v1427_v24  ;;  %v1148_v24 = vor.u32 1.1754944e-38, %v1147_v53  ;;  %vm1160_vm6 = vcmp.eq.f32.partialorder %v1159_v6, 8.507059e+37 }
 0x2f5   : > { %v3042_v2 = vpop.eup %3041  ;;  %v1137_v3 = vmul.f32 %v3040_v7, %v4160_v56  ;;  %v1172_v11 = vsel %vm1171_vm12, %v3034_v26, %v1168_v37  ;;  %v1387_v25 = vpop.xlane.xlu0 %1386  ;;  %v1724_v26 = vsub.f32 %v3994_v30, %v4112_v45  ;;  %vm1142_vm14 = vweird.f32 %v3040_v7 }
 0x2f6   : > { %v1151_v18 = vmul.f32 %v3042_v2, %v4166_v43  ;;  %v1390_v27 = vpop.xlane.xlu1 %1389  ;;  %v1177_v23 = vsel %vm1174_vm13, %v1176_v63, %v1172_v11  ;;  %v4206_v41 = vpop.eup %3043  ;;  %vm1156_vm15 = vweird.f32 %v3042_v2  ;;  %v1397_v57 = vsub.f32 %v4055_v12, %v1387_v25  ;;  %vm1143_vm3 = vmor %vm1141_vm1, %vm1142_vm14 }
 0x2f7   : > { %v1138_v61 = vsub.f32 1.0, %v1137_v3  ;;  %v1398_v39 = vsub.f32 %v4058_v13, %v1390_v27  ;;  %v4204_v32 = vmul.f32 %v4031_v62, %v1177_v23  ;;  %v1105_v45 = vsel %vm709_vm0, %v4206_v41, 0.0  ;;  %vm1157_vm4 = vmor %vm1155_vm2, %vm1156_vm15 }
 0x2f8   : > { %v1152_v34 = vsub.f32 1.0, %v1151_v18  ;;  %v1733_v12 = vmul.f32 1.442695, %v1724_v26  ;;  %v1162_v56 = vor.u32 1.1754944e-38, %v1161_v31  ;;  %v1411_v3 = vmul.f32 1.442695, %v1397_v57  ;;  %v2039_v40 = vpop.xlane.xlu2 %2038 }
 0x2f9   : > { %v1139_v13 = vmul.f32 %v3040_v7, %v1138_v61  ;;  %v1413_v29 = vmul.f32 1.442695, %v1398_v39  ;;  %1294 = vst.msk [vmem:[%s4129_s6 + $0x20] sm:$0xff] %vm709_vm0, %v4204_v32  ;;  %v4228_v43 = vadd.f32 %v1696_v59, %v3949_v48  ;;  %v1717_v39 = vsel %vm709_vm0, %v4222_v58, -inf }
 0x2fa   : > { %v1153_v62 = vmul.f32 %v3042_v2, %v1152_v34  ;;  %1106 = vadd.xlane.f32.xlu2 %v1105_v45  ;;  %v1725_v48 = vsub.f32 %v4005_v44, %v4120_v21  ;;  %v4252_v44 = vadd.f32 %v4048_v8, %v3873_v14  ;;  %v1726_v26 = vsub.f32 %v4018_v54, %v4131_v17 }
 0x2fb   : > { %v1140_v30 = vadd.f32 %v3040_v7, %v1139_v13  ;;  %3045 = vpow2.f32 %v1413_v29  ;;  %2053 = vmax.xlane.f32.xlu1 %v2052_v50 }
 0x2fc   : > { %v1154_v37 = vadd.f32 %v3042_v2, %v1153_v62  ;;  %2032 = vmax.xlane.f32.xlu0 %v2031_v22  ;;  %v1723_v22 = vsub.f32 %v3987_v20, %v4103_v38  ;;  %3047 = vpow2.f32 %v1733_v12  ;;  %v1735_v21 = vmul.f32 1.442695, %v1725_v48 }
 0x2fd   : > { %v1144_v63 = vsel %vm1143_vm3, %v3040_v7, %v1140_v30  ;;  %v2057_v7 = vsub.f32 %v4061_v16, %v2039_v40  ;;  %3049 = vpow2.f32 %v1411_v3  ;;  %v2034_v52 = vsel %vm709_vm0, %v4252_v44, -inf }
 0x2fe   : > { %v1149_v33 = vsel %vm1146_vm5, %v1148_v24, %v1144_v63  ;;  %v1158_v11 = vsel %vm1157_vm4, %v3042_v2, %v1154_v37  ;;  %v1731_v16 = vmul.f32 1.442695, %v1723_v22  ;;  %v1737_v53 = vmul.f32 1.442695, %v1726_v26 }
 0x2ff   : > { %v1163_v18 = vsel %vm1160_vm6, %v1162_v56, %v1158_v11  ;;  %v1222_v27 = vmul.f32 %v4044_v4, %v1149_v33  ;;  %v2067_v38 = vmul.f32 1.442695, %v2057_v7 }
 0x300   : > { %v1223_v23 = vmul.f32 %v4046_v5, %v1163_v18  ;;  %v1720_v5 = vsel %vm709_vm0, %v4228_v43, -inf  ;;  %v2042_v25 = vpop.xlane.xlu0 %2041  ;;  %3051 = vpow2.f32 %v1731_v16 }
 0x301   : > { %v4234_v61 = vpop.eup %3045  ;;  %1292 = vst.msk [vmem:[%s4129_s6 + $0x10] sm:$0xff] %vm709_vm0, %v1222_v27  ;;  %3053 = vpow2.f32 %v2067_v38  ;;  %v2058_v34 = vsub.f32 %v4070_v10, %v2042_v25 }
 0x302   : > { %v1436_v4 = vsel %vm709_vm0, %v4234_v61, 0.0  ;;  %v1229_v20 = vpack.c.bf16 %v1223_v23, %v1222_v27  ;;  %1293 = vst.msk [vmem:[%s4129_s6 + $0x18] sm:$0xff] %vm709_vm0, %v1223_v23  ;;  %1721 = vmax.xlane.f32.xlu2 %v1720_v5  ;;  %v4254_v2 = vpop.eup %3047  ;;  %3055 = vpow2.f32 %v1735_v21 }
 0x303   : > { %1718 = vmax.xlane.f32.xlu1 %v1717_v39  ;;  %v4256_v50 = vpop.eup %3049  ;;  %v1750_v14 = vsel %vm709_vm0, %v4254_v2, 0.0  ;;  %v2069_v54 = vmul.f32 1.442695, %v2058_v34  ;;  %3057 = vpow2.f32 %v1737_v53 }
 0x304   : > { %1437 = vadd.xlane.f32.xlu0 %v1436_v4  ;;  %2812 = vmatmul.msk.bf16.gmra.mxu0 %vm709_vm0, %v1229_v20  ;;  %v1433_v8 = vsel %vm709_vm0, %v4256_v50, 0.0 }
 0x305   : > { %3059 = vpow2.f32 %v2069_v54 }
 0x306   : > { %v4267_v31 = vpop.eup %3051 }
 0x307   : > { %v4269_v17 = vpop.eup %3053  ;;  %v1747_v57 = vsel %vm709_vm0, %v4267_v31, 0.0 }
 0x308   : > { %v2045_v13 = vpop.xlane.xlu1 %2044  ;;  %v4271_v10 = vpop.eup %3055  ;;  %v2085_v62 = vsel %vm709_vm0, %v4269_v17, 0.0 }
 0x309   : > { %v2059_v29 = vsub.f32 %v4075_v36, %v2045_v13  ;;  %v1753_v6 = vsel %vm709_vm0, %v4271_v10, 0.0  ;;  %v4280_v45 = vpop.eup %3057 }
 0x30a   : > { %1434 = vadd.xlane.f32.xlu2 %v1433_v8  ;;  %v1756_v36 = vsel %vm709_vm0, %v4280_v45, 0.0 }
 0x30b   : > { %2035 = vmax.xlane.f32.xlu1 %v2034_v52  ;;  %v2071_v30 = vmul.f32 1.442695, %v2059_v29  ;;  %v4282_v59 = vpop.eup %3059 }
 0x30c   : > { %1751 = vadd.xlane.f32.xlu0 %v1750_v14  ;;  %v2088_v37 = vsel %vm709_vm0, %v4282_v59, 0.0 }
 0x30d   : > { %3061 = vpow2.f32 %v2071_v30 }
 0x312   : > { %1748 = vadd.xlane.f32.xlu2 %v1747_v57 }
 0x313   : > { %2086 = vadd.xlane.f32.xlu1 %v2085_v62  ;;  %v4288_v24 = vpop.eup %3061 }
 0x314   : > { %1754 = vadd.xlane.f32.xlu0 %v1753_v6  ;;  %v2091_v12 = vsel %vm709_vm0, %v4288_v24, 0.0 }
 0x31a   : > { %2089 = vadd.xlane.f32.xlu2 %v2088_v37 }
 0x31b   : > { %1757 = vadd.xlane.f32.xlu1 %v1756_v36 }
 0x322   : > { %2092 = vadd.xlane.f32.xlu2 %v2091_v12 }
 0x328   : > { %v1417_v56 = vpop.xlane.xlu2 %1416 }
 0x329   : > { %3063 = vrcp.f32 %v1417_v56  ;;  %v1450_v23 = vand.u32 2147483648, %v1417_v56  ;;  %v1448_v7 = vand.u32 2147483647, %v1417_v56  ;;  %vm1444_vm8 = vweird.f32 %v1417_v56 }
 0x32b   : > { %v1451_v20 = vor.u32 1.1754944e-38, %v1450_v23  ;;  %vm1449_vm10 = vcmp.eq.f32.partialorder %v1448_v7, 8.507059e+37 }
 0x32f   : > { %v3064_v63 = vpop.eup %3063 }
 0x330   : > { %v1440_v3 = vmul.f32 %v3064_v63, %v1417_v56  ;;  %v2048_v40 = vpop.xlane.xlu2 %2047  ;;  %v1420_v33 = vpop.xlane.xlu0 %1419  ;;  %vm1445_vm7 = vweird.f32 %v3064_v63 }
 0x331   : > { %v2060_v11 = vsub.f32 %v4089_v0, %v2048_v40  ;;  %3065 = vrcp.f32 %v1420_v33  ;;  %vm1446_vm9 = vmor %vm1444_vm8, %vm1445_vm7  ;;  %v1464_v25 = vand.u32 2147483648, %v1420_v33  ;;  %v1462_v52 = vand.u32 2147483647, %v1420_v33 }
 0x332   : > { %v1441_v18 = vsub.f32 1.0, %v1440_v3  ;;  %vm1458_vm12 = vweird.f32 %v1420_v33 }
 0x333   : > { %v2073_v27 = vmul.f32 1.442695, %v2060_v11  ;;  %v1465_v54 = vor.u32 1.1754944e-38, %v1464_v25  ;;  %vm1463_vm14 = vcmp.eq.f32.partialorder %v1462_v52, 8.507059e+37 }
 0x334   : > { %v1442_v22 = vmul.f32 %v3064_v63, %v1441_v18 }
 0x335   : > { %3067 = vpow2.f32 %v2073_v27 }
 0x336   : > { %v1443_v39 = vadd.f32 %v3064_v63, %v1442_v22 }
 0x337   : > { %v3066_v48 = vpop.eup %3065 }
 0x338   : > { %v1447_v4 = vsel %vm1446_vm9, %v3064_v63, %v1443_v39  ;;  %v1454_v5 = vmul.f32 %v3066_v48, %v1420_v33  ;;  %v1101_v16 = vpop.xlane.xlu0 %1100  ;;  %vm1459_vm11 = vweird.f32 %v3066_v48 }
 0x339   : > { %3069 = vrcp.f32 %v1101_v16  ;;  %v1452_v38 = vsel %vm1449_vm10, %v1451_v20, %v1447_v4  ;;  %vm1460_vm13 = vmor %vm1458_vm12, %vm1459_vm11  ;;  %v1189_v36 = vand.u32 2147483648, %v1101_v16  ;;  %v1187_v56 = vand.u32 2147483647, %v1101_v16 }
 0x33a   : > { %v1455_v0 = vsub.f32 1.0, %v1454_v5  ;;  %v1551_v26 = vmul.f32 %v4083_v55, %v1452_v38  ;;  %vm1183_vm1 = vweird.f32 %v1101_v16 }
 0x33b   : > { %v4293_v21 = vpop.eup %3067  ;;  %vm1188_vm3 = vcmp.eq.f32.partialorder %v1187_v56, 8.507059e+37 }
 0x33c   : > { %v1456_v34 = vmul.f32 %v3066_v48, %v1455_v0  ;;  %v2094_v14 = vsel %vm709_vm0, %v4293_v21, 0.0  ;;  %2823 = vst.msk [vmem:[%s4129_s6 + $0x40] sm:$0xff] %vm709_vm0, %v1551_v26 }
 0x33d   : > { %2095 = vadd.xlane.f32.xlu0 %v2094_v14 }
 0x33e   : > { %v1457_v8 = vadd.f32 %v3066_v48, %v1456_v34 }
 0x33f   : > { %v3070_v53 = vpop.eup %3069 }
 0x340   : > { %v1461_v13 = vsel %vm1460_vm13, %v3066_v48, %v1457_v8  ;;  %v1179_v29 = vmul.f32 %v3070_v53, %v1101_v16  ;;  %v1716_v62 = vpop.xlane.xlu0 %1715  ;;  %vm1184_vm15 = vweird.f32 %v3070_v53 }
 0x341   : > { %v1728_v55 = vsub.f32 %v4106_v49, %v1716_v62  ;;  %v1466_v6 = vsel %vm1463_vm14, %v1465_v54, %v1461_v13  ;;  %vm1185_vm2 = vmor %vm1183_vm1, %vm1184_vm15  ;;  %v1190_v49 = vor.u32 1.1754944e-38, %v1189_v36 }
 0x342   : > { %v1180_v57 = vsub.f32 1.0, %v1179_v29  ;;  %v1552_v30 = vmul.f32 %v4091_v1, %v1466_v6 }
 0x343   : > { %v1741_v37 = vmul.f32 1.442695, %v1728_v55 }
 0x344   : > { %v1181_v12 = vmul.f32 %v3070_v53, %v1180_v57  ;;  %v1559_v63 = vpack.c.bf16 %v1552_v30, %v1551_v26  ;;  %2824 = vst.msk [vmem:[%s4129_s6 + $0x48] sm:$0xff] %vm709_vm0, %v1552_v30 }
 0x345   : > { %3071 = vpow2.f32 %v1741_v37 }
 0x346   : > { %v1182_v3 = vadd.f32 %v3070_v53, %v1181_v12  ;;  %2819 = vmatmul.msk.bf16.vlgmr.msrb.gmra.mxu2 %vm709_vm0, %v1559_v63 }
 0x348   : > { %v2051_v40 = vpop.xlane.xlu0 %2050  ;;  %v1186_v33 = vsel %vm1185_vm2, %v3070_v53, %v1182_v3 }
 0x349   : > { %v2061_v1 = vsub.f32 %v4115_v28, %v2051_v40  ;;  %v1191_v11 = vsel %vm1188_vm3, %v1190_v49, %v1186_v33 }
 0x34a   : > { %v1225_v18 = vmul.f32 %v4099_v9, %v1191_v11 }
 0x34b   : > { %v4307_v27 = vpop.eup %3071  ;;  %v2075_v22 = vmul.f32 1.442695, %v2061_v1 }
 0x34c   : > { %v1762_v23 = vsel %vm709_vm0, %v4307_v27, 0.0  ;;  %v1230_v7 = vpack.c.bf16 %v1225_v18, %v4204_v32  ;;  %1295 = vst.msk [vmem:[%s4129_s6 + $0x28] sm:$0xff] %vm709_vm0, %v1225_v18 }
 0x34d   : > { %3073 = vpow2.f32 %v2075_v22  ;;  %1763 = vadd.xlane.f32.xlu2 %v1762_v23 }
 0x34e   : > { %2813 = vmatmul.msk.bf16.gmra.mxu0 %vm709_vm0, %v1230_v7 }
 0x353   : > { %v4315_v39 = vpop.eup %3073 }
 0x354   : > { %v2097_v28 = vsel %vm709_vm0, %v4315_v39, 0.0 }
 0x355   : > { %2098 = vadd.xlane.f32.xlu0 %v2097_v28  ;;  %v1423_v9 = vpop.xlane.xlu1 %1422 }
 0x356   : > { %3075 = vrcp.f32 %v1423_v9  ;;  %v1478_v25 = vand.u32 2147483648, %v1423_v9  ;;  %vm1472_vm5 = vweird.f32 %v1423_v9  ;;  %v1476_v34 = vand.u32 2147483647, %v1423_v9 }
 0x358   : > { %v1479_v6 = vor.u32 1.1754944e-38, %v1478_v25  ;;  %vm1477_vm7 = vcmp.eq.f32.partialorder %v1476_v34, 8.507059e+37 }
 0x35c   : > { %v3076_v48 = vpop.eup %3075 }
 0x35d   : > { %v1468_v4 = vmul.f32 %v3076_v48, %v1423_v9  ;;  %v1104_v20 = vpop.xlane.xlu1 %1103  ;;  %v1426_v5 = vpop.xlane.xlu2 %1425  ;;  %vm1473_vm4 = vweird.f32 %v3076_v48 }
 0x35e   : > { %3077 = vrcp.f32 %v1104_v20  ;;  %vm4323_vm6 = vmor %vm1472_vm5, %vm1473_vm4  ;;  %vm1197_vm8 = vweird.f32 %v1104_v20  ;;  %v1201_v37 = vand.u32 2147483647, %v1104_v20  ;;  %v1203_v3 = vand.u32 2147483648, %v1104_v20 }
 0x35f   : > { %v1469_v32 = vsub.f32 1.0, %v1468_v4  ;;  %3079 = vrcp.f32 %v1426_v5  ;;  %v1490_v33 = vand.u32 2147483647, %v1426_v5  ;;  %v1492_v1 = vand.u32 2147483648, %v1426_v5 }
 0x360   : > { %vm4355_vm12 = vcmp.eq.f32.partialorder %v1201_v37, 8.507059e+37  ;;  %vm1486_vm13 = vweird.f32 %v1426_v5  ;;  %v1204_v4 = vor.u32 1.1754944e-38, %v1203_v3 }
 0x361   : > { %v1470_v16 = vmul.f32 %v3076_v48, %v1469_v32  ;;  %vm4373_vm15 = vcmp.eq.f32.partialorder %v1490_v33, 8.507059e+37 }
 0x363   : > { %v1471_v0 = vadd.f32 %v3076_v48, %v1470_v16 }
 0x364   : > { %v3078_v38 = vpop.eup %3077 }
 0x365   : > { %v4319_v26 = vpop.eup %3079  ;;  %v1193_v52 = vmul.f32 %v3078_v38, %v1104_v20  ;;  %v1713_v54 = vpop.xlane.xlu2 %1712  ;;  %v1475_v55 = vsel %vm4323_vm6, %v3076_v48, %v1471_v0  ;;  %vm1198_vm9 = vweird.f32 %v3078_v38 }
 0x366   : > { %v4321_v14 = vpop.xlane.xlu1 %1431  ;;  %v1482_v53 = vmul.f32 %v4319_v26, %v1426_v5  ;;  %v1727_v62 = vsub.f32 %v4164_v19, %v1713_v54  ;;  %v1480_v56 = vsel %vm1477_vm7, %v1479_v6, %v1475_v55  ;;  %vm1487_vm10 = vweird.f32 %v4319_v26  ;;  %vm4344_vm11 = vmor %vm1197_vm8, %vm1198_vm9 }
 0x367   : > { %3081 = vrcp.f32 %v4321_v14  ;;  %v4329_v13 = vpop.xlane.xlu0 %1428  ;;  %v1194_v29 = vsub.f32 1.0, %v1193_v52  ;;  %v4337_v19 = vmul.f32 %v4137_v47, %v1480_v56  ;;  %vm4366_vm14 = vmor %vm1486_vm13, %vm1487_vm10  ;;  %v1493_v5 = vor.u32 1.1754944e-38, %v1492_v1 }
 0x368   : > { %v1483_v57 = vsub.f32 1.0, %v1482_v53  ;;  %3083 = vrcp.f32 %v4329_v13  ;;  %v1739_v36 = vmul.f32 1.442695, %v1727_v62  ;;  %vm1514_vm1 = vweird.f32 %v4321_v14 }
 0x369   : > { %v1195_v30 = vmul.f32 %v3078_v38, %v1194_v29  ;;  %2825 = vst.msk [vmem:[%s4129_s6 + $0x50] sm:$0xff] %vm709_vm0, %v4337_v19  ;;  %v1520_v54 = vand.u32 2147483648, %v4321_v14  ;;  %v1504_v62 = vand.u32 2147483647, %v4329_v13  ;;  %v1506_v55 = vand.u32 2147483648, %v4329_v13 }
 0x36a   : > { %v1484_v12 = vmul.f32 %v4319_v26, %v1483_v57  ;;  %3085 = vpow2.f32 %v1739_v36  ;;  %v1518_v37 = vand.u32 2147483647, %v4321_v14  ;;  %vm1500_vm4 = vweird.f32 %v4329_v13 }
 0x36b   : > { %v1196_v63 = vadd.f32 %v3078_v38, %v1195_v30  ;;  %vm4423_vm6 = vcmp.eq.f32.partialorder %v1504_v62, 8.507059e+37 }
 0x36c   : > { %v1485_v40 = vadd.f32 %v4319_v26, %v1484_v12  ;;  %vm1519_vm8 = vcmp.eq.f32.partialorder %v1518_v37, 8.507059e+37 }
 0x36d   : > { %v4339_v49 = vpop.eup %3081  ;;  %v4360_v28 = vpop.xlane.xlu2 %1106  ;;  %v1200_v48 = vsel %vm4344_vm11, %v3078_v38, %v1196_v63 }
 0x36e   : > { %v1510_v18 = vmul.f32 %v4339_v49, %v4321_v14  ;;  %v2054_v22 = vpop.xlane.xlu1 %2053  ;;  %v4353_v47 = vpop.eup %3083  ;;  %3087 = vrcp.f32 %v4360_v28  ;;  %v1489_v38 = vsel %vm4366_vm14, %v4319_v26, %v1485_v40  ;;  %v1205_v53 = vsel %vm4355_vm12, %v1204_v4, %v1200_v48 }
 0x36f   : > { %v2062_v7 = vsub.f32 %v4189_v60, %v2054_v22  ;;  %v2033_v9 = vpop.xlane.xlu0 %2032  ;;  %v1496_v16 = vmul.f32 %v4353_v47, %v4329_v13  ;;  %vm1515_vm2 = vweird.f32 %v4339_v49  ;;  %v4399_v30 = vmul.f32 %v4147_v35, %v1205_v53 }
 0x370   : > { %v1511_v32 = vsub.f32 1.0, %v1510_v18  ;;  %v4380_v25 = vpop.eup %3085  ;;  %v2055_v8 = vsub.f32 %v4182_v46, %v2033_v9  ;;  %v1494_v46 = vsel %vm4373_vm15, %v1493_v5, %v1489_v38  ;;  %vm1501_vm3 = vweird.f32 %v4353_v47  ;;  %vm4419_vm5 = vmor %vm1514_vm1, %vm1515_vm2 }
 0x371   : > { %v2077_v0 = vmul.f32 1.442695, %v2062_v7  ;;  %v1497_v52 = vsub.f32 1.0, %v1496_v16  ;;  %v1759_v29 = vsel %vm709_vm0, %v4380_v25, 0.0  ;;  %v1554_v57 = vmul.f32 %v4151_v15, %v1494_v46  ;;  %1296 = vst.msk [vmem:[%s4129_s6 + $0x30] sm:$0xff] %vm709_vm0, %v4399_v30  ;;  %vm1502_vm7 = vmor %vm1500_vm4, %vm1501_vm3 }
 0x372   : > { %v1512_v34 = vmul.f32 %v4339_v49, %v1511_v32  ;;  %1760 = vadd.xlane.f32.xlu1 %v1759_v29  ;;  %v2063_v56 = vmul.f32 1.442695, %v2055_v8  ;;  %v1521_v13 = vor.u32 1.1754944e-38, %v1520_v54  ;;  %v1507_v14 = vor.u32 1.1754944e-38, %v1506_v55 }
 0x373   : > { %3089 = vpow2.f32 %v2077_v0  ;;  %v1498_v26 = vmul.f32 %v4353_v47, %v1497_v52  ;;  %v1560_v15 = vpack.c.bf16 %v1554_v57, %v4337_v19  ;;  %2826 = vst.msk [vmem:[%s4129_s6 + $0x58] sm:$0xff] %vm709_vm0, %v1554_v57  ;;  %v1217_v60 = vand.u32 2147483648, %v4360_v28 }
 0x374   : > { %v1513_v6 = vadd.f32 %v4339_v49, %v1512_v34  ;;  %v4401_v36 = vpop.eup %3087  ;;  %vm1211_vm10 = vweird.f32 %v4360_v28  ;;  %v1215_v0 = vand.u32 2147483647, %v4360_v28 }
 0x375   : > { %v1499_v12 = vadd.f32 %v4353_v47, %v1498_v26  ;;  %v1207_v3 = vmul.f32 %v4401_v36, %v4360_v28  ;;  %v1722_v40 = vpop.xlane.xlu2 %1721  ;;  %2820 = vmatmul.msk.bf16.gmra.mxu2 %vm709_vm0, %v1560_v15  ;;  %vm1212_vm9 = vweird.f32 %v4401_v36  ;;  %v1218_v29 = vor.u32 1.1754944e-38, %v1217_v60 }
 0x376   : > { %v1719_v63 = vpop.xlane.xlu1 %1718  ;;  %v1730_v19 = vsub.f32 %v4228_v43, %v1722_v40  ;;  %v1517_v23 = vsel %vm4419_vm5, %v4339_v49, %v1513_v6  ;;  %vm4466_vm11 = vmor %vm1211_vm10, %vm1212_vm9  ;;  %vm1216_vm12 = vcmp.eq.f32.partialorder %v1215_v0, 8.507059e+37 }
 0x377   : > { %v1729_v35 = vsub.f32 %v4222_v58, %v1719_v63  ;;  %v4413_v33 = vpop.xlane.xlu0 %1437  ;;  %v1208_v18 = vsub.f32 1.0, %v1207_v3  ;;  %v1503_v9 = vsel %vm1502_vm7, %v4353_v47, %v1499_v12  ;;  %v1522_v20 = vsel %vm1519_vm8, %v1521_v13, %v1517_v23 }
 0x378   : > { %3091 = vrcp.f32 %v4413_v33  ;;  %v1745_v43 = vmul.f32 1.442695, %v1730_v19  ;;  %v1508_v4 = vsel %vm4423_vm6, %v1507_v14, %v1503_v9  ;;  %v1556_v16 = vmul.f32 %v4172_v42, %v1522_v20 }
 0x379   : > { %v4432_v58 = vpop.eup %3089  ;;  %v1743_v22 = vmul.f32 1.442695, %v1729_v35  ;;  %3093 = vpow2.f32 %v2063_v56  ;;  %v1209_v48 = vmul.f32 %v4401_v36, %v1208_v18  ;;  %v1555_v49 = vmul.f32 %v4178_v51, %v1508_v4 }
 0x37a   : > { %v2100_v7 = vsel %vm709_vm0, %v4432_v58, 0.0  ;;  %2828 = vst.msk [vmem:[%s4129_s6 + $0x68] sm:$0xff] %vm709_vm0, %v1556_v16  ;;  %v1548_v57 = vand.u32 2147483648, %v4413_v33  ;;  %v1546_v11 = vand.u32 2147483647, %v4413_v33  ;;  %vm1542_vm14 = vweird.f32 %v4413_v33 }
 0x37b   : > { %3095 = vpow2.f32 %v1743_v22  ;;  %2101 = vadd.xlane.f32.xlu1 %v2100_v7  ;;  %v1210_v32 = vadd.f32 %v4401_v36, %v1209_v48  ;;  %2827 = vst.msk [vmem:[%s4129_s6 + $0x60] sm:$0xff] %vm709_vm0, %v1555_v49  ;;  %v1561_v1 = vpack.c.bf16 %v1556_v16, %v1555_v49 }
 0x37c   : > { %3097 = vpow2.f32 %v1745_v43  ;;  %v4510_v18 = vor.u32 1.1754944e-38, %v1548_v57  ;;  %vm4558_vm10 = vcmp.eq.f32.partialorder %v1546_v11, 8.507059e+37 }
 0x37d   : > { %v4458_v51 = vpop.xlane.xlu2 %1434  ;;  %v1214_v53 = vsel %vm4466_vm11, %v4401_v36, %v1210_v32 }
 0x37e   : > { %v4450_v47 = vpop.eup %3091  ;;  %v2036_v5 = vpop.xlane.xlu1 %2035  ;;  %3099 = vrcp.f32 %v4458_v51  ;;  %v1219_v6 = vsel %vm1216_vm12, %v1218_v29, %v1214_v53  ;;  %v1534_v12 = vand.u32 2147483648, %v4458_v51  ;;  %v1532_v23 = vand.u32 2147483647, %v4458_v51 }
 0x37f   : > { %v2056_v38 = vsub.f32 %v4252_v44, %v2036_v5  ;;  %v4460_v34 = vpop.xlane.xlu0 %1751  ;;  %v4464_v42 = vpop.eup %3093  ;;  %v1538_v8 = vmul.f32 %v4450_v47, %v4413_v33  ;;  %v1227_v36 = vmul.f32 %v4206_v41, %v1219_v6  ;;  %vm1543_vm13 = vweird.f32 %v4450_v47 }
 0x380   : > { %3101 = vrcp.f32 %v4460_v34  ;;  %v2079_v62 = vsel %vm709_vm0, %v4464_v42, 0.0  ;;  %v1794_v56 = vand.u32 2147483647, %v4460_v34  ;;  %v1796_v63 = vand.u32 2147483648, %v4460_v34  ;;  %vm4579_vm12 = vmor %vm1542_vm14, %vm1543_vm13 }
 0x381   : > { %v4473_v28 = vpop.eup %3095  ;;  %v2065_v44 = vmul.f32 1.442695, %v2056_v38  ;;  %v1539_v55 = vsub.f32 1.0, %v1538_v8  ;;  %v1231_v40 = vpack.c.bf16 %v1227_v36, %v4399_v30  ;;  %1297 = vst.msk [vmem:[%s4129_s6 + $0x38] sm:$0xff] %vm709_vm0, %v1227_v36  ;;  %vm1790_vm15 = vweird.f32 %v4460_v34 }
 0x382   : > { %v4479_v54 = vpop.eup %3097  ;;  %v1765_v26 = vsel %vm709_vm0, %v4473_v28, 0.0  ;;  %vm1528_vm1 = vweird.f32 %v4458_v51  ;;  %v4522_v9 = vor.u32 1.1754944e-38, %v1534_v12  ;;  %vm4524_vm2 = vcmp.eq.f32.partialorder %v1794_v56, 8.507059e+37 }
 0x383   : > { %3103 = vpow2.f32 %v2065_v44  ;;  %1766 = vadd.xlane.f32.xlu2 %v1765_v26  ;;  %v1768_v46 = vsel %vm709_vm0, %v4479_v54, 0.0  ;;  %2080 = vadd.xlane.f32.xlu1 %v2079_v62  ;;  %v1540_v13 = vmul.f32 %v4450_v47, %v1539_v55  ;;  %v1797_v4 = vor.u32 1.1754944e-38, %v1796_v63 }
 0x384   : > { %1769 = vadd.xlane.f32.xlu0 %v1768_v46  ;;  %v4489_v37 = vpop.eup %3099  ;;  %2814 = vmatmul.msk.bf16.gmra.mxu0 %vm709_vm0, %v1231_v40  ;;  %vm4538_vm6 = vcmp.eq.f32.partialorder %v1532_v23, 8.507059e+37 }
 0x385   : > { %v1524_v35 = vmul.f32 %v4489_v37, %v4458_v51  ;;  %v4502_v41 = vpop.xlane.xlu2 %1748  ;;  %2821 = vmatmul.msk.bf16.gmra.mxu2 %vm709_vm0, %v1561_v1  ;;  %v4530_v20 = vadd.f32 %v4450_v47, %v1540_v13  ;;  %vm1529_vm4 = vweird.f32 %v4489_v37 }
 0x386   : > { %v4494_v3 = vpop.xlane.xlu1 %2086  ;;  %v3102_v15 = vpop.eup %3101  ;;  %vm1776_vm8 = vweird.f32 %v4502_v41  ;;  %v1780_v29 = vand.u32 2147483647, %v4502_v41  ;;  %v1782_v26 = vand.u32 2147483648, %v4502_v41 }
 0x387   : > { %3105 = vrcp.f32 %v4494_v3  ;;  %v1786_v19 = vmul.f32 %v3102_v15, %v4460_v34  ;;  %v4507_v14 = vpop.xlane.xlu0 %1754  ;;  %v1525_v30 = vsub.f32 1.0, %v1524_v35  ;;  %v2140_v7 = vand.u32 2147483647, %v4494_v3 }
 0x388   : > { %3107 = vrcp.f32 %v4502_v41  ;;  %vm1791_vm3 = vweird.f32 %v3102_v15  ;;  %vm2136_vm5 = vweird.f32 %v4494_v3  ;;  %v2142_v60 = vand.u32 2147483648, %v4494_v3 }
 0x389   : > { %v4515_v22 = vpop.eup %3103  ;;  %v1787_v43 = vsub.f32 1.0, %v1786_v19  ;;  %3109 = vrcp.f32 %v4507_v14  ;;  %v1526_v49 = vmul.f32 %v4489_v37, %v1525_v30  ;;  %vm4543_vm7 = vcmp.eq.f32.partialorder %v2140_v7, 8.507059e+37  ;;  %vm1792_vm9 = vmor %vm1790_vm15, %vm1791_vm3 }
 0x38a   : > { %v2082_v5 = vsel %vm709_vm0, %v4515_v22, 0.0  ;;  %v1808_v62 = vand.u32 2147483647, %v4507_v14  ;;  %v1810_v63 = vand.u32 2147483648, %v4507_v14  ;;  %v2143_v11 = vor.u32 1.1754944e-38, %v2142_v60  ;;  %vm4592_vm3 = vmor %vm1528_vm1, %vm1529_vm4 }
 0x38b   : > { %v1788_v32 = vmul.f32 %v3102_v15, %v1787_v43  ;;  %2083 = vadd.xlane.f32.xlu2 %v2082_v5  ;;  %v1527_v6 = vadd.f32 %v4489_v37, %v1526_v49  ;;  %vm4583_vm15 = vcmp.eq.f32.partialorder %v1780_v29, 8.507059e+37 }
 0x38c   : > { %v1811_v51 = vor.u32 1.1754944e-38, %v1810_v63 }
 0x38d   : > { %v3106_v16 = vpop.eup %3105  ;;  %v1789_v38 = vadd.f32 %v3102_v15, %v1788_v32  ;;  %v4556_v55 = vpop.xlane.xlu2 %2089  ;;  %v1531_v49 = vsel %vm4592_vm3, %v4489_v37, %v1527_v6  ;;  %v1545_v32 = vsel %vm4579_vm12, %v4450_v47, %v4530_v20 }
 0x38e   : > { %v2132_v52 = vmul.f32 %v3106_v16, %v4494_v3  ;;  %v4548_v44 = vpop.xlane.xlu1 %1757  ;;  %v3108_v53 = vpop.eup %3107  ;;  %vm2137_vm11 = vweird.f32 %v3106_v16  ;;  %v1536_v47 = vsel %vm4538_vm6, %v4522_v9, %v1531_v49  ;;  %v1550_v0 = vsel %vm4558_vm10, %v4510_v18, %v1545_v32 }
 0x38f   : > { %3111 = vrcp.f32 %v4548_v44  ;;  %v1793_v57 = vsel %vm1792_vm9, %v3102_v15, %v1789_v38  ;;  %v1772_v34 = vmul.f32 %v3108_v53, %v4502_v41  ;;  %v4564_v12 = vpop.eup %3109  ;;  %vm1777_vm13 = vweird.f32 %v3108_v53  ;;  %vm2138_vm14 = vmor %vm2136_vm5, %vm2137_vm11 }
 0x390   : > { %v2133_v36 = vsub.f32 1.0, %v2132_v52  ;;  %v1798_v56 = vsel %vm4524_vm2, %v1797_v4, %v1793_v57  ;;  %3113 = vrcp.f32 %v4556_v55  ;;  %v1800_v15 = vmul.f32 %v4564_v12, %v4507_v14  ;;  %vm1778_vm1 = vmor %vm1776_vm8, %vm1777_vm13 }
 0x391   : > { %v4571_v35 = vmul.f32 %v4254_v2, %v1798_v56  ;;  %v1773_v1 = vsub.f32 1.0, %v1772_v34  ;;  %v1783_v2 = vor.u32 1.1754944e-38, %v1782_v26  ;;  %vm1804_vm2 = vweird.f32 %v4507_v14 }
 0x392   : > { %v2134_v40 = vmul.f32 %v3106_v16, %v2133_v36  ;;  %v1801_v43 = vsub.f32 1.0, %v1800_v15  ;;  %vm4602_vm9 = vcmp.eq.f32.partialorder %v1808_v62, 8.507059e+37  ;;  %v1822_v4 = vand.u32 2147483647, %v4548_v44 }
 0x393   : > { %2840 = vst.msk [vmem:[%s4129_s6 + $0x88] sm:$0xff] %vm709_vm0, %v4571_v35  ;;  %v1774_v23 = vmul.f32 %v3108_v53, %v1773_v1  ;;  %vm1805_vm4 = vweird.f32 %v4564_v12  ;;  %v1824_v37 = vand.u32 2147483648, %v4548_v44  ;;  %v1558_v57 = vmul.f32 %v4234_v61, %v1550_v0 }
 0x394   : > { %v2135_v33 = vadd.f32 %v3106_v16, %v2134_v40  ;;  %v1802_v3 = vmul.f32 %v4564_v12, %v1801_v43  ;;  %vm1818_vm6 = vweird.f32 %v4548_v44  ;;  %v2156_v18 = vand.u32 2147483648, %v4556_v55 }
 0x395   : > { %v3112_v7 = vpop.eup %3111  ;;  %v1775_v5 = vadd.f32 %v3108_v53, %v1774_v23  ;;  %v2093_v8 = vpop.xlane.xlu2 %2092  ;;  %v1825_v36 = vor.u32 1.1754944e-38, %v1824_v37  ;;  %v2154_v56 = vand.u32 2147483647, %v4556_v55  ;;  %vm1823_vm11 = vcmp.eq.f32.partialorder %v1822_v4, 8.507059e+37  ;;  %2830 = vst.msk [vmem:[%s4129_s6 + $0x78] sm:$0xff] %vm709_vm0, %v1558_v57 }
 0x396   : > { %v2139_v60 = vsel %vm2138_vm14, %v3106_v16, %v2135_v33  ;;  %v1814_v38 = vmul.f32 %v3112_v7, %v4548_v44  ;;  %v3114_v52 = vpop.eup %3113  ;;  %vm1819_vm5 = vweird.f32 %v3112_v7  ;;  %v1803_v62 = vadd.f32 %v4564_v12, %v1802_v3 }
 0x397   : > { %v2144_v29 = vsel %vm4543_vm7, %v2143_v11, %v2139_v60  ;;  %v1779_v16 = vsel %vm1778_vm1, %v3108_v53, %v1775_v5  ;;  %v2146_v6 = vmul.f32 %v3114_v52, %v4556_v55  ;;  %v1557_v53 = vmul.f32 %v4256_v50, %v1536_v47  ;;  %vm4649_vm7 = vmor %vm1804_vm2, %vm1805_vm4 }
 0x398   : > { %v4627_v20 = vmul.f32 %v4269_v17, %v2144_v29  ;;  %v1815_v26 = vsub.f32 1.0, %v1814_v38  ;;  %v1784_v41 = vsel %vm4583_vm15, %v1783_v2, %v1779_v16  ;;  %3115 = vrcp.f32 %v2093_v8  ;;  %vm1820_vm8 = vmor %vm1818_vm6, %vm1819_vm5 }
 0x399   : > { %v1883_v17 = vmul.f32 %v4267_v31, %v1784_v41  ;;  %v2147_v34 = vsub.f32 1.0, %v2146_v6  ;;  %v1562_v61 = vpack.c.bf16 %v1558_v57, %v1557_v53  ;;  %vm2151_vm10 = vweird.f32 %v3114_v52  ;;  %2829 = vst.msk [vmem:[%s4129_s6 + $0x70] sm:$0xff] %vm709_vm0, %v1557_v53  ;;  %v1253_v41 = vpop.f32.mrf.mxu0 }
 0x39a   : > { %2857 = vst.msk [vmem:[%s4129_s6 + $0xd0] sm:$0xff] %vm709_vm0, %v4627_v20  ;;  %v1816_v9 = vmul.f32 %v3112_v7, %v1815_v26  ;;  %v1807_v14 = vsel %vm4649_vm7, %v4564_v12, %v1803_v62  ;;  %vm2150_vm12 = vweird.f32 %v4556_v55  ;;  %v2157_v15 = vor.u32 1.1754944e-38, %v2156_v18  ;;  %v4687_v26 = vld [vmem:[%s5114_s14] sm:$0xf] }
 0x39b   : > { %2839 = vst.msk [vmem:[%s4129_s6 + $0x80] sm:$0xff] %vm709_vm0, %v1883_v17  ;;  %v1891_v44 = vpack.c.bf16 %v4571_v35, %v1883_v17  ;;  %v2148_v46 = vmul.f32 %v3114_v52, %v2147_v34  ;;  %2822 = vmatmul.msk.bf16.gmra.mxu2 %vm709_vm0, %v1562_v61  ;;  %v1812_v63 = vsel %vm4602_vm9, %v1811_v51, %v1807_v14  ;;  %vm2152_vm15 = vmor %vm2150_vm12, %vm2151_vm10  ;;  %vm2155_vm2 = vcmp.eq.f32.partialorder %v2154_v56, 8.507059e+37 }
 0x39c   : > { %v1817_v50 = vadd.f32 %v3112_v7, %v1816_v9  ;;  %v1885_v12 = vmul.f32 %v4271_v10, %v1812_v63  ;;  %v2170_v55 = vand.u32 2147483648, %v2093_v8  ;;  %v2168_v43 = vand.u32 2147483647, %v2093_v8 }
 0x39d   : > { %2835 = vmatmul.msk.bf16.vlgmr.msrb.gmra.mxu0 %vm709_vm0, %v1891_v44  ;;  %v2149_v40 = vadd.f32 %v3114_v52, %v2148_v46  ;;  %vm2164_vm13 = vweird.f32 %v2093_v8  ;;  %v4693_v6 = vperm.slane %v4687_v26, 0  ;;  %v4696_v0 = vperm.slane %v4687_v26, 1 }
 0x39e   : > { %v1821_v35 = vsel %vm1820_vm8, %v3112_v7, %v1817_v50  ;;  %v3116_v11 = vpop.eup %3115  ;;  %2841 = vst.msk [vmem:[%s4129_s6 + $0x90] sm:$0xff] %vm709_vm0, %v1885_v12  ;;  %v2171_v7 = vor.u32 1.1754944e-38, %v2170_v55  ;;  %vm2169_vm9 = vcmp.eq.f32.partialorder %v2168_v43, 8.507059e+37 }
 0x39f   : > { %v1826_v1 = vsel %vm1823_vm11, %v1825_v36, %v1821_v35  ;;  %v2153_v19 = vsel %vm2152_vm15, %v3114_v52, %v2149_v40  ;;  %v2160_v30 = vmul.f32 %v3116_v11, %v2093_v8  ;;  %vm2165_vm3 = vweird.f32 %v3116_v11 }
 0x3a0   : > { %v1886_v13 = vmul.f32 %v4280_v45, %v1826_v1  ;;  %v2158_v2 = vsel %vm2155_vm2, %v2157_v15, %v2153_v19  ;;  %vm2166_vm14 = vmor %vm2164_vm13, %vm2165_vm3  ;;  %v1274_v36 = vmul.f32 %v4693_v6, %v1253_v41 }
 0x3a1   : > { %v2218_v33 = vmul.f32 %v4282_v59, %v2158_v2  ;;  %v2161_v23 = vsub.f32 1.0, %v2160_v30  ;;  %v1255_v56 = vpop.f32.mrf.mxu0 }
 0x3a2   : > { %2842 = vst.msk [vmem:[%s4129_s6 + $0x98] sm:$0xff] %vm709_vm0, %v1886_v13  ;;  %v1892_v49 = vpack.c.bf16 %v1886_v13, %v1885_v12  ;;  %v1275_v12 = vmul.f32 %v4693_v6, %v1255_v56 }
 0x3a3   : > { %2858 = vst.msk [vmem:[%s4129_s6 + $0xd8] sm:$0xff] %vm709_vm0, %v2218_v33  ;;  %v2162_v10 = vmul.f32 %v3116_v11, %v2161_v23  ;;  %v2224_v48 = vpack.c.bf16 %v2218_v33, %v4627_v20 }
 0x3a5   : > { %v2163_v45 = vadd.f32 %v3116_v11, %v2162_v10 }
 0x3a7   : > { %v2167_v51 = vsel %vm2166_vm14, %v3116_v11, %v2163_v45 }
 0x3a8   : > { %v2172_v4 = vsel %vm2169_vm9, %v2171_v7, %v2167_v51 }
 0x3a9   : > { %v2219_v59 = vmul.f32 %v4288_v24, %v2172_v4 }
 0x3ab   : > { %2852 = vmatmul.msk.bf16.vlgmr.msra.gmra.mxu2 %vm709_vm0, %v2224_v48  ;;  %2859 = vst.msk [vmem:[%s4129_s6 + $0xe0] sm:$0xff] %vm709_vm0, %v2219_v59 }
 0x3ad   : > { %2836 = vmatmul.msk.bf16.gmra.mxu0 %vm709_vm0, %v1892_v49 }
 0x3b0   : > { %v2096_v32 = vpop.xlane.xlu0 %2095 }
 0x3b1   : > { %3117 = vrcp.f32 %v2096_v32  ;;  %v2184_v52 = vand.u32 2147483648, %v2096_v32  ;;  %v2182_v29 = vand.u32 2147483647, %v2096_v32  ;;  %vm2178_vm4 = vweird.f32 %v2096_v32 }
 0x3b3   : > { %v2185_v24 = vor.u32 1.1754944e-38, %v2184_v52  ;;  %vm2183_vm6 = vcmp.eq.f32.partialorder %v2182_v29, 8.507059e+37 }
 0x3b7   : > { %v3118_v60 = vpop.eup %3117 }
 0x3b8   : > { %v2174_v5 = vmul.f32 %v3118_v60, %v2096_v32  ;;  %vm2179_vm1 = vweird.f32 %v3118_v60 }
 0x3b9   : > { %vm2180_vm5 = vmor %vm2178_vm4, %vm2179_vm1 }
 0x3ba   : > { %v2175_v3 = vsub.f32 1.0, %v2174_v5 }
 0x3bc   : > { %v2176_v38 = vmul.f32 %v3118_v60, %v2175_v3 }
 0x3be   : > { %v2177_v37 = vadd.f32 %v3118_v60, %v2176_v38 }
 0x3c0   : > { %v1764_v47 = vpop.xlane.xlu2 %1763  ;;  %v2181_v20 = vsel %vm2180_vm5, %v3118_v60, %v2177_v37 }
 0x3c1   : > { %3119 = vrcp.f32 %v1764_v47  ;;  %v2186_v16 = vsel %vm2183_vm6, %v2185_v24, %v2181_v20  ;;  %v1852_v31 = vand.u32 2147483648, %v1764_v47  ;;  %v1850_v18 = vand.u32 2147483647, %v1764_v47 }
 0x3c2   : > { %v2220_v8 = vmul.f32 %v4293_v21, %v2186_v16  ;;  %vm1846_vm8 = vweird.f32 %v1764_v47 }
 0x3c3   : > { %v1853_v14 = vor.u32 1.1754944e-38, %v1852_v31  ;;  %vm1851_vm11 = vcmp.eq.f32.partialorder %v1850_v18, 8.507059e+37 }
 0x3c4   : > { %v2225_v62 = vpack.c.bf16 %v2220_v8, %v2219_v59  ;;  %2860 = vst.msk [vmem:[%s4129_s6 + $0xe8] sm:$0xff] %vm709_vm0, %v2220_v8 }
 0x3c6   : > { %2853 = vmatmul.msk.bf16.gmra.mxu2 %vm709_vm0, %v2225_v62 }
 0x3c7   : > { %v3120_v17 = vpop.eup %3119 }
 0x3c8   : > { %v1842_v9 = vmul.f32 %v3120_v17, %v1764_v47  ;;  %v2099_v53 = vpop.xlane.xlu0 %2098  ;;  %vm1847_vm7 = vweird.f32 %v3120_v17 }
 0x3c9   : > { %3121 = vrcp.f32 %v2099_v53  ;;  %v1584_v57 = vpop.f32.mrf.mxu2  ;;  %vm1848_vm10 = vmor %vm1846_vm8, %vm1847_vm7  ;;  %v2198_v19 = vand.u32 2147483648, %v2099_v53  ;;  %v2196_v30 = vand.u32 2147483647, %v2099_v53  ;;  %vm2192_vm15 = vweird.f32 %v2099_v53 }
 0x3ca   : > { %v1843_v21 = vsub.f32 1.0, %v1842_v9  ;;  %v1605_v34 = vmul.f32 %v4696_v0, %v1584_v57 }
 0x3cb   : > { %v2199_v55 = vor.u32 1.1754944e-38, %v2198_v19  ;;  %vm2197_vm3 = vcmp.eq.f32.partialorder %v2196_v30, 8.507059e+37 }
 0x3cc   : > { %v1844_v50 = vmul.f32 %v3120_v17, %v1843_v21  ;;  %v4701_v61 = vadd.f32 %v1605_v34, %v1274_v36 }
 0x3ce   : > { %v1845_v44 = vadd.f32 %v3120_v17, %v1844_v50 }
 0x3cf   : > { %v3122_v46 = vpop.eup %3121 }
 0x3d0   : > { %v2188_v63 = vmul.f32 %v3122_v46, %v2099_v53  ;;  %v1849_v35 = vsel %vm1848_vm10, %v3120_v17, %v1845_v44  ;;  %vm2193_vm12 = vweird.f32 %v3122_v46 }
 0x3d1   : > { %v1586_v40 = vpop.f32.mrf.mxu2  ;;  %v1854_v1 = vsel %vm1851_vm11, %v1853_v14, %v1849_v35  ;;  %vm2194_vm2 = vmor %vm2192_vm15, %vm2193_vm12 }
 0x3d2   : > { %v2189_v15 = vsub.f32 1.0, %v2188_v63  ;;  %v1606_v13 = vmul.f32 %v4696_v0, %v1586_v40  ;;  %v4706_v11 = vmul.f32 %v4307_v27, %v1854_v1  ;;  %v4719_v27 = vpop.f32.mrf.mxu0 }
 0x3d4   : > { %v2190_v2 = vmul.f32 %v3122_v46, %v2189_v15  ;;  %v4708_v33 = vadd.f32 %v1606_v13, %v1275_v12  ;;  %2844 = vst.msk [vmem:[%s4129_s6 + $0xa8] sm:$0xff] %vm709_vm0, %v4706_v11 }
 0x3d6   : > { %v2191_v23 = vadd.f32 %v3122_v46, %v2190_v2 }
 0x3d8   : > { %v2195_v10 = vsel %vm2194_vm2, %v3122_v46, %v2191_v23 }
 0x3d9   : > { %v2200_v43 = vsel %vm2197_vm3, %v2199_v55, %v2195_v10 }
 0x3da   : > { %v4714_v45 = vmul.f32 %v4315_v39, %v2200_v43  ;;  %v1260_v51 = vpop.f32.mrf.mxu0 }
 0x3db   : > { %v1277_v21 = vmul.f32 %v4693_v6, %v1260_v51 }
 0x3dc   : > { %2861 = vst.msk [vmem:[%s4129_s6 + $0xf0] sm:$0xff] %vm709_vm0, %v4714_v45 }
 0x3e2   : > { %v4721_v3 = vpop.f32.mrf.mxu0 }
 0x3e5   : > { %v1761_v7 = vpop.xlane.xlu1 %1760 }
 0x3e6   : > { %3123 = vrcp.f32 %v1761_v7  ;;  %v1838_v39 = vand.u32 2147483648, %v1761_v7  ;;  %vm1832_vm14 = vweird.f32 %v1761_v7  ;;  %v1836_v38 = vand.u32 2147483647, %v1761_v7 }
 0x3e8   : > { %v1839_v16 = vor.u32 1.1754944e-38, %v1838_v39  ;;  %vm1837_vm1 = vcmp.eq.f32.partialorder %v1836_v38, 8.507059e+37 }
 0x3ea   : > { %v4748_v40 = vpop.f32.mrf.mxu0 }
 0x3ec   : > { %v3124_v48 = vpop.eup %3123 }
 0x3ed   : > { %v1828_v4 = vmul.f32 %v3124_v48, %v1761_v7  ;;  %vm1833_vm13 = vweird.f32 %v3124_v48 }
 0x3ee   : > { %v2102_v49 = vpop.xlane.xlu1 %2101  ;;  %vm1834_vm9 = vmor %vm1832_vm14, %vm1833_vm13 }
 0x3ef   : > { %3125 = vrcp.f32 %v2102_v49  ;;  %v1829_v59 = vsub.f32 1.0, %v1828_v4  ;;  %v2210_v8 = vand.u32 2147483647, %v2102_v49  ;;  %v2212_v62 = vand.u32 2147483648, %v2102_v49 }
 0x3f0   : > { %vm2206_vm5 = vweird.f32 %v2102_v49 }
 0x3f1   : > { %v1830_v32 = vmul.f32 %v3124_v48, %v1829_v59  ;;  %vm4733_vm6 = vcmp.eq.f32.partialorder %v2210_v8, 8.507059e+37  ;;  %v2213_v44 = vor.u32 1.1754944e-38, %v2212_v62 }
 0x3f3   : > { %v1831_v60 = vadd.f32 %v3124_v48, %v1830_v32 }
 0x3f5   : > { %v3126_v5 = vpop.eup %3125  ;;  %v1835_v20 = vsel %vm1834_vm9, %v3124_v48, %v1831_v60 }
 0x3f6   : > { %v2202_v52 = vmul.f32 %v3126_v5, %v2102_v49  ;;  %v1767_v29 = vpop.xlane.xlu2 %1766  ;;  %v4723_v37 = vpop.xlane.xlu1 %2080  ;;  %vm2207_vm4 = vweird.f32 %v3126_v5  ;;  %v1840_v9 = vsel %vm1837_vm1, %v1839_v16, %v1835_v20 }
 0x3f7   : > { %3127 = vrcp.f32 %v1767_v29  ;;  %v4725_v24 = vpop.xlane.xlu0 %1769  ;;  %v1887_v57 = vmul.f32 %v4380_v25, %v1840_v9  ;;  %v1864_v31 = vand.u32 2147483647, %v1767_v29  ;;  %vm4737_vm7 = vmor %vm2206_vm5, %vm2207_vm4  ;;  %vm1860_vm8 = vweird.f32 %v1767_v29 }
 0x3f8   : > { %v2203_v47 = vsub.f32 1.0, %v2202_v52  ;;  %3129 = vrcp.f32 %v4723_v37  ;;  %v4729_v17 = vpop.f32.mrf.mxu2  ;;  %v1866_v14 = vand.u32 2147483648, %v1767_v29  ;;  %vm2108_vm10 = vweird.f32 %v4723_v37 }
 0x3f9   : > { %3131 = vrcp.f32 %v4725_v24  ;;  %v1893_v56 = vpack.c.bf16 %v4706_v11, %v1887_v57  ;;  %2843 = vst.msk [vmem:[%s4129_s6 + $0xa0] sm:$0xff] %vm709_vm0, %v1887_v57  ;;  %v2112_v12 = vand.u32 2147483647, %v4723_v37  ;;  %vm4757_vm11 = vcmp.eq.f32.partialorder %v1864_v31, 8.507059e+37 }
 0x3fa   : > { %v2204_v41 = vmul.f32 %v3126_v5, %v2203_v47  ;;  %v2114_v30 = vand.u32 2147483648, %v4723_v37  ;;  %v1878_v7 = vand.u32 2147483647, %v4725_v24  ;;  %v1880_v48 = vand.u32 2147483648, %v4725_v24 }
 0x3fb   : > { %2837 = vmatmul.msk.bf16.gmra.mxu0 %vm709_vm0, %v1893_v56  ;;  %vm1874_vm13 = vweird.f32 %v4725_v24  ;;  %vm2113_vm9 = vcmp.eq.f32.partialorder %v2112_v12, 8.507059e+37 }
 0x3fc   : > { %v2205_v53 = vadd.f32 %v3126_v5, %v2204_v41  ;;  %v2115_v39 = vor.u32 1.1754944e-38, %v2114_v30  ;;  %v1881_v16 = vor.u32 1.1754944e-38, %v1880_v48  ;;  %vm1879_vm4 = vcmp.eq.f32.partialorder %v1878_v7, 8.507059e+37 }
 0x3fd   : > { %v3128_v36 = vpop.eup %3127  ;;  %v1607_v48 = vmul.f32 %v4696_v0, %v4729_v17 }
 0x3fe   : > { %v3130_v50 = vpop.eup %3129  ;;  %v1856_v46 = vmul.f32 %v3128_v36, %v1767_v29  ;;  %v2209_v35 = vsel %vm4737_vm7, %v3126_v5, %v2205_v53  ;;  %v4753_v13 = vpop.xlane.xlu2 %2083  ;;  %vm1861_vm12 = vweird.f32 %v3128_v36 }
 0x3ff   : > { %v3132_v25 = vpop.eup %3131  ;;  %v2104_v63 = vmul.f32 %v3130_v50, %v4723_v37  ;;  %v2214_v11 = vsel %vm4733_vm6, %v2213_v44, %v2209_v35  ;;  %3133 = vrcp.f32 %v4753_v13  ;;  %vm2109_vm15 = vweird.f32 %v3130_v50  ;;  %vm4770_vm3 = vmor %vm1860_vm8, %vm1861_vm12 }
 0x400   : > { %v1857_v1 = vsub.f32 1.0, %v1856_v46  ;;  %v1870_v15 = vmul.f32 %v3132_v25, %v4725_v24  ;;  %v2222_v10 = vmul.f32 %v4432_v58, %v2214_v11  ;;  %v1591_v51 = vpop.f32.mrf.mxu2  ;;  %vm1875_vm2 = vweird.f32 %v3132_v25  ;;  %vm2110_vm14 = vmor %vm2108_vm10, %vm2109_vm15 }
 0x401   : > { %v2105_v2 = vsub.f32 1.0, %v2104_v63  ;;  %v1608_v59 = vmul.f32 %v4696_v0, %v1591_v51  ;;  %v1867_v58 = vor.u32 1.1754944e-38, %v1866_v14  ;;  %vm1876_vm1 = vmor %vm1874_vm13, %vm1875_vm2  ;;  %v1268_v8 = vpop.f32.mrf.mxu0  ;;  %v2126_v34 = vand.u32 2147483647, %v4753_v13 }
 0x402   : > { %v1858_v23 = vmul.f32 %v3128_v36, %v1857_v1  ;;  %v1871_v55 = vsub.f32 1.0, %v1870_v15  ;;  %2862 = vst.msk [vmem:[%s4129_s6 + $0xf8] sm:$0xff] %vm709_vm0, %v2222_v10  ;;  %v2226_v5 = vpack.c.bf16 %v2222_v10, %v4714_v45  ;;  %v2128_v31 = vand.u32 2147483648, %v4753_v13 }
 0x403   : > { %v2106_v43 = vmul.f32 %v3130_v50, %v2105_v2  ;;  %v4778_v52 = vadd.f32 %v1608_v59, %v1277_v21  ;;  %v1278_v21 = vmul.f32 %v4693_v6, %v4721_v3  ;;  %vm2122_vm6 = vweird.f32 %v4753_v13 }
 0x404   : > { %v1859_v4 = vadd.f32 %v3128_v36, %v1858_v23  ;;  %v1872_v49 = vmul.f32 %v3132_v25, %v1871_v55  ;;  %2854 = vmatmul.msk.bf16.gmra.mxu2 %vm709_vm0, %v2226_v5  ;;  %v2129_v3 = vor.u32 1.1754944e-38, %v2128_v31  ;;  %vm2127_vm8 = vcmp.eq.f32.partialorder %v2126_v34, 8.507059e+37 }
 0x405   : > { %v2107_v60 = vadd.f32 %v3130_v50, %v2106_v43  ;;  %v3134_v47 = vpop.eup %3133  ;;  %v1279_v35 = vmul.f32 %v4693_v6, %v4748_v40  ;;  %v1280_v30 = vmul.f32 %v4693_v6, %v1268_v8 }
 0x406   : > { %v1873_v38 = vadd.f32 %v3132_v25, %v1872_v49  ;;  %v1863_v29 = vsel %vm4770_vm3, %v3128_v36, %v1859_v4  ;;  %v2118_v24 = vmul.f32 %v3134_v47, %v4753_v13  ;;  %vm2123_vm5 = vweird.f32 %v3134_v47 }
 0x407   : > { %v2111_v20 = vsel %vm2110_vm14, %v3130_v50, %v2107_v60  ;;  %v1868_v45 = vsel %vm4757_vm11, %v1867_v58, %v1863_v29  ;;  %vm2124_vm7 = vmor %vm2122_vm6, %vm2123_vm5  ;;  %v4813_v13 = vperm.slane %v4687_v26, 2  ;;  %v1276_v49 = vmul.f32 %v4693_v6, %v4719_v27 }
 0x408   : > { %v2116_v37 = vsel %vm2113_vm9, %v2115_v39, %v2111_v20  ;;  %v1877_v41 = vsel %vm1876_vm1, %v3132_v25, %v1873_v38  ;;  %v1889_v53 = vmul.f32 %v4473_v28, %v1868_v45  ;;  %v2119_v57 = vsub.f32 1.0, %v2118_v24  ;;  %v1594_v50 = vpop.f32.mrf.mxu2  ;;  %v3153_v38 = vld [vmem:[%s3717_s20 + $0x10] sm:$0xff] }
 0x409   : > { %v2215_v62 = vmul.f32 %v4464_v42, %v2116_v37  ;;  %v1882_v9 = vsel %vm1879_vm4, %v1881_v16, %v1877_v41  ;;  %v1609_v42 = vmul.f32 %v4696_v0, %v1594_v50  ;;  %v1270_v14 = vpop.f32.mrf.mxu0  ;;  %v1615_v58 = vadd.f32 %v1607_v48, %v1276_v49  ;;  %v3154_v41 = vld [vmem:[%s3717_s20 + $0x28] sm:$0xff]  ;;  %v3158_v49 = vld [vmem:[%s3717_s20 + $0x20] sm:$0xff] }
 0x40a   : > { %v1890_v36 = vmul.f32 %v4479_v54, %v1882_v9  ;;  %v2120_v18 = vmul.f32 %v3134_v47, %v2119_v57  ;;  %2845 = vst.msk [vmem:[%s4129_s6 + $0xb0] sm:$0xff] %vm709_vm0, %v1889_v53  ;;  %v1281_v51 = vmul.f32 %v4693_v6, %v1270_v14  ;;  %v4831_v60 = vperm.slane %v4687_v26, 3 }
 0x40b   : > { %2855 = vst.msk [vmem:[%s4129_s6 + $0xc0] sm:$0xff] %vm709_vm0, %v2215_v62  ;;  %v4802_v54 = vadd.f32 %v1609_v42, %v1278_v21  ;;  %v3460_v57 = vmov 64.0  }
 0x40c   : > { %v1894_v44 = vpack.c.bf16 %v1890_v36, %v1889_v53  ;;  %2846 = vst.msk [vmem:[%s4129_s6 + $0xb8] sm:$0xff] %vm709_vm0, %v1890_v36  ;;  %v2121_v28 = vadd.f32 %v3134_v47, %v2120_v18  ;;  %3135 = vrcp.f32 %v3460_v57 }
 0x40e   : > { %v2125_v46 = vsel %vm2124_vm7, %v3134_v47, %v2121_v28  ;;  %2838 = vmatmul.msk.bf16.gmra.mxu0 %vm709_vm0, %v1894_v44  ;;  %v3155_v44 = vld [vmem:[%s3717_s20] sm:$0xff] }
 0x40f   : > { %v2130_v56 = vsel %vm2127_vm8, %v2129_v3, %v2125_v46 }
 0x410   : > { %v2216_v25 = vmul.f32 %v4515_v22, %v2130_v56  ;;  %v1596_v63 = vpop.f32.mrf.mxu2 }
 0x411   : > { %v1610_v1 = vmul.f32 %v4696_v0, %v1596_v63 }
 0x412   : > { %2856 = vst.msk [vmem:[%s4129_s6 + $0xc8] sm:$0xff] %vm709_vm0, %v2216_v25  ;;  %v2223_v12 = vpack.c.bf16 %v2216_v25, %v2215_v62  ;;  %v3136_v42 = vpop.eup %3135 }
 0x413   : > { %v1618_v15 = vadd.f32 %v1610_v1, %v1279_v35  ;;  %v3156_v1 = vld [vmem:[%s3717_s20 + $0x18] sm:$0xff]  ;;  %vm2331_vm10 = vweird.f32 %v3136_v42 }
 0x414   : > { %2851 = vmatmul.msk.bf16.vlgmr.msrb.gmra.mxu1 %vm709_vm0, %v2223_v12 }
 0x41a   : > { %v1916_v11 = vpop.f32.mrf.mxu0 }
 0x41b   : > { %v1937_v19 = vmul.f32 %v4813_v13, %v1916_v11 }
 0x41d   : > { %v1945_v22 = vadd.f32 %v1937_v19, %v4701_v61 }
 0x41e   : > { %v1599_v2 = vpop.f32.mrf.mxu2 }
 0x41f   : > { %v1611_v40 = vmul.f32 %v4696_v0, %v1599_v2 }
 0x421   : > { %v1619_v55 = vadd.f32 %v1611_v40, %v1280_v30 }
 0x422   : > { %v1918_v23 = vpop.f32.mrf.mxu0 }
 0x423   : > { %v1938_v10 = vmul.f32 %v4813_v13, %v1918_v23  ;;  %v3157_v23 = vld [vmem:[%s3717_s20 + $0x8] sm:$0xff] }
 0x425   : > { %v1946_v43 = vadd.f32 %v1938_v10, %v4708_v33 }
 0x426   : > { %v1601_v7 = vpop.f32.mrf.mxu2 }
 0x427   : > { %v1612_v61 = vmul.f32 %v4696_v0, %v1601_v7 }
 0x429   : > { %v4827_v59 = vadd.f32 %v1612_v61, %v1281_v51 }
 0x42a   : > { %v1921_v4 = vpop.f32.mrf.mxu0 }
 0x42b   : > { %v1939_v32 = vmul.f32 %v4813_v13, %v1921_v4 }
 0x42d   : > { %v1947_v33 = vadd.f32 %v1939_v32, %v1615_v58  ;;  %v3159_v58 = vld [vmem:[%s3717_s20 + $0x30] sm:$0xff] }
 0x42e   : > { %v2253_v5 = vpop.f32.mrf.mxu2 }
 0x42f   : > { %v2271_v17 = vmul.f32 %v4831_v60, %v2253_v5 }
 0x431   : > { %v2279_v39 = vadd.f32 %v2271_v17, %v1947_v33 }
 0x432   : > { %v1923_v29 = vpop.f32.mrf.mxu0 }
 0x433   : > { %v4835_v0 = vadd.f32 %v3153_v38, %v2279_v39  ;;  %v1940_v53 = vmul.f32 %v4813_v13, %v1923_v29  ;;  %v3160_v29 = vld [vmem:[%s3717_s20 + $0x38] sm:$0xff]  ;;  %s4932_s20 = scalar_lea.vmem [#allocation14], %s3713_s18  ;;  %s2884_s18 = sshll.u32 %s3559_s17, 6 }
 0x434   : > { %s2534_s25 = scalar_lea.hbm %s5123_s27, %s2884_s18  ;;  %s2535_s13 = sshll.u32 %s4932_s20, 4  ;;  %s2536_s13 = int_to_ptr.vmem [resolvable:$true] %s2535_s13 }
 0x435   : > { %v2308_v6 = vsel %vm709_vm0, %v4835_v0, 0.0  ;;  %v1948_v34 = vadd.f32 %v1940_v53, %v4778_v52  ;;  %v2327_v52 = vmul.f32 64.0, %v3136_v42  ;;  %s2537_s29 = sshll.u32 %s2534_s25, 4  ;;  %s2538_s29 = int_to_ptr.hbm [resolvable:$true] %s2537_s29 }
 0x436   : > { %2309 = vadd.xlane.f32.xlu2 %v2308_v6  ;;  %v2255_v27 = vpop.f32.mrf.mxu2  ;;  %s3385_s9 = sshra.s32 %s2538_s29, 4  ;;  %s3386_s9 = int_to_ptr.hbm [resolvable:$true] %s3385_s9 }
 0x437   : > { %v2272_v18 = vmul.f32 %v4831_v60, %v2255_v27  ;;  %v2328_v2 = vsub.f32 1.0, %v2327_v52  ;;  %s3387_s24 = scalar_lea.hbm %s3386_s9, 64  ;;  %p3392_p11 = scmp.lt.s32.totalorder %s3386_s9, %s5123_s27 }
 0x438   : > { %p3388_p5 = scmp.ne.s32.totalorder %s3386_s9, %s3387_s24  ;;  %p3393_p10 = scmp.lt.s32.totalorder %s3391_s28, %s3387_s24 }
 0x439   : > { %v2280_v3 = vadd.f32 %v2272_v18, %v1948_v34 }
 0x43a   : > { %p3389_p1 = pnand %p3388_p5, %p3611_p0  ;;  %p3394_p12 = por %p3393_p10, %p3392_p11 }
 0x43b   : > { %v2297_v12 = vadd.f32 %v3156_v1, %v2280_v3 }
 0x43c   : > { %p3390_p2 = pneg %p3389_p1 }
 0x43d   : > { %v2311_v7 = vsel %vm709_vm0, %v2297_v12, 0.0 }
 0x43e   : > { %p3395_p13 = pnand %p3394_p12, %p3390_p2 }
 0x449   : > { %v2258_v47 = vpop.f32.mrf.mxu2 }
 0x44a   : > { %v2273_v30 = vmul.f32 %v4831_v60, %v2258_v47 }
 0x451   : > { %v2260_v16 = vpop.f32.mrf.mxu2 }
 0x452   : > { %v2274_v37 = vmul.f32 %v4831_v60, %v2260_v16 }
 0x478   : > { %v1926_v20 = vpop.f32.mrf.mxu0 }
 0x479   : > { %v1941_v46 = vmul.f32 %v4813_v13, %v1926_v20 }
 0x480   : > { %v1928_v26 = vpop.f32.mrf.mxu0 }
 0x481   : > { %v1942_v45 = vmul.f32 %v4813_v13, %v1928_v26 }
 0x483   : > { %v1950_v24 = vadd.f32 %v1942_v45, %v1618_v15  ;;  %v1949_v15 = vadd.f32 %v1941_v46, %v4802_v54 }
 0x485   : > { %v2282_v8 = vadd.f32 %v2274_v37, %v1950_v24  ;;  %v2281_v61 = vadd.f32 %v2273_v30, %v1949_v15 }
 0x487   : > { %v4842_v62 = vadd.f32 %v3154_v41, %v2282_v8  ;;  %v2263_v14 = vpop.f32.mrf.mxu2  ;;  %v2298_v32 = vadd.f32 %v3158_v49, %v2281_v61  ;;  %v4926_v49 = vld [vmem:[#allocation13] ss:$0 sm:$0xff] }
 0x488   : > { %v2275_v40 = vmul.f32 %v4831_v60, %v2263_v14 }
 0x489   : > { %v2317_v9 = vsel %vm709_vm0, %v4842_v62, 0.0 }
 0x48a   : > { %2318 = vadd.xlane.f32.xlu2 %v2317_v9 }
 0x48b   : > { %v1931_v31 = vpop.f32.mrf.mxu0 }
 0x48c   : > { %v1943_v56 = vmul.f32 %v4813_v13, %v1931_v31 }
 0x48e   : > { %v1951_v11 = vadd.f32 %v1943_v56, %v1619_v55  ;;  %v2329_v55 = vmul.f32 %v3136_v42, %v2328_v2 }
 0x490   : > { %v2283_v54 = vadd.f32 %v2275_v40, %v1951_v11  ;;  %v2330_v5 = vadd.f32 %v3136_v42, %v2329_v55 }
 0x491   : > { %v2248_v36 = vpop.f32.mrf.mxu1 }
 0x492   : > { %v2269_v21 = vmul.f32 %v4831_v60, %v2248_v36  ;;  %v2300_v33 = vadd.f32 %v3159_v58, %v2283_v54  ;;  %v4869_v6 = vsel %vm2331_vm10, %v3136_v42, %v2330_v5 }
 0x494   : > { %v2277_v50 = vadd.f32 %v2269_v21, %v1945_v22  ;;  %v1933_v22 = vpop.f32.mrf.mxu0  ;;  %v2320_v39 = vsel %vm709_vm0, %v2300_v33, 0.0 }
 0x495   : > { %v1944_v48 = vmul.f32 %v4813_v13, %v1933_v22  ;;  %v2314_v13 = vsel %vm709_vm0, %v2298_v32, 0.0 }
 0x496   : > { %v2294_v28 = vadd.f32 %v3155_v44, %v2277_v50 }
 0x497   : > { %v1952_v4 = vadd.f32 %v1944_v48, %v4827_v59 }
 0x498   : > { %v2302_v25 = vsel %vm709_vm0, %v2294_v28, 0.0 }
 0x499   : > { %v2250_v63 = vpop.f32.mrf.mxu1  ;;  %2303 = vadd.xlane.f32.xlu0 %v2302_v25 }
 0x49a   : > { %v2270_v35 = vmul.f32 %v4831_v60, %v2250_v63 }
 0x49c   : > { %v2278_v19 = vadd.f32 %v2270_v35, %v1946_v43  ;;  %v2265_v43 = vpop.f32.mrf.mxu2 }
 0x49d   : > { %v2276_v17 = vmul.f32 %v4831_v60, %v2265_v43  ;;  %v4924_v43 = vld [vmem:[#allocation11] ss:$0 sm:$0xff] }
 0x49e   : > { %v2295_v10 = vadd.f32 %v3157_v23, %v2278_v19 }
 0x49f   : > { %v2284_v38 = vadd.f32 %v2276_v17, %v1952_v4 }
 0x4a0   : > { %v2305_v51 = vsel %vm709_vm0, %v2295_v10, 0.0 }
 0x4a1   : > { %2306 = vadd.xlane.f32.xlu1 %v2305_v51  ;;  %2312 = vadd.xlane.f32.xlu0 %v2311_v7  ;;  %v2301_v47 = vadd.f32 %v3160_v29, %v2284_v38 }
 0x4a3   : > { %v2323_v60 = vsel %vm709_vm0, %v2301_v47, 0.0 }
 0x4a9   : > { %v2310_v27 = vpop.xlane.xlu2 %2309  ;;  %2315 = vadd.xlane.f32.xlu1 %v2314_v13  ;;  %2321 = vadd.xlane.f32.xlu0 %v2320_v39 }
 0x4aa   : > { %v2335_v59 = vmul.f32 %v4869_v6, %v2310_v27 }
 0x4ac   : > { %v4874_v20 = vsub.f32 %v4835_v0, %v2335_v59 }
 0x4ae   : > { %v2351_v16 = vmul.f32 %v4874_v20, %v4874_v20 }
 0x4b0   : > { %v2363_v26 = vsel %vm709_vm0, %v2351_v16, 0.0 }
 0x4b1   : > { %2324 = vadd.xlane.f32.xlu1 %v2323_v60 }
 0x4b9   : > { %2364 = vadd.xlane.f32.xlu1 %v2363_v26 }
 0x4fd   : > { %v2319_v45 = vpop.xlane.xlu2 %2318 }
 0x4fe   : > { %v2338_v37 = vmul.f32 %v4869_v6, %v2319_v45 }
 0x500   : > { %v4882_v24 = vsub.f32 %v4842_v62, %v2338_v37 }
 0x502   : > { %v2354_v8 = vmul.f32 %v4882_v24, %v4882_v24 }
 0x504   : > { %v2372_v0 = vsel %vm709_vm0, %v2354_v8, 0.0 }
 0x505   : > { %2373 = vadd.xlane.f32.xlu1 %v2372_v0 }
 0x50c   : > { %v2304_v41 = vpop.xlane.xlu0 %2303 }
 0x50d   : > { %v2333_v9 = vmul.f32 %v4869_v6, %v2304_v41 }
 0x50f   : > { %v4888_v53 = vsub.f32 %v2294_v28, %v2333_v9 }
 0x511   : > { %v2349_v57 = vmul.f32 %v4888_v53, %v4888_v53 }
 0x513   : > { %v2357_v36 = vsel %vm709_vm0, %v2349_v57, 0.0 }
 0x514   : > { %v2307_v21 = vpop.xlane.xlu1 %2306  ;;  %2358 = vadd.xlane.f32.xlu2 %v2357_v36  ;;  %v2313_v62 = vpop.xlane.xlu0 %2312 }
 0x515   : > { %v2334_v34 = vmul.f32 %v4869_v6, %v2307_v21  ;;  %v2336_v31 = vmul.f32 %v4869_v6, %v2313_v62 }
 0x517   : > { %v4895_v50 = vsub.f32 %v2295_v10, %v2334_v34  ;;  %v4897_v18 = vsub.f32 %v2297_v12, %v2336_v31 }
 0x519   : > { %v2350_v42 = vmul.f32 %v4895_v50, %v4895_v50  ;;  %v2352_v44 = vmul.f32 %v4897_v18, %v4897_v18 }
 0x51b   : > { %v2360_v28 = vsel %vm709_vm0, %v2350_v42, 0.0  ;;  %v2366_v3 = vsel %vm709_vm0, %v2352_v44, 0.0 }
 0x51c   : > { %v2316_v46 = vpop.xlane.xlu1 %2315  ;;  %2361 = vadd.xlane.f32.xlu0 %v2360_v28  ;;  %2367 = vadd.xlane.f32.xlu2 %v2366_v3  ;;  %v2322_v56 = vpop.xlane.xlu0 %2321 }
 0x51d   : > { %v2337_v25 = vmul.f32 %v4869_v6, %v2316_v46  ;;  %v2339_v14 = vmul.f32 %v4869_v6, %v2322_v56 }
 0x51f   : > { %v4907_v63 = vsub.f32 %v2298_v32, %v2337_v25  ;;  %v4909_v52 = vsub.f32 %v2300_v33, %v2339_v14 }
 0x521   : > { %v2353_v35 = vmul.f32 %v4907_v63, %v4907_v63  ;;  %v2355_v1 = vmul.f32 %v4909_v52, %v4909_v52 }
 0x523   : > { %v2369_v12 = vsel %vm709_vm0, %v2353_v35, 0.0  ;;  %v2375_v15 = vsel %vm709_vm0, %v2355_v1, 0.0 }
 0x524   : > { %2370 = vadd.xlane.f32.xlu0 %v2369_v12  ;;  %v2325_v11 = vpop.xlane.xlu1 %2324  ;;  %2376 = vadd.xlane.f32.xlu2 %v2375_v15 }
 0x525   : > { %v2340_v19 = vmul.f32 %v4869_v6, %v2325_v11 }
 0x527   : > { %v4918_v22 = vsub.f32 %v2301_v47, %v2340_v19 }
 0x529   : > { %v2356_v2 = vmul.f32 %v4918_v22, %v4918_v22 }
 0x52b   : > { %v2378_v30 = vsel %vm709_vm0, %v2356_v2, 0.0 }
 0x52c   : > { %2379 = vadd.xlane.f32.xlu0 %v2378_v30  ;;  %v2365_v40 = vpop.xlane.xlu1 %2364 }
 0x52d   : > { %v2383_v23 = vmul.f32 %v2365_v40, %v4869_v6 }
 0x52f   : > { %v2391_v10 = vadd.f32 1e-05, %v2383_v23 }
 0x531   : > { %3137 = vrsqrt.f32 %v2391_v10  ;;  %vm2423_vm12 = vweird.f32 %v2391_v10 }
 0x537   : > { %v3138_v7 = vpop.eup %3137 }
 0x538   : > { %v2418_v48 = vmul.f32 %v3138_v7, %v2391_v10  ;;  %vm2424_vm11 = vweird.f32 %v3138_v7 }
 0x539   : > { %vm2425_vm15 = vmor %vm2423_vm12, %vm2424_vm11 }
 0x53a   : > { %v2419_v51 = vmul.f32 %v3138_v7, %v2418_v48 }
 0x53c   : > { %v2420_v61 = vmul.f32 0.5, %v2419_v51 }
 0x53e   : > { %v2421_v54 = vsub.f32 1.5, %v2420_v61 }
 0x540   : > { %v2422_v55 = vmul.f32 %v3138_v7, %v2421_v54 }
 0x542   : > { %v2426_v4 = vsel %vm2425_vm15, %v3138_v7, %v2422_v55 }
 0x543   : > { %v2479_v32 = vmul.f32 %v2426_v4, %v4874_v20 }
 0x545   : > { %v2491_v58 = vmul.f32 %v4924_v43, %v2479_v32 }
 0x547   : > { %v2503_v33 = vadd.f32 %v4926_v49, %v2491_v58 }
 0x549   : > { %2511 = vst.msk [vmem:[%s4932_s20 + $0x10] sm:$0xff] %vm709_vm0, %v2503_v33 }
 0x578   : > { %v2374_v5 = vpop.xlane.xlu1 %2373 }
 0x579   : > { %v2386_v17 = vmul.f32 %v2374_v5, %v4869_v6 }
 0x57b   : > { %v2394_v13 = vadd.f32 1e-05, %v2386_v17 }
 0x57d   : > { %3139 = vrsqrt.f32 %v2394_v13  ;;  %vm2453_vm3 = vweird.f32 %v2394_v13 }
 0x583   : > { %v3140_v39 = vpop.eup %3139 }
 0x584   : > { %v2448_v38 = vmul.f32 %v3140_v39, %v2394_v13  ;;  %vm2454_vm2 = vweird.f32 %v3140_v39 }
 0x585   : > { %vm2455_vm13 = vmor %vm2453_vm3, %vm2454_vm2 }
 0x586   : > { %v2449_v29 = vmul.f32 %v3140_v39, %v2448_v38 }
 0x587   : > { %v2359_v27 = vpop.xlane.xlu2 %2358 }
 0x588   : > { %v2381_v59 = vmul.f32 %v2359_v27, %v4869_v6  ;;  %v2450_v20 = vmul.f32 0.5, %v2449_v29 }
 0x58a   : > { %v2389_v47 = vadd.f32 1e-05, %v2381_v59  ;;  %v2451_v60 = vsub.f32 1.5, %v2450_v20 }
 0x58c   : > { %3141 = vrsqrt.f32 %v2389_v47  ;;  %v2452_v16 = vmul.f32 %v3140_v39, %v2451_v60  ;;  %vm2403_vm9 = vweird.f32 %v2389_v47 }
 0x58e   : > { %v2456_v0 = vsel %vm2455_vm13, %v3140_v39, %v2452_v16 }
 0x58f   : > { %v2368_v26 = vpop.xlane.xlu2 %2367  ;;  %v2362_v45 = vpop.xlane.xlu0 %2361  ;;  %v2482_v9 = vmul.f32 %v2456_v0, %v4882_v24 }
 0x590   : > { %v2384_v37 = vmul.f32 %v2368_v26, %v4869_v6  ;;  %v2382_v8 = vmul.f32 %v2362_v45, %v4869_v6 }
 0x591   : > { %v2494_v62 = vmul.f32 %v4924_v43, %v2482_v9 }
 0x592   : > { %v3142_v41 = vpop.eup %3141  ;;  %v2392_v57 = vadd.f32 1e-05, %v2384_v37  ;;  %v2390_v36 = vadd.f32 1e-05, %v2382_v8 }
 0x593   : > { %v2398_v21 = vmul.f32 %v3142_v41, %v2389_v47  ;;  %v2506_v31 = vadd.f32 %v4926_v49, %v2494_v62  ;;  %vm2404_vm14 = vweird.f32 %v3142_v41 }
 0x594   : > { %3143 = vrsqrt.f32 %v2392_v57  ;;  %vm2405_vm1 = vmor %vm2403_vm9, %vm2404_vm14  ;;  %vm2433_vm6 = vweird.f32 %v2392_v57  ;;  %vm2413_vm8 = vweird.f32 %v2390_v36 }
 0x595   : > { %v2399_v34 = vmul.f32 %v3142_v41, %v2398_v21  ;;  %3145 = vrsqrt.f32 %v2390_v36  ;;  %2514 = vst.msk [vmem:[%s4932_s20 + $0x28] sm:$0xff] %vm709_vm0, %v2506_v31 }
 0x597   : > { %v2400_v42 = vmul.f32 0.5, %v2399_v34  ;;  %v2377_v44 = vpop.xlane.xlu2 %2376  ;;  %v2371_v28 = vpop.xlane.xlu0 %2370 }
 0x598   : > { %v2387_v3 = vmul.f32 %v2377_v44, %v4869_v6  ;;  %v2385_v46 = vmul.f32 %v2371_v28, %v4869_v6 }
 0x599   : > { %v2401_v24 = vsub.f32 1.5, %v2400_v42 }
 0x59a   : > { %v3144_v56 = vpop.eup %3143  ;;  %v2395_v25 = vadd.f32 1e-05, %v2387_v3  ;;  %v4947_v14 = vadd.f32 1e-05, %v2385_v46 }
 0x59b   : > { %v3146_v35 = vpop.eup %3145  ;;  %v2402_v1 = vmul.f32 %v3142_v41, %v2401_v24  ;;  %v2428_v12 = vmul.f32 %v3144_v56, %v2392_v57  ;;  %vm2434_vm4 = vweird.f32 %v3144_v56 }
 0x59c   : > { %v2408_v15 = vmul.f32 %v3146_v35, %v2390_v36  ;;  %3147 = vrsqrt.f32 %v2395_v25  ;;  %vm2414_vm5 = vweird.f32 %v3146_v35  ;;  %vm2435_vm7 = vmor %vm2433_vm6, %vm2434_vm4  ;;  %vm2463_vm15 = vweird.f32 %v2395_v25 }
 0x59d   : > { %v2406_v11 = vsel %vm2405_vm1, %v3142_v41, %v2402_v1  ;;  %v2429_v19 = vmul.f32 %v3144_v56, %v2428_v12  ;;  %3149 = vrsqrt.f32 %v4947_v14  ;;  %vm2415_vm10 = vmor %vm2413_vm8, %vm2414_vm5  ;;  %vm2443_vm3 = vweird.f32 %v4947_v14 }
 0x59e   : > { %v2477_v2 = vmul.f32 %v2406_v11, %v4888_v53  ;;  %v2409_v30 = vmul.f32 %v3146_v35, %v2408_v15 }
 0x59f   : > { %v2430_v40 = vmul.f32 0.5, %v2429_v19  ;;  %v2380_v23 = vpop.xlane.xlu0 %2379 }
 0x5a0   : > { %v2489_v10 = vmul.f32 %v4924_v43, %v2477_v2  ;;  %v2410_v7 = vmul.f32 0.5, %v2409_v30  ;;  %v2388_v48 = vmul.f32 %v2380_v23, %v4869_v6 }
 0x5a1   : > { %v2431_v51 = vsub.f32 1.5, %v2430_v40 }
 0x5a2   : > { %v3148_v61 = vpop.eup %3147  ;;  %v2501_v54 = vadd.f32 %v4926_v49, %v2489_v10  ;;  %v2411_v55 = vsub.f32 1.5, %v2410_v7  ;;  %v2396_v4 = vadd.f32 1e-05, %v2388_v48 }
 0x5a3   : > { %v3150_v32 = vpop.eup %3149  ;;  %v2432_v58 = vmul.f32 %v3144_v56, %v2431_v51  ;;  %v2458_v53 = vmul.f32 %v3148_v61, %v2395_v25  ;;  %vm2464_vm11 = vweird.f32 %v3148_v61 }
 0x5a4   : > { %2509 = vst.msk [vmem:[%s4932_s20] sm:$0xff] %vm709_vm0, %v2501_v54  ;;  %v2412_v33 = vmul.f32 %v3146_v35, %v2411_v55  ;;  %v2438_v5 = vmul.f32 %v3150_v32, %v4947_v14  ;;  %3151 = vrsqrt.f32 %v2396_v4  ;;  %vm2444_vm12 = vweird.f32 %v3150_v32  ;;  %vm2465_vm2 = vmor %vm2463_vm15, %vm2464_vm11 }
 0x5a5   : > { %v2436_v6 = vsel %vm2435_vm7, %v3144_v56, %v2432_v58  ;;  %v2459_v17 = vmul.f32 %v3148_v61, %v2458_v53  ;;  %vm2445_vm13 = vmor %vm2443_vm3, %vm2444_vm12  ;;  %vm2473_vm9 = vweird.f32 %v2396_v4 }
 0x5a6   : > { %v2480_v13 = vmul.f32 %v2436_v6, %v4897_v18  ;;  %v2416_v39 = vsel %vm2415_vm10, %v3146_v35, %v2412_v33  ;;  %v2439_v38 = vmul.f32 %v3150_v32, %v2438_v5 }
 0x5a7   : > { %v2478_v27 = vmul.f32 %v2416_v39, %v4895_v50  ;;  %v2460_v59 = vmul.f32 0.5, %v2459_v17 }
 0x5a8   : > { %v2492_v29 = vmul.f32 %v4924_v43, %v2480_v13  ;;  %v2440_v47 = vmul.f32 0.5, %v2439_v38 }
 0x5a9   : > { %v2490_v20 = vmul.f32 %v4924_v43, %v2478_v27  ;;  %v2461_v60 = vsub.f32 1.5, %v2460_v59 }
 0x5aa   : > { %v3152_v16 = vpop.eup %3151  ;;  %v2504_v26 = vadd.f32 %v4926_v49, %v2492_v29  ;;  %v2441_v45 = vsub.f32 1.5, %v2440_v47 }
 0x5ab   : > { %v2502_v18 = vadd.f32 %v4926_v49, %v2490_v20  ;;  %v2462_v37 = vmul.f32 %v3148_v61, %v2461_v60  ;;  %v2468_v50 = vmul.f32 %v3152_v16, %v2396_v4  ;;  %vm2474_vm14 = vweird.f32 %v3152_v16 }
 0x5ac   : > { %2512 = vst.msk [vmem:[%s4932_s20 + $0x18] sm:$0xff] %vm709_vm0, %v2504_v26  ;;  %v2442_v8 = vmul.f32 %v3150_v32, %v2441_v45  ;;  %vm2475_vm1 = vmor %vm2473_vm9, %vm2474_vm14 }
 0x5ad   : > { %2510 = vst.msk [vmem:[%s4932_s20 + $0x8] sm:$0xff] %vm709_vm0, %v2502_v18  ;;  %v2466_v0 = vsel %vm2465_vm2, %v3148_v61, %v2462_v37  ;;  %v2469_v41 = vmul.f32 %v3152_v16, %v2468_v50 }
 0x5ae   : > { %v2483_v9 = vmul.f32 %v2466_v0, %v4909_v52  ;;  %v2446_v57 = vsel %vm2445_vm13, %v3150_v32, %v2442_v8 }
 0x5af   : > { %v2481_v36 = vmul.f32 %v2446_v57, %v4907_v63  ;;  %v2470_v21 = vmul.f32 0.5, %v2469_v41 }
 0x5b0   : > { %v2495_v62 = vmul.f32 %v4924_v43, %v2483_v9 }
 0x5b1   : > { %v2493_v34 = vmul.f32 %v4924_v43, %v2481_v36  ;;  %v2471_v31 = vsub.f32 1.5, %v2470_v21 }
 0x5b2   : > { %v2507_v42 = vadd.f32 %v4926_v49, %v2495_v62 }
 0x5b3   : > { %v2505_v44 = vadd.f32 %v4926_v49, %v2493_v34  ;;  %v2472_v52 = vmul.f32 %v3152_v16, %v2471_v31 }
 0x5b4   : > { %2515 = vst.msk [vmem:[%s4932_s20 + $0x30] sm:$0xff] %vm709_vm0, %v2507_v42 }
 0x5b5   : > { %2513 = vst.msk [vmem:[%s4932_s20 + $0x20] sm:$0xff] %vm709_vm0, %v2505_v44  ;;  %v2476_v63 = vsel %vm2475_vm1, %v3152_v16, %v2472_v52 }
 0x5b6   : > { %v2484_v28 = vmul.f32 %v2476_v63, %v4918_v22 }
 0x5b8   : > { %v2496_v3 = vmul.f32 %v4924_v43, %v2484_v28 }
 0x5ba   : > { %v2508_v46 = vadd.f32 %v4926_v49, %v2496_v3 }
 0x5bc   : > { %2516 = vst.msk [vmem:[%s4932_s20 + $0x38] sm:$0xff] %vm709_vm0, %v2508_v46 }
 0x5bd   : > { %3398 = shalt.err (!%p3395_p13)
}
 0x5be   : > { %s3461_s26 = smov 128   ;;  %s3462_s1 = smov 8  }
 0x5bf   : > { %2919 = dma.vmem_to_hbm [thread:$0]  (%p3611_p0), %s2536_s13, 1024, %s2538_s29, %s2518_s16, %s3461_s26, %s3461_s26, %s3462_s1  }
 0x5c0 PF: > { %s5125_s14 = sld [smem:[#allocation21_spill]] }
 0x5c1   : > { %s5126_s20 = sld [smem:[#allocation20_spill]] }
 0x5c6   : > { %p2957_p8 = scmp.ge.s32.totalorder %s5125_s14, 2 }
 0x5c7   : > { %s2555_s11 = sand.u32 1, %s5126_s20  }
 0x5c8   : > { %p2945_p7 = pnand %p2957_p8, %p3573_p6  ;;  %s2556_s21 = scalar_lea.sflag [#allocation4], %s2555_s11 }
 0x5ca   : > { %p2946_p9 = pneg %p2945_p7 }
 0x5cc   : > { %3432 = dma.done.wait (%p2946_p9), %s2556_s21, 1024  }
 0x5cd   : > { %3434 = vsyncadd (%p2946_p9), %s2556_s21, 4294966272  ;;  %s5128_s16 = sld [smem:[#allocation23_spill]]  ;;  %s5130_s29 = smov %s3441_s30 }
 0x5ce   : > { %s5129_s25 = sld [smem:[#allocation25_spill]]  ;;  %s5131_s30 = smov %s3445_s15 }
 0x5d3   : > { %p33_p3 = scmp.ge.s32.totalorder %s5128_s16, 6  }
 0x5d4   : > { %s5132_s15 = smov %s5129_s25 }
 0x5d5   :  { %35 = sbr.rel (!%p33_p3) target bundleno = 18 (0x12), region = 172 }
 0x5da   :  { %2570 = vsyncpa [#allocation3], 1 }
 0x5db   :  { %2572 = vsyncpa [#allocation3 + $0x1], 1 }
 0x5dc   :  { %2573 = vsyncpa [#allocation6], 1 }
 0x5dd   :  { %2575 = vsyncpa [#allocation6 + $0x1], 1 }
 0x5de   :  { %2576 = vsyncpa [#allocation9], 1 }
 0x5df   :  { %2577 = vsyncpa [#allocation12], 1 }
 0x5e0   :  { %2578 = vsyncpa [#allocation4], 1 }
 0x5e1   :  { %2580 = vsyncpa [#allocation4 + $0x1], 1 }

</bundles_post_ra>
